<compile_context>
chip_gen: v7x
topology: tpu7x:2x2x1
jax: 0.10.0
libtpu: 0.0.40
codegen_flags: <defaults>
</compile_context>

<pallas_src>
import jax
import jax.numpy as jnp
from jax import lax
from jax.experimental import pallas as pl
from jax.experimental.pallas import tpu as pltpu

BN_EPS = 1e-5


# ----------------------------------------------------------------------------
# Fused UpConv kernel: pad+concat -> conv3x3+BN+ReLU -> conv3x3+BN+ReLU
# ----------------------------------------------------------------------------
def _upconv_fused_kernel(xu_ref, y_ref, w1_ref, s1_ref, t1_ref,
                         w2_ref, s2_ref, t2_ref, o_ref, p1, p2):
    _, H, W, Cx = xu_ref.shape
    Cy = y_ref.shape[-1]
    Cin = Cx + Cy
    Cmid = w1_ref.shape[-1]
    HW = H * W

    # ---- channel-concat [upsampled x, y] into a zero-padded VMEM scratch ----
    p1[...] = jnp.zeros_like(p1)
    p1[1:H + 1, 1:W + 1, :] = jnp.concatenate([xu_ref[0], y_ref[0]], axis=-1)

    def conv_slab(pad_ref, c):
        # im2col: the 9 shifted views of the padded activation, tap-major on
        # the channel axis -> (H*W, 9*c) patch slab for one K=9*c MXU matmul.
        views = [pad_ref[kh:kh + H, kw:kw + W, :]
                 for kh in range(3) for kw in range(3)]
        return jnp.concatenate(views, axis=-1).reshape(HW, 9 * c)

    # ---- conv1 (3x3, pad 1) as one MXU matmul, fused folded-BN + ReLU ----
    a1 = jnp.dot(conv_slab(p1, Cin), w1_ref[...],
                 preferred_element_type=jnp.float32)           # (HW, Cmid) f32
    h1 = jnp.maximum(a1 * s1_ref[...] + t1_ref[...], 0.0)

    # ---- re-pad the intermediate (stays VMEM resident, bf16 for the MXU) ----
    p2[...] = jnp.zeros_like(p2)
    p2[1:H + 1, 1:W + 1, :] = h1.reshape(H, W, Cmid).astype(p2.dtype)

    # ---- conv2 (3x3, pad 1), fused folded-BN + ReLU ----
    a2 = jnp.dot(conv_slab(p2, Cmid), w2_ref[...],
                 preferred_element_type=jnp.float32)           # (HW, Cout) f32
    h2 = jnp.maximum(a2 * s2_ref[...] + t2_ref[...], 0.0)

    # lane-dense store: (Cout, HW) is NCHW row-major; HW is a multiple of 128.
    o_ref[0] = h2.T.astype(o_ref.dtype)


# ----------------------------------------------------------------------------
# Bilinear (align_corners=True) interpolation matrices — wrapper glue
# ----------------------------------------------------------------------------
def _interp_matrix(n_out, n_in):
    if n_out > 1 and n_in > 1:
        src = jnp.arange(n_out, dtype=jnp.float32) * ((n_in - 1) / (n_out - 1))
    else:
        src = jnp.zeros((n_out,), jnp.float32)
    i0 = jnp.floor(src)
    frac = src - i0
    i0 = i0.astype(jnp.int32)
    i1 = jnp.minimum(i0 + 1, n_in - 1)
    cols = jnp.arange(n_in, dtype=jnp.int32)[None, :]
    return ((cols == i0[:, None]).astype(jnp.float32) * (1.0 - frac)[:, None]
            + (cols == i1[:, None]).astype(jnp.float32) * frac[:, None])


# ----------------------------------------------------------------------------
# UpConv forward (wrapper around the single fused Pallas kernel)
# ----------------------------------------------------------------------------
def upconv_forward(x_nchw, y_nchw, params):
    conv1_p, conv2_p = params
    n, cx, hx, wx = x_nchw.shape
    _, cy, hy, wy = y_nchw.shape
    cin = cx + cy
    cmid = conv1_p["w"].shape[-1]
    cout = conv2_p["w"].shape[-1]
    hw = hy * wy

    # bilinear upsample of x to y's spatial size (align_corners=True)
    ah = _interp_matrix(hy, hx)
    aw = _interp_matrix(wy, wx)
    xu = jnp.einsum("ah,nchw->ncaw", ah, x_nchw)
    xu = jnp.einsum("bw,ncaw->ncab", aw, xu)

    # channels-last, bf16 inputs for the kernel (halves DMA, feeds the MXU)
    xu = jnp.transpose(xu, (0, 2, 3, 1)).astype(jnp.bfloat16)      # (N,Hy,Wy,Cx)
    yh = jnp.transpose(y_nchw, (0, 2, 3, 1)).astype(jnp.bfloat16)  # (N,Hy,Wy,Cy)

    # tap-major flattened conv weights: (3,3,Cin,Cout) -> (9*Cin, Cout), bf16
    w1f = conv1_p["w"].reshape(9 * cin, cmid).astype(jnp.bfloat16)
    w2f = conv2_p["w"].reshape(9 * cmid, cout).astype(jnp.bfloat16)
    s1 = conv1_p["scale"].reshape(1, cmid)
    t1 = conv1_p["shift"].reshape(1, cmid)
    s2 = conv2_p["scale"].reshape(1, cout)
    t2 = conv2_p["shift"].reshape(1, cout)

    out = pl.pallas_call(
        _upconv_fused_kernel,
        out_shape=jax.ShapeDtypeStruct((n, cout, hw), jnp.float32),
        grid_spec=pltpu.PrefetchScalarGridSpec(
            num_scalar_prefetch=0,
            grid=(n,),
            in_specs=[
                pl.BlockSpec((1, hy, wy, cx), lambda i: (i, 0, 0, 0)),
                pl.BlockSpec((1, hy, wy, cy), lambda i: (i, 0, 0, 0)),
                pl.BlockSpec((9 * cin, cmid), lambda i: (0, 0)),
                pl.BlockSpec((1, cmid), lambda i: (0, 0)),
                pl.BlockSpec((1, cmid), lambda i: (0, 0)),
                pl.BlockSpec((9 * cmid, cout), lambda i: (0, 0)),
                pl.BlockSpec((1, cout), lambda i: (0, 0)),
                pl.BlockSpec((1, cout), lambda i: (0, 0)),
            ],
            out_specs=pl.BlockSpec((1, cout, hw), lambda i: (i, 0, 0)),
            scratch_shapes=[
                pltpu.VMEM((hy + 2, wy + 2, cin), jnp.bfloat16),
                pltpu.VMEM((hy + 2, wy + 2, cmid), jnp.bfloat16),
            ],
        ),
        compiler_params=pltpu.CompilerParams(
            dimension_semantics=("parallel",)),
        # TODO(synk): for production image sizes add an HW-row grid axis and an
        # explicit vmem_limit_bytes so whole-image blocks fit v7x's 64 MiB VMEM.
    )(xu, yh, w1f, s1, t1, w2f, s2, t2)

    # (N, Cout, HW) rows are already NCHW row-major -> reshape only, no transpose
    return out.reshape(n, cout, hy, wy)


# ----------------------------------------------------------------------------
# Parameter initialization (deterministic, synthetic; mirrors module shapes)
# ----------------------------------------------------------------------------
def _init_conv_bn(key, cin, cout):
    ks = jax.random.split(key, 6)
    w = jax.random.normal(ks[0], (3, 3, cin, cout), jnp.float32) * 0.15
    b = jax.random.normal(ks[1], (cout,), jnp.float32) * 0.1
    gamma = 1.0 + 0.1 * jax.random.normal(ks[2], (cout,), jnp.float32)
    beta = 0.1 * jax.random.normal(ks[3], (cout,), jnp.float32)
    r_mean = 0.1 * jax.random.normal(ks[4], (cout,), jnp.float32)
    r_var = 1.0 + 0.1 * jax.random.uniform(ks[5], (cout,), jnp.float32)
    # Fold eval-mode BatchNorm + conv bias into per-channel scale / shift.
    scale = gamma / jnp.sqrt(r_var + BN_EPS)
    shift = (b - r_mean) * scale + beta
    return {"w": w, "scale": scale, "shift": shift}


def init_upconv_params(key, in_feat, out_feat):
    k1, k2 = jax.random.split(key)
    return (_init_conv_bn(k1, in_feat, out_feat),
            _init_conv_bn(k2, out_feat, out_feat))


# ----------------------------------------------------------------------------
# Pure-JAX reference (same bf16 operand rounding as the kernel) for validation
# ----------------------------------------------------------------------------
def upconv_reference(x_nchw, y_nchw, params):
    conv1_p, conv2_p = params
    _, _, hx, wx = x_nchw.shape
    _, _, hy, wy = y_nchw.shape
    ah = _interp_matrix(hy, hx)
    aw = _interp_matrix(wy, wx)
    xu = jnp.einsum("ah,nchw->ncaw", ah, x_nchw)
    xu = jnp.einsum("bw,ncaw->ncab", aw, xu)
    xu = jnp.transpose(xu, (0, 2, 3, 1))
    yh = jnp.transpose(y_nchw, (0, 2, 3, 1))

    def rb(v):  # bf16 rounding of MXU operands / intermediates, like the kernel
        return v.astype(jnp.bfloat16).astype(jnp.float32)

    def conv_bn_relu(v, p):
        o = lax.conv_general_dilated(
            v, rb(p["w"]), window_strides=(1, 1), padding="SAME",
            dimension_numbers=("NHWC", "HWIO", "NHWC"))
        return jnp.maximum(o * p["scale"] + p["shift"], 0.0)

    h = jnp.concatenate([rb(xu), rb(yh)], axis=-1)
    h = rb(conv_bn_relu(h, conv1_p))
    h = conv_bn_relu(h, conv2_p)
    return jnp.transpose(h, (0, 3, 1, 2))


# ----------------------------------------------------------------------------
if __name__ == "__main__":
    # UpConv(in_feat=12, out_feat=8): x from the deeper level (8ch, 8x8) is
    # bilinearly upsampled to the skip connection y's size (4ch, 16x16),
    # concatenated along channels, then passed through DownConv.
    N = 2
    CX, HX, WX = 8, 8, 8
    CY, HY, WY = 4, 16, 16
    IN_FEAT, OUT_FEAT = CX + CY, 8

    key = jax.random.PRNGKey(0)
    kx, ky, kp = jax.random.split(key, 3)
    x = jax.random.normal(kx, (N, CX, HX, WX), jnp.float32)
    y = jax.random.normal(ky, (N, CY, HY, WY), jnp.float32)
    params = init_upconv_params(kp, IN_FEAT, OUT_FEAT)

    out = jax.jit(upconv_forward)(x, y, params)
    out = jax.block_until_ready(out)

    assert out.shape == (N, OUT_FEAT, HY, WY), out.shape
    assert bool(jnp.all(jnp.isfinite(out)))

    ref = upconv_reference(x, y, params)
    err = float(jnp.max(jnp.abs(out - ref)))
    assert err < 5e-2, f"max abs err vs reference: {err}"

    print("KERNEL_OK")
</pallas_src>

<mosaic_0001>
module attributes {stable_mosaic.version = 11 : i64} {
  func.func @_upconv_fused_kernel(%arg0: i32, %arg1: memref<1x16x16x8xbf16, #tpu.memory_space<vmem>>, %arg2: memref<1x16x16x4xbf16, #tpu.memory_space<vmem>>, %arg3: memref<108x8xbf16, #tpu.memory_space<vmem>>, %arg4: memref<1x8xf32, #tpu.memory_space<vmem>>, %arg5: memref<1x8xf32, #tpu.memory_space<vmem>>, %arg6: memref<72x8xbf16, #tpu.memory_space<vmem>>, %arg7: memref<1x8xf32, #tpu.memory_space<vmem>>, %arg8: memref<1x8xf32, #tpu.memory_space<vmem>>, %arg9: memref<1x8x256xf32, #tpu.memory_space<vmem>>, %arg10: memref<18x18x12xbf16, #tpu.memory_space<vmem>>, %arg11: memref<18x18x8xbf16, #tpu.memory_space<vmem>>) attributes {dimension_semantics = [#tpu.dimension_semantics<parallel>], iteration_bounds = array<i64: 2>, scalar_prefetch = 0 : i64, scratch_operands = 2 : i64, tpu.core_type = #tpu.core_type<tc>, window_params = [{transform_indices = @transform_0, window_bounds = array<i64: 1, 16, 16, 8>}, {transform_indices = @transform_1, window_bounds = array<i64: 1, 16, 16, 4>}, {pipeline_mode = #tpu.pipeline_mode<synchronous>, transform_indices = @transform_2, window_bounds = array<i64: 108, 8>}, {pipeline_mode = #tpu.pipeline_mode<synchronous>, transform_indices = @transform_3, window_bounds = array<i64: 1, 8>}, {pipeline_mode = #tpu.pipeline_mode<synchronous>, transform_indices = @transform_4, window_bounds = array<i64: 1, 8>}, {pipeline_mode = #tpu.pipeline_mode<synchronous>, transform_indices = @transform_5, window_bounds = array<i64: 72, 8>}, {pipeline_mode = #tpu.pipeline_mode<synchronous>, transform_indices = @transform_6, window_bounds = array<i64: 1, 8>}, {pipeline_mode = #tpu.pipeline_mode<synchronous>, transform_indices = @transform_7, window_bounds = array<i64: 1, 8>}, {transform_indices = @transform_8, window_bounds = array<i64: 1, 8, 256>}]} {
    %cst = arith.constant 0.000000e+00 : bf16
    %0 = vector.broadcast %cst : bf16 to vector<18x18x12xbf16>
    %c0 = arith.constant 0 : index
    %c0_0 = arith.constant 0 : index
    %c0_1 = arith.constant 0 : index
    %1 = vector.load %arg10[%c0, %c0_0, %c0_1] : memref<18x18x12xbf16, #tpu.memory_space<vmem>>, vector<18x18x12xbf16>
    tpu.vector_store %arg10[%c0, %c0_0, %c0_1], %0 {strides = array<i32>} : memref<18x18x12xbf16, #tpu.memory_space<vmem>>, vector<18x18x12xbf16>,
    %c0_2 = arith.constant 0 : index
    %c0_3 = arith.constant 0 : index
    %c0_4 = arith.constant 0 : index
    %c0_5 = arith.constant 0 : index
    %2 = vector.load %arg1[%c0_2, %c0_3, %c0_4, %c0_5] : memref<1x16x16x8xbf16, #tpu.memory_space<vmem>>, vector<1x16x16x8xbf16>
    %3 = vector.shape_cast %2 : vector<1x16x16x8xbf16> to vector<16x16x8xbf16>
    %c0_6 = arith.constant 0 : index
    %c0_7 = arith.constant 0 : index
    %c0_8 = arith.constant 0 : index
    %c0_9 = arith.constant 0 : index
    %4 = vector.load %arg2[%c0_6, %c0_7, %c0_8, %c0_9] : memref<1x16x16x4xbf16, #tpu.memory_space<vmem>>, vector<1x16x16x4xbf16>
    %5 = vector.shape_cast %4 : vector<1x16x16x4xbf16> to vector<16x16x4xbf16>
    %6 = tpu.concatenate %3, %5 in 2 : vector<16x16x8xbf16>, vector<16x16x4xbf16> -> vector<16x16x12xbf16>
    %c1 = arith.constant 1 : index
    %c1_10 = arith.constant 1 : index
    %c0_11 = arith.constant 0 : index
    %7 = vector.load %arg10[%c1, %c1_10, %c0_11] : memref<18x18x12xbf16, #tpu.memory_space<vmem>>, vector<16x16x12xbf16>
    tpu.vector_store %arg10[%c1, %c1_10, %c0_11], %6 {strides = array<i32>} : memref<18x18x12xbf16, #tpu.memory_space<vmem>>, vector<16x16x12xbf16>,
    %c0_12 = arith.constant 0 : index
    %c0_13 = arith.constant 0 : index
    %c0_14 = arith.constant 0 : index
    %8 = vector.load %arg10[%c0_12, %c0_13, %c0_14] : memref<18x18x12xbf16, #tpu.memory_space<vmem>>, vector<16x16x12xbf16>
    %c0_15 = arith.constant 0 : index
    %c1_16 = arith.constant 1 : index
    %c0_17 = arith.constant 0 : index
    %9 = vector.load %arg10[%c0_15, %c1_16, %c0_17] : memref<18x18x12xbf16, #tpu.memory_space<vmem>>, vector<16x16x12xbf16>
    %c0_18 = arith.constant 0 : index
    %c2 = arith.constant 2 : index
    %c0_19 = arith.constant 0 : index
    %10 = vector.load %arg10[%c0_18, %c2, %c0_19] : memref<18x18x12xbf16, #tpu.memory_space<vmem>>, vector<16x16x12xbf16>
    %c1_20 = arith.constant 1 : index
    %c0_21 = arith.constant 0 : index
    %c0_22 = arith.constant 0 : index
    %11 = vector.load %arg10[%c1_20, %c0_21, %c0_22] : memref<18x18x12xbf16, #tpu.memory_space<vmem>>, vector<16x16x12xbf16>
    %c1_23 = arith.constant 1 : index
    %c1_24 = arith.constant 1 : index
    %c0_25 = arith.constant 0 : index
    %12 = vector.load %arg10[%c1_23, %c1_24, %c0_25] : memref<18x18x12xbf16, #tpu.memory_space<vmem>>, vector<16x16x12xbf16>
    %c1_26 = arith.constant 1 : index
    %c2_27 = arith.constant 2 : index
    %c0_28 = arith.constant 0 : index
    %13 = vector.load %arg10[%c1_26, %c2_27, %c0_28] : memref<18x18x12xbf16, #tpu.memory_space<vmem>>, vector<16x16x12xbf16>
    %c2_29 = arith.constant 2 : index
    %c0_30 = arith.constant 0 : index
    %c0_31 = arith.constant 0 : index
    %14 = vector.load %arg10[%c2_29, %c0_30, %c0_31] : memref<18x18x12xbf16, #tpu.memory_space<vmem>>, vector<16x16x12xbf16>
    %c2_32 = arith.constant 2 : index
    %c1_33 = arith.constant 1 : index
    %c0_34 = arith.constant 0 : index
    %15 = vector.load %arg10[%c2_32, %c1_33, %c0_34] : memref<18x18x12xbf16, #tpu.memory_space<vmem>>, vector<16x16x12xbf16>
    %c2_35 = arith.constant 2 : index
    %c2_36 = arith.constant 2 : index
    %c0_37 = arith.constant 0 : index
    %16 = vector.load %arg10[%c2_35, %c2_36, %c0_37] : memref<18x18x12xbf16, #tpu.memory_space<vmem>>, vector<16x16x12xbf16>
    %17 = tpu.concatenate %8, %9, %10, %11, %12, %13, %14, %15, %16 in 2 : vector<16x16x12xbf16>, vector<16x16x12xbf16>, vector<16x16x12xbf16>, vector<16x16x12xbf16>, vector<16x16x12xbf16>, vector<16x16x12xbf16>, vector<16x16x12xbf16>, vector<16x16x12xbf16>, vector<16x16x12xbf16> -> vector<16x16x108xbf16>
    %18 = vector.shape_cast %17 : vector<16x16x108xbf16> to vector<256x108xbf16>
    %c0_38 = arith.constant 0 : index
    %c0_39 = arith.constant 0 : index
    %19 = vector.load %arg3[%c0_38, %c0_39] : memref<108x8xbf16, #tpu.memory_space<vmem>>, vector<108x8xbf16>
    %cst_40 = arith.constant dense<0.000000e+00> : vector<256x8xf32>
    %20 = tpu.matmul %18, %19, %cst_40 {dimension_numbers = #tpu.dot_dimension_numbers<[1], [0], [0], [1], [0, 0, 1, 1], [], []>} : vector<256x108xbf16>, vector<108x8xbf16>, vector<256x8xf32> -> vector<256x8xf32>
    %c0_41 = arith.constant 0 : index
    %c0_42 = arith.constant 0 : index
    %21 = vector.load %arg4[%c0_41, %c0_42] : memref<1x8xf32, #tpu.memory_space<vmem>>, vector<1x8xf32>
    %22 = vector.broadcast %21 : vector<1x8xf32> to vector<256x8xf32>
    %23 = arith.mulf %20, %22 : vector<256x8xf32>
    %c0_43 = arith.constant 0 : index
    %c0_44 = arith.constant 0 : index
    %24 = vector.load %arg5[%c0_43, %c0_44] : memref<1x8xf32, #tpu.memory_space<vmem>>, vector<1x8xf32>
    %25 = vector.broadcast %24 : vector<1x8xf32> to vector<256x8xf32>
    %26 = arith.addf %23, %25 : vector<256x8xf32>
    %cst_45 = arith.constant 0.000000e+00 : f32
    %27 = vector.broadcast %cst_45 : f32 to vector<256x8xf32>
    %28 = arith.maximumf %26, %27 : vector<256x8xf32>
    %cst_46 = arith.constant 0.000000e+00 : bf16
    %29 = vector.broadcast %cst_46 : bf16 to vector<18x18x8xbf16>
    %c0_47 = arith.constant 0 : index
    %c0_48 = arith.constant 0 : index
    %c0_49 = arith.constant 0 : index
    %30 = vector.load %arg11[%c0_47, %c0_48, %c0_49] : memref<18x18x8xbf16, #tpu.memory_space<vmem>>, vector<18x18x8xbf16>
    tpu.vector_store %arg11[%c0_47, %c0_48, %c0_49], %29 {strides = array<i32>} : memref<18x18x8xbf16, #tpu.memory_space<vmem>>, vector<18x18x8xbf16>,
    %31 = vector.shape_cast %28 : vector<256x8xf32> to vector<16x16x8xf32>
    %32 = arith.truncf %31 : vector<16x16x8xf32> to vector<16x16x8xbf16>
    %c1_50 = arith.constant 1 : index
    %c1_51 = arith.constant 1 : index
    %c0_52 = arith.constant 0 : index
    %33 = vector.load %arg11[%c1_50, %c1_51, %c0_52] : memref<18x18x8xbf16, #tpu.memory_space<vmem>>, vector<16x16x8xbf16>
    tpu.vector_store %arg11[%c1_50, %c1_51, %c0_52], %32 {strides = array<i32>} : memref<18x18x8xbf16, #tpu.memory_space<vmem>>, vector<16x16x8xbf16>,
    %c0_53 = arith.constant 0 : index
    %c0_54 = arith.constant 0 : index
    %c0_55 = arith.constant 0 : index
    %34 = vector.load %arg11[%c0_53, %c0_54, %c0_55] : memref<18x18x8xbf16, #tpu.memory_space<vmem>>, vector<16x16x8xbf16>
    %c0_56 = arith.constant 0 : index
    %c1_57 = arith.constant 1 : index
    %c0_58 = arith.constant 0 : index
    %35 = vector.load %arg11[%c0_56, %c1_57, %c0_58] : memref<18x18x8xbf16, #tpu.memory_space<vmem>>, vector<16x16x8xbf16>
    %c0_59 = arith.constant 0 : index
    %c2_60 = arith.constant 2 : index
    %c0_61 = arith.constant 0 : index
    %36 = vector.load %arg11[%c0_59, %c2_60, %c0_61] : memref<18x18x8xbf16, #tpu.memory_space<vmem>>, vector<16x16x8xbf16>
    %c1_62 = arith.constant 1 : index
    %c0_63 = arith.constant 0 : index
    %c0_64 = arith.constant 0 : index
    %37 = vector.load %arg11[%c1_62, %c0_63, %c0_64] : memref<18x18x8xbf16, #tpu.memory_space<vmem>>, vector<16x16x8xbf16>
    %c1_65 = arith.constant 1 : index
    %c1_66 = arith.constant 1 : index
    %c0_67 = arith.constant 0 : index
    %38 = vector.load %arg11[%c1_65, %c1_66, %c0_67] : memref<18x18x8xbf16, #tpu.memory_space<vmem>>, vector<16x16x8xbf16>
    %c1_68 = arith.constant 1 : index
    %c2_69 = arith.constant 2 : index
    %c0_70 = arith.constant 0 : index
    %39 = vector.load %arg11[%c1_68, %c2_69, %c0_70] : memref<18x18x8xbf16, #tpu.memory_space<vmem>>, vector<16x16x8xbf16>
    %c2_71 = arith.constant 2 : index
    %c0_72 = arith.constant 0 : index
    %c0_73 = arith.constant 0 : index
    %40 = vector.load %arg11[%c2_71, %c0_72, %c0_73] : memref<18x18x8xbf16, #tpu.memory_space<vmem>>, vector<16x16x8xbf16>
    %c2_74 = arith.constant 2 : index
    %c1_75 = arith.constant 1 : index
    %c0_76 = arith.constant 0 : index
    %41 = vector.load %arg11[%c2_74, %c1_75, %c0_76] : memref<18x18x8xbf16, #tpu.memory_space<vmem>>, vector<16x16x8xbf16>
    %c2_77 = arith.constant 2 : index
    %c2_78 = arith.constant 2 : index
    %c0_79 = arith.constant 0 : index
    %42 = vector.load %arg11[%c2_77, %c2_78, %c0_79] : memref<18x18x8xbf16, #tpu.memory_space<vmem>>, vector<16x16x8xbf16>
    %43 = tpu.concatenate %34, %35, %36, %37, %38, %39, %40, %41, %42 in 2 : vector<16x16x8xbf16>, vector<16x16x8xbf16>, vector<16x16x8xbf16>, vector<16x16x8xbf16>, vector<16x16x8xbf16>, vector<16x16x8xbf16>, vector<16x16x8xbf16>, vector<16x16x8xbf16>, vector<16x16x8xbf16> -> vector<16x16x72xbf16>
    %44 = vector.shape_cast %43 : vector<16x16x72xbf16> to vector<256x72xbf16>
    %c0_80 = arith.constant 0 : index
    %c0_81 = arith.constant 0 : index
    %45 = vector.load %arg6[%c0_80, %c0_81] : memref<72x8xbf16, #tpu.memory_space<vmem>>, vector<72x8xbf16>
    %cst_82 = arith.constant dense<0.000000e+00> : vector<256x8xf32>
    %46 = tpu.matmul %44, %45, %cst_82 {dimension_numbers = #tpu.dot_dimension_numbers<[1], [0], [0], [1], [0, 0, 1, 1], [], []>} : vector<256x72xbf16>, vector<72x8xbf16>, vector<256x8xf32> -> vector<256x8xf32>
    %c0_83 = arith.constant 0 : index
    %c0_84 = arith.constant 0 : index
    %47 = vector.load %arg7[%c0_83, %c0_84] : memref<1x8xf32, #tpu.memory_space<vmem>>, vector<1x8xf32>
    %48 = vector.broadcast %47 : vector<1x8xf32> to vector<256x8xf32>
    %49 = arith.mulf %46, %48 : vector<256x8xf32>
    %c0_85 = arith.constant 0 : index
    %c0_86 = arith.constant 0 : index
    %50 = vector.load %arg8[%c0_85, %c0_86] : memref<1x8xf32, #tpu.memory_space<vmem>>, vector<1x8xf32>
    %51 = vector.broadcast %50 : vector<1x8xf32> to vector<256x8xf32>
    %52 = arith.addf %49, %51 : vector<256x8xf32>
    %cst_87 = arith.constant 0.000000e+00 : f32
    %53 = vector.broadcast %cst_87 : f32 to vector<256x8xf32>
    %54 = arith.maximumf %52, %53 : vector<256x8xf32>
    %55 = tpu.transpose %54, [1, 0] : vector<256x8xf32> -> vector<8x256xf32>
    %c0_88 = arith.constant 0 : index
    %c0_89 = arith.constant 0 : index
    %c0_90 = arith.constant 0 : index
    %56 = vector.load %arg9[%c0_88, %c0_89, %c0_90] : memref<1x8x256xf32, #tpu.memory_space<vmem>>, vector<1x8x256xf32>
    %57 = vector.shape_cast %56 : vector<1x8x256xf32> to vector<8x256xf32>
    %58 = vector.shape_cast %55 : vector<8x256xf32> to vector<1x8x256xf32>
    tpu.vector_store %arg9[%c0_88, %c0_89, %c0_90], %58 {strides = array<i32>} : memref<1x8x256xf32, #tpu.memory_space<vmem>>, vector<1x8x256xf32>,
    return
  }
  func.func @transform_0(%arg0: i32) -> (i32, i32, i32, i32) {
    %c0_i32 = arith.constant 0 : i32
    %c0_i32_0 = arith.constant 0 : i32
    %c0_i32_1 = arith.constant 0 : i32
    %c0_i32_2 = arith.constant 0 : i32
    return %arg0, %c0_i32, %c0_i32_0, %c0_i32_1 : i32, i32, i32, i32
  }
  func.func @transform_1(%arg0: i32) -> (i32, i32, i32, i32) {
    %c0_i32 = arith.constant 0 : i32
    %c0_i32_0 = arith.constant 0 : i32
    %c0_i32_1 = arith.constant 0 : i32
    %c0_i32_2 = arith.constant 0 : i32
    return %arg0, %c0_i32, %c0_i32_0, %c0_i32_1 : i32, i32, i32, i32
  }
  func.func @transform_2(%arg0: i32) -> (i32, i32) {
    %c0_i32 = arith.constant 0 : i32
    %c0_i32_0 = arith.constant 0 : i32
    %c0_i32_1 = arith.constant 0 : i32
    return %c0_i32, %c0_i32_0 : i32, i32
  }
  func.func @transform_3(%arg0: i32) -> (i32, i32) {
    %c0_i32 = arith.constant 0 : i32
    %c0_i32_0 = arith.constant 0 : i32
    %c0_i32_1 = arith.constant 0 : i32
    return %c0_i32, %c0_i32_0 : i32, i32
  }
  func.func @transform_4(%arg0: i32) -> (i32, i32) {
    %c0_i32 = arith.constant 0 : i32
    %c0_i32_0 = arith.constant 0 : i32
    %c0_i32_1 = arith.constant 0 : i32
    return %c0_i32, %c0_i32_0 : i32, i32
  }
  func.func @transform_5(%arg0: i32) -> (i32, i32) {
    %c0_i32 = arith.constant 0 : i32
    %c0_i32_0 = arith.constant 0 : i32
    %c0_i32_1 = arith.constant 0 : i32
    return %c0_i32, %c0_i32_0 : i32, i32
  }
  func.func @transform_6(%arg0: i32) -> (i32, i32) {
    %c0_i32 = arith.constant 0 : i32
    %c0_i32_0 = arith.constant 0 : i32
    %c0_i32_1 = arith.constant 0 : i32
    return %c0_i32, %c0_i32_0 : i32, i32
  }
  func.func @transform_7(%arg0: i32) -> (i32, i32) {
    %c0_i32 = arith.constant 0 : i32
    %c0_i32_0 = arith.constant 0 : i32
    %c0_i32_1 = arith.constant 0 : i32
    return %c0_i32, %c0_i32_0 : i32, i32
  }
  func.func @transform_8(%arg0: i32) -> (i32, i32, i32) {
    %c0_i32 = arith.constant 0 : i32
    %c0_i32_0 = arith.constant 0 : i32
    %c0_i32_1 = arith.constant 0 : i32
    return %arg0, %c0_i32, %c0_i32_0 : i32, i32, i32
  }
}

</mosaic_0001>

<bundles_post_ra>
// kernel: upconv_forward.1
= control target key start
LH: loop header
LB: loop body
LE: loop exit
PB: predicated region body
PF: predicated region fallthrough
CT: control target
= control target key end

     0   :  { %s7589_s27 = smov 0   ;;  %s10514_s0 = inlined_call_operand.vmem [shape: bf16[2,16,16,8], index: 0, kind: input, shape index: {}]   ;;  %s10515_s1 = inlined_call_operand.vmem [shape: bf16[2,16,16,4], index: 1, kind: input, shape index: {}]   ;;  %s10516_s2 = inlined_call_operand.vmem [shape: bf16[108,8], index: 2, kind: input, shape index: {}]   ;;  %s10517_s3 = inlined_call_operand.vmem [shape: f32[1,8], index: 3, kind: input, shape index: {}]   ;;  %s10518_s4 = inlined_call_operand.vmem [shape: f32[1,8], index: 4, kind: input, shape index: {}]   ;;  %s10519_s5 = inlined_call_operand.vmem [shape: bf16[72,8], index: 5, kind: input, shape index: {}]   ;;  %s10520_s6 = inlined_call_operand.vmem [shape: f32[1,8], index: 6, kind: input, shape index: {}]   ;;  %s10521_s7 = inlined_call_operand.vmem [shape: f32[1,8], index: 7, kind: input, shape index: {}]   ;;  %s10522_s8 = inlined_call_operand.vmem [shape: f32[2,8,256], index: 8, kind: output, shape index: {}]  }
   0x1 LB: > { %s6558_s28 = sadd.s32 4294967295, %s7527_s27   ;;  %p6562_p0 = scmp.ge.s32.totalorder %s7527_s27, 1  ;;  %s7527_s27 = sphi %s7589_s27, %s18_s27  }
   0x2   : > { %p272_p1 = scmp.lt.s32.totalorder %s7527_s27, 3 }
   0x4   : > { %p273_p2 = pnand %p6562_p0, %p272_p1 }
   0x6   : > { %276 = sbr.rel (%p273_p2) target bundleno = 1300 (0x514), region = 52 }
   0xd   : > { %p7599_p3 = scmp.lt.s32.totalorder %s6558_s28, 1  ;;  %vm327_vm0 = vcmask 93184   ;;  %vm330_vm1 = vcmask 90112   ;;  %v10523_v0 = vmov 0   ;;  %s7530_s12 = smov 8   ;;  %vm1803_vm3 = vcmask 1046528  }
   0xe   : > { %332 = vst.msk [vmem:[#allocation2 + $0xc] sm:$0xf] %vm327_vm0, %v10523_v0  ;;  %333 = vst.msk [vmem:[#allocation2 + $0x10] sm:$0xf] %vm327_vm0, %v10523_v0  ;;  %vm1530_vm2 = vsmask.f32 7424 }
   0xf   : > { %334 = vst.msk [vmem:[#allocation2 + $0x14] sm:$0x1] %vm330_vm1, %v10523_v0  ;;  %331 = vst.msk [vmem:[#allocation2 + $0x8] sm:$0x1] %vm330_vm1, %v10523_v0  ;;  %s10715_s28 = smov (!%p7599_p3, %s6558_s28), 1  ;;  %s7531_s16 = smov 12  }
  0x10   : > { %328 = vst.msk [vmem:[#allocation2] sm:$0xf] %vm327_vm0, %v10523_v0  ;;  %329 = vst.msk [vmem:[#allocation2 + $0x4] sm:$0xf] %vm327_vm0, %v10523_v0  ;;  %s7003_s30 = sshll.u32 %s10715_s28, 7  ;;  %s7532_s17 = smov 24  }
  0x11   : > { %335 = vst.msk [vmem:[#allocation2 + $0x18] sm:$0xf] %vm327_vm0, %v10523_v0  ;;  %336 = vst.msk [vmem:[#allocation2 + $0x1c] sm:$0xf] %vm327_vm0, %v10523_v0  ;;  %s7721_s11 = scalar_lea.vmem %s10515_s1, %s7003_s30  ;;  %s7736_s15 = scalar_lea.vmem %s10514_s0, %s7003_s30  ;;  %vm10575_vm4 = vcmask 64512   ;;  %v10580_v50 = vmov 0 }
  0x12   : > { %337 = vst.msk [vmem:[#allocation2 + $0x20] sm:$0x1] %vm330_vm1, %v10523_v0  ;;  %340 = vst.msk [vmem:[#allocation2 + $0x2c] sm:$0x1] %vm330_vm1, %v10523_v0  ;;  %v7195_v1 = vld [vmem:[%s7721_s11] sm:$0xff]   ;;  %v7196_v2 = vld [vmem:[%s7721_s11 + $0x10] sm:$0xff]  }
  0x13   : > { %338 = vst.msk [vmem:[#allocation2 + $0x24] sm:$0xf] %vm327_vm0, %v10523_v0  ;;  %339 = vst.msk [vmem:[#allocation2 + $0x28] sm:$0xf] %vm327_vm0, %v10523_v0  ;;  %607 = vrot.lane.b32.xlu0 %v7195_v1, %s7530_s12  ;;  %v7197_v3 = vld [vmem:[%s7721_s11 + $0x8] sm:$0xff]   ;;  %611 = vrot.lane.b32.xlu1 %v7196_v2, %s7530_s12  ;;  %v7198_v4 = vld [vmem:[%s7721_s11 + $0x18] sm:$0xff]  }
  0x14   : > { %341 = vst.msk [vmem:[#allocation2 + $0x30] sm:$0xf] %vm327_vm0, %v10523_v0  ;;  %342 = vst.msk [vmem:[#allocation2 + $0x34] sm:$0xf] %vm327_vm0, %v10523_v0  ;;  %v7199_v5 = vld [vmem:[%s7721_s11 + $0x20] sm:$0xff]   ;;  %v7200_v6 = vld [vmem:[%s7721_s11 + $0x28] sm:$0xff]  }
  0x15   : > { %343 = vst.msk [vmem:[#allocation2 + $0x38] sm:$0x1] %vm330_vm1, %v10523_v0  ;;  %346 = vst.msk [vmem:[#allocation2 + $0x44] sm:$0x1] %vm330_vm1, %v10523_v0  ;;  %v7201_v7 = vld [vmem:[%s7721_s11 + $0x30] sm:$0xff]   ;;  %v7202_v8 = vld [vmem:[%s7721_s11 + $0x38] sm:$0xff]  }
  0x16   : > { %344 = vst.msk [vmem:[#allocation2 + $0x3c] sm:$0xf] %vm327_vm0, %v10523_v0  ;;  %345 = vst.msk [vmem:[#allocation2 + $0x40] sm:$0xf] %vm327_vm0, %v10523_v0  ;;  %v7203_v9 = vld [vmem:[%s7721_s11 + $0x40] sm:$0xff]   ;;  %v7204_v10 = vld [vmem:[%s7721_s11 + $0x50] sm:$0xff]  }
  0x17   : > { %347 = vst.msk [vmem:[#allocation2 + $0x48] sm:$0xf] %vm327_vm0, %v10523_v0  ;;  %348 = vst.msk [vmem:[#allocation2 + $0x4c] sm:$0xf] %vm327_vm0, %v10523_v0  ;;  %609 = vrot.lane.b32.xlu0 %v7197_v3, %s7530_s12  ;;  %613 = vrot.lane.b32.xlu1 %v7198_v4, %s7530_s12  ;;  %v7211_v11 = vld [vmem:[%s7721_s11 + $0x48] sm:$0xff]   ;;  %v7206_v16 = vld [vmem:[%s7721_s11 + $0x60] sm:$0xff]  }
  0x18   : > { %349 = vst.msk [vmem:[#allocation2 + $0x50] sm:$0x1] %vm330_vm1, %v10523_v0  ;;  %352 = vst.msk [vmem:[#allocation2 + $0x5c] sm:$0x1] %vm330_vm1, %v10523_v0  ;;  %v1209_v12 = vld [vmem:[#allocation2] sm:$0xf] }
  0x19   : > { %350 = vst.msk [vmem:[#allocation2 + $0x54] sm:$0xf] %vm327_vm0, %v10523_v0  ;;  %351 = vst.msk [vmem:[#allocation2 + $0x58] sm:$0xf] %vm327_vm0, %v10523_v0  ;;  %v1210_v13 = vld [vmem:[#allocation2 + $0x4] sm:$0xf] }
  0x1a   : > { %353 = vst.msk [vmem:[#allocation2 + $0x60] sm:$0xf] %vm327_vm0, %v10523_v0  ;;  %354 = vst.msk [vmem:[#allocation2 + $0x64] sm:$0xf] %vm327_vm0, %v10523_v0  ;;  %v7749_v14 = vcombine.low %v1209_v12, %v1210_v13  ;;  %v7215_v20 = vld [vmem:[%s7721_s11 + $0x58] sm:$0xff]   ;;  %v7209_v22 = vld [vmem:[%s7721_s11 + $0x70] sm:$0xff]  }
  0x1b   : > { %355 = vst.msk [vmem:[#allocation2 + $0x68] sm:$0x1] %vm330_vm1, %v10523_v0  ;;  %358 = vst.msk [vmem:[#allocation2 + $0x74] sm:$0x1] %vm330_vm1, %v10523_v0  ;;  %615 = vrot.lane.b32.xlu0 %v7199_v5, %s7530_s12  ;;  %617 = vrot.lane.b32.xlu1 %v7200_v6, %s7530_s12  ;;  %v1257_v21 = vld [vmem:[#allocation2] sm:$0xe] }
  0x1c   : > { %356 = vst.msk [vmem:[#allocation2 + $0x6c] sm:$0xf] %vm327_vm0, %v10523_v0  ;;  %357 = vst.msk [vmem:[#allocation2 + $0x70] sm:$0xf] %vm327_vm0, %v10523_v0  ;;  %v1532_v17 = vshrl.u32 %v7749_v14, 16  ;;  %v1534_v18 = vshll.u32 %v7749_v14, 16  ;;  %v6665_v26 = vcombine.low %v1257_v21, %v1210_v13 }
  0x1d   : > { %359 = vst.msk [vmem:[#allocation2 + $0x78] sm:$0xf] %vm327_vm0, %v10523_v0  ;;  %360 = vst.msk [vmem:[#allocation2 + $0x7c] sm:$0xf] %vm327_vm0, %v10523_v0  ;;  %v7217_v27 = vld [vmem:[%s7721_s11 + $0x68] sm:$0xff]   ;;  %v7219_v28 = vld [vmem:[%s7721_s11 + $0x78] sm:$0xff]  }
  0x1e   : > { %361 = vst.msk [vmem:[#allocation2 + $0x80] sm:$0x1] %vm330_vm1, %v10523_v0  ;;  %364 = vst.msk [vmem:[#allocation2 + $0x8c] sm:$0x1] %vm330_vm1, %v10523_v0  ;;  %v1536_v23 = vrot.slane %v1534_v18, 1  ;;  %v1804_v30 = vrot.slane %v6665_v26, 1 }
  0x1f   : > { %362 = vst.msk [vmem:[#allocation2 + $0x84] sm:$0xf] %vm327_vm0, %v10523_v0  ;;  %363 = vst.msk [vmem:[#allocation2 + $0x88] sm:$0xf] %vm327_vm0, %v10523_v0  ;;  %619 = vrot.lane.b32.xlu0 %v7201_v7, %s7530_s12  ;;  %621 = vrot.lane.b32.xlu1 %v7202_v8, %s7530_s12  ;;  %v7205_v33 = vld [vmem:[%s7736_s15] sm:$0xff]   ;;  %v7207_v34 = vld [vmem:[%s7736_s15 + $0x10] sm:$0xff]  }
  0x20   : > { %365 = vst.msk [vmem:[#allocation2 + $0x90] sm:$0xf] %vm327_vm0, %v10523_v0  ;;  %366 = vst.msk [vmem:[#allocation2 + $0x94] sm:$0xf] %vm327_vm0, %v10523_v0  ;;  %v1537_v24 = vor.u32 %v1536_v23, %v1532_v17  ;;  %vm768_vm5 = vsmask.f32 256 }
  0x21   : > { %367 = vst.msk [vmem:[#allocation2 + $0x98] sm:$0x1] %vm330_vm1, %v10523_v0  ;;  %370 = vst.msk [vmem:[#allocation2 + $0xa4] sm:$0x1] %vm330_vm1, %v10523_v0  ;;  %vm769_vm6 = vsmask.f32 4368 }
  0x22   : > { %368 = vst.msk [vmem:[#allocation2 + $0x9c] sm:$0xf] %vm327_vm0, %v10523_v0  ;;  %369 = vst.msk [vmem:[#allocation2 + $0xa0] sm:$0xf] %vm327_vm0, %v10523_v0  ;;  %v7208_v41 = vld [vmem:[%s7736_s15 + $0x8] sm:$0xff]   ;;  %v7210_v42 = vld [vmem:[%s7736_s15 + $0x18] sm:$0xff]  }
  0x23   : > { %371 = vst.msk [vmem:[#allocation2 + $0xa8] sm:$0xf] %vm327_vm0, %v10523_v0  ;;  %372 = vst.msk [vmem:[#allocation2 + $0xac] sm:$0xf] %vm327_vm0, %v10523_v0  ;;  %623 = vrot.lane.b32.xlu0 %v7203_v9, %s7530_s12  ;;  %625 = vrot.lane.b32.xlu1 %v7211_v11, %s7530_s12  ;;  %vm1093_vm7 = vsmask.f32 7938 }
  0x24   : > { %373 = vst.msk [vmem:[#allocation2 + $0xb0] sm:$0x1] %vm330_vm1, %v10523_v0  ;;  %376 = vst.msk [vmem:[#allocation2 + $0xbc] sm:$0x1] %vm330_vm1, %v10523_v0  ;;  %v1095_v61 = vld [vmem:[#allocation2 + $0xc] sm:$0xf] }
  0x25   : > { %374 = vst.msk [vmem:[#allocation2 + $0xb4] sm:$0xf] %vm327_vm0, %v10523_v0  ;;  %375 = vst.msk [vmem:[#allocation2 + $0xb8] sm:$0xf] %vm327_vm0, %v10523_v0  ;;  %v10585_v62 = vmov 0  ;;  %v7214_v17 = vld [vmem:[%s7736_s15 + $0x20] sm:$0xff]  }
  0x26   : > { %377 = vst.msk [vmem:[#allocation2 + $0xc0] sm:$0xf] %vm327_vm0, %v10523_v0  ;;  %378 = vst.msk [vmem:[#allocation2 + $0xc4] sm:$0xf] %vm327_vm0, %v10523_v0  ;;  %v1101_v63 = vld [vmem:[#allocation2 + $0x14] sm:$0x1] }
  0x27   : > { %379 = vst.msk [vmem:[#allocation2 + $0xc8] sm:$0x1] %vm330_vm1, %v10523_v0  ;;  %382 = vst.msk [vmem:[#allocation2 + $0xd4] sm:$0x1] %vm330_vm1, %v10523_v0  ;;  %627 = vrot.lane.b32.xlu0 %v7204_v10, %s7530_s12  ;;  %629 = vrot.lane.b32.xlu1 %v7215_v20, %s7530_s12  ;;  %v1111_v9 = vld [vmem:[#allocation2 + $0x24] sm:$0xf] }
  0x28   : > { %380 = vst.msk [vmem:[#allocation2 + $0xcc] sm:$0xf] %vm327_vm0, %v10523_v0  ;;  %381 = vst.msk [vmem:[#allocation2 + $0xd0] sm:$0xf] %vm327_vm0, %v10523_v0  ;;  %v1115_v10 = vld [vmem:[#allocation2 + $0x2c] sm:$0x1] }
  0x29   : > { %10579 = vst [vmem:[#allocation4_spill] sm:$0xff] %v7749_v14  ;;  %v7213_v15 = vld [vmem:[#allocation2 + $0x8] ss:$0 sps:$4 sm:$0x11]   ;;  %vm7775_vm8 = vmor %vm768_vm5, %vm769_vm6  ;;  %s7533_s18 = smov 36   ;;  %s7534_s19 = smov 72  }
  0x2a   : > { %v1539_v19 = vshll.u32 %v7213_v15, 16  ;;  %v1805_v31 = vrot.slane %v7213_v15, 1  ;;  %v10581_v50 = vsel %vm7775_vm8, 4294967295, %v10580_v50  ;;  %vm7781_vm9 = vmand %vm327_vm0, %vm1093_vm7  ;;  %v7216_v18 = vld [vmem:[%s7736_s15 + $0x28] sm:$0xff]   ;;  %s7535_s20 = smov 60   ;;  %s7536_s21 = smov 96  }
  0x2b   : > { %631 = vrot.lane.b32.xlu0 %v7206_v16, %s7530_s12  ;;  %633 = vrot.lane.b32.xlu1 %v7217_v27, %s7530_s12  ;;  %10582 = vst [vmem:[#allocation5_spill] sm:$0xff] %v10581_v50  ;;  %vm7789_vm10 = vmand %vm330_vm1, %vm768_vm5  ;;  %s7538_s22 = smov 84   ;;  %vm3260_vm11 = vcmask 1045504   ;;  %vm2908_vm12 = vcmask 97280   ;;  %vm2941_vm13 = vcmask 195584   ;;  %vm2974_vm14 = vcmask 293888  }
  0x2c   : > { %v1541_v25 = vrot.slane %v1539_v19, 1  ;;  %v1806_v32 = vsel %vm1803_vm3, %v1804_v30, %v1805_v31  ;;  %v10586_v62 = vsel %vm7789_vm10, 4294967295, %v10585_v62  ;;  %v7218_v19 = vld [vmem:[%s7736_s15 + $0x30] sm:$0xff]   ;;  %vm3007_vm15 = vcmask 392192   ;;  %s7540_s25 = smov 40   ;;  %s7541_s26 = smov 64  }
  0x2d   : > { %10587 = vst [vmem:[#allocation6_spill] sm:$0xff] %v10586_v62  ;;  %vm3073_vm1 = vcmask 588800   ;;  %vm3106_vm6 = vcmask 687104   ;;  %s7542_s29 = smov 32   ;;  %s7543_s10 = smov 56  }
  0x2e   : > { %v1542_v29 = vsel %vm1530_vm2, %v1537_v24, %v1541_v25 }
  0x2f   : > { %635 = vrot.lane.b32.xlu0 %v7209_v22, %s7530_s12  ;;  %637 = vrot.lane.b32.xlu1 %v7219_v28, %s7530_s12 }
  0x33   : > { %1723 = vrot.lane.b32.xlu0 %v1542_v29, %s7531_s16 }
  0x37   : > { %1852 = vrot.lane.b32.xlu0 %v1806_v32, %s7532_s17 }
  0x85   : > { %v608_v35 = vpop.permute.xlu0 %607  ;;  %v612_v37 = vpop.permute.xlu1 %611 }
  0x86   : > { %v642_v36 = vsel %vm10575_vm4, %v7205_v33, %v608_v35  ;;  %v648_v40 = vsel %vm10575_vm4, %v7207_v34, %v612_v37  ;;  %v1104_v34 = vld [vmem:[#allocation2 + $0x18] sm:$0xf] }
  0x87   : > { %v6601_v38 = vcombine.low %v642_v36, %v642_v36  ;;  %v6602_v39 = vcombine.high %v642_v36, %v642_v36  ;;  %v6605_v43 = vcombine.low %v648_v40, %v648_v40  ;;  %v6606_v44 = vcombine.high %v648_v40, %v648_v40 }
  0x89   : > { %v772_v45 = vshrl.u32 %v6601_v38, 16  ;;  %v775_v46 = vshll.u32 %v6601_v38, 16  ;;  %v780_v47 = vshrl.u32 %v6602_v39, 16  ;;  %v783_v48 = vshll.u32 %v6602_v39, 16  ;;  %v610_v49 = vpop.permute.xlu0 %609  ;;  %v614_v55 = vpop.permute.xlu1 %613 }
  0x8a   : > { %v806_v51 = vshrl.u32 %v6605_v43, 16  ;;  %v809_v52 = vshll.u32 %v6605_v43, 16  ;;  %v814_v53 = vshrl.u32 %v6606_v44, 16  ;;  %v817_v54 = vshll.u32 %v6606_v44, 16  ;;  %v1108_v43 = vld [vmem:[#allocation2 + $0x20] sm:$0x1] }
  0x8b   : > { %v774_v57 = vrot.slane %v772_v45, 7  ;;  %v782_v58 = vrot.slane %v780_v47, 7  ;;  %v645_v59 = vsel %vm10575_vm4, %v7208_v41, %v610_v49  ;;  %v651_v60 = vsel %vm10575_vm4, %v7210_v42, %v614_v55 }
  0x8c   : > { %v808_v1 = vrot.slane %v806_v51, 7  ;;  %v816_v2 = vrot.slane %v814_v53, 7  ;;  %v6603_v3 = vcombine.low %v645_v59, %v645_v59  ;;  %v6604_v4 = vcombine.high %v645_v59, %v645_v59  ;;  %v1118_v53 = vld [vmem:[#allocation2 + $0x30] sm:$0xf] }
  0x8d   : > { %v777_v5 = vor.u32 %v775_v46, %v774_v57  ;;  %v778_v6 = vrot.slane %v774_v57, 4  ;;  %v785_v7 = vor.u32 %v783_v48, %v782_v58  ;;  %v787_v8 = vrot.slane %v782_v58, 4  ;;  %v616_v11 = vpop.permute.xlu0 %615  ;;  %v618_v24 = vpop.permute.xlu1 %617 }
  0x8e   : > { %v811_v12 = vor.u32 %v809_v52, %v808_v1  ;;  %v812_v13 = vrot.slane %v808_v1, 4  ;;  %v819_v15 = vor.u32 %v817_v54, %v816_v2  ;;  %v821_v16 = vrot.slane %v816_v2, 4 }
  0x8f   : > { %v786_v20 = vsel %vm7775_vm8, %v778_v6, %v785_v7  ;;  %v1096_v21 = vsel %vm7781_vm9, %v777_v5, %v1095_v61  ;;  %v1102_v22 = vsel %vm7789_vm10, %v787_v8, %v1101_v63  ;;  %v789_v23 = vshrl.u32 %v6603_v3, 16  ;;  %v1122_v61 = vld [vmem:[#allocation2 + $0x38] sm:$0x1]  ;;  %v1125_v7 = vld [vmem:[#allocation2 + $0x3c] sm:$0xf] }
  0x90   : > { %1097 = vst [vmem:[#allocation2 + $0xc] sm:$0xf] %v1096_v21  ;;  %1098 = vst.msk [vmem:[#allocation2 + $0x10] sm:$0xf] %vm327_vm0, %v786_v20  ;;  %v820_v25 = vsel %vm7775_vm8, %v812_v13, %v819_v15  ;;  %v1112_v26 = vsel %vm7781_vm9, %v811_v12, %v1111_v9  ;;  %v1116_v27 = vsel %vm7789_vm10, %v821_v16, %v1115_v10  ;;  %v792_v28 = vshll.u32 %v6603_v3, 16 }
  0x91   : > { %1103 = vst [vmem:[#allocation2 + $0x14] sm:$0x1] %v1102_v22  ;;  %1113 = vst [vmem:[#allocation2 + $0x24] sm:$0xf] %v1112_v26  ;;  %v791_v29 = vrot.slane %v789_v23, 7  ;;  %v797_v30 = vshrl.u32 %v6604_v4, 16  ;;  %v6607_v32 = vcombine.low %v651_v60, %v651_v60  ;;  %v620_v33 = vpop.permute.xlu0 %619  ;;  %v6608_v35 = vcombine.high %v651_v60, %v651_v60 }
  0x92   : > { %1114 = vst.msk [vmem:[#allocation2 + $0x28] sm:$0xf] %vm327_vm0, %v820_v25  ;;  %1117 = vst [vmem:[#allocation2 + $0x2c] sm:$0x1] %v1116_v27  ;;  %v800_v31 = vshll.u32 %v6604_v4, 16  ;;  %v654_v36 = vsel %vm10575_vm4, %v7214_v17, %v616_v11  ;;  %v657_v37 = vsel %vm10575_vm4, %v7216_v18, %v618_v24  ;;  %v660_v38 = vsel %vm10575_vm4, %v7218_v19, %v620_v33 }
  0x93   : > { %v794_v39 = vor.u32 %v792_v28, %v791_v29  ;;  %v795_v40 = vrot.slane %v791_v29, 4  ;;  %v799_v41 = vrot.slane %v797_v30, 7  ;;  %v823_v42 = vshrl.u32 %v6607_v32, 16  ;;  %v1129_v16 = vld [vmem:[#allocation2 + $0x44] sm:$0x1] }
  0x94   : > { %v826_v44 = vshll.u32 %v6607_v32, 16  ;;  %v831_v45 = vshrl.u32 %v6608_v35, 16  ;;  %v834_v46 = vshll.u32 %v6608_v35, 16  ;;  %v6609_v47 = vcombine.low %v654_v36, %v654_v36  ;;  %v1132_v22 = vld [vmem:[#allocation2 + $0x48] sm:$0xf] }
  0x95   : > { %v802_v48 = vor.u32 %v800_v31, %v799_v41  ;;  %v804_v49 = vrot.slane %v799_v41, 4  ;;  %v1105_v51 = vsel %vm7781_vm9, %v794_v39, %v1104_v34  ;;  %v825_v52 = vrot.slane %v823_v42, 7  ;;  %v7222_v31 = vld [vmem:[%s7736_s15 + $0x38] sm:$0xff]  }
  0x96   : > { %1106 = vst [vmem:[#allocation2 + $0x18] sm:$0xf] %v1105_v51  ;;  %v833_v54 = vrot.slane %v831_v45, 7  ;;  %v6610_v55 = vcombine.high %v654_v36, %v654_v36  ;;  %v840_v57 = vshrl.u32 %v6609_v47, 16  ;;  %v843_v58 = vshll.u32 %v6609_v47, 16 }
  0x97   : > { %v803_v59 = vsel %vm7775_vm8, %v795_v40, %v802_v48  ;;  %v1109_v60 = vsel %vm7789_vm10, %v804_v49, %v1108_v43  ;;  %v828_v63 = vor.u32 %v826_v44, %v825_v52  ;;  %v829_v1 = vrot.slane %v825_v52, 4  ;;  %v1273_v30 = vld [vmem:[#allocation2 + $0xc] sm:$0xf]  ;;  %v7830_v36 = vld [vmem:[#allocation2 + $0x10] sm:$0xf] }
  0x98   : > { %1107 = vst.msk [vmem:[#allocation2 + $0x1c] sm:$0xf] %vm327_vm0, %v803_v59  ;;  %1110 = vst [vmem:[#allocation2 + $0x20] sm:$0x1] %v1109_v60  ;;  %v836_v2 = vor.u32 %v834_v46, %v833_v54  ;;  %v838_v3 = vrot.slane %v833_v54, 4  ;;  %v842_v4 = vrot.slane %v840_v57, 7  ;;  %v6611_v9 = vcombine.low %v657_v37, %v657_v37 }
  0x99   : > { %v848_v5 = vshrl.u32 %v6610_v55, 16  ;;  %v1119_v6 = vsel %vm7781_vm9, %v828_v63, %v1118_v53  ;;  %v851_v8 = vshll.u32 %v6610_v55, 16  ;;  %v6612_v10 = vcombine.high %v657_v37, %v657_v37  ;;  %v622_v37 = vpop.permute.xlu1 %621  ;;  %v1136_v40 = vld [vmem:[#allocation2 + $0x50] sm:$0x1]  ;;  %v1139_v48 = vld [vmem:[#allocation2 + $0x54] sm:$0xf] }
  0x9a   : > { %v837_v11 = vsel %vm7775_vm8, %v829_v1, %v836_v2  ;;  %1120 = vst [vmem:[#allocation2 + $0x30] sm:$0xf] %v1119_v6  ;;  %v1123_v12 = vsel %vm7789_vm10, %v838_v3, %v1122_v61  ;;  %v845_v13 = vor.u32 %v843_v58, %v842_v4  ;;  %v846_v15 = vrot.slane %v842_v4, 4  ;;  %v1143_v57 = vld [vmem:[#allocation2 + $0x5c] sm:$0x1] }
  0x9b   : > { %1121 = vst.msk [vmem:[#allocation2 + $0x34] sm:$0xf] %vm327_vm0, %v837_v11  ;;  %1124 = vst [vmem:[#allocation2 + $0x38] sm:$0x1] %v1123_v12  ;;  %v850_v17 = vrot.slane %v848_v5, 7  ;;  %v857_v18 = vshrl.u32 %v6611_v9, 16  ;;  %v6613_v24 = vcombine.low %v660_v38, %v660_v38  ;;  %v6614_v25 = vcombine.high %v660_v38, %v660_v38 }
  0x9c   : > { %v860_v19 = vshll.u32 %v6611_v9, 16  ;;  %v865_v20 = vshrl.u32 %v6612_v10, 16  ;;  %v1126_v21 = vsel %vm7781_vm9, %v845_v13, %v1125_v7  ;;  %v868_v23 = vshll.u32 %v6612_v10, 16  ;;  %v1340_v6 = vld [vmem:[#allocation2 + $0x24] sm:$0xf] }
  0x9d   : > { %v853_v26 = vor.u32 %v851_v8, %v850_v17  ;;  %v855_v27 = vrot.slane %v850_v17, 4  ;;  %1127 = vst [vmem:[#allocation2 + $0x3c] sm:$0xf] %v1126_v21  ;;  %v859_v28 = vrot.slane %v857_v18, 7  ;;  %v874_v32 = vshrl.u32 %v6613_v24, 16  ;;  %v7231_v7 = vld [vmem:[%s7736_s15 + $0x40] sm:$0xff]   ;;  %v624_v18 = vpop.permute.xlu0 %623 }
  0x9e   : > { %v867_v29 = vrot.slane %v865_v20, 7  ;;  %v877_v33 = vshll.u32 %v6613_v24, 16  ;;  %v882_v34 = vshrl.u32 %v6614_v25, 16  ;;  %v885_v35 = vshll.u32 %v6614_v25, 16  ;;  %v1275_v52 = vld [vmem:[#allocation2 + $0x18] sm:$0xf] }
  0x9f   : > { %v854_v39 = vsel %vm7775_vm8, %v846_v15, %v853_v26  ;;  %v1130_v38 = vsel %vm7789_vm10, %v855_v27, %v1129_v16  ;;  %v862_v41 = vor.u32 %v860_v19, %v859_v28  ;;  %v863_v42 = vrot.slane %v859_v28, 4  ;;  %v7843_v53 = vld [vmem:[#allocation2 + $0x1c] sm:$0xf]  ;;  %v1338_v1 = vld [vmem:[#allocation2 + $0x18] sm:$0xf] }
  0xa0   : > { %1128 = vst.msk [vmem:[#allocation2 + $0x40] sm:$0xf] %vm327_vm0, %v854_v39  ;;  %1131 = vst [vmem:[#allocation2 + $0x44] sm:$0x1] %v1130_v38  ;;  %v870_v43 = vor.u32 %v868_v23, %v867_v29  ;;  %v872_v44 = vrot.slane %v867_v29, 4  ;;  %v876_v45 = vrot.slane %v874_v32, 7  ;;  %v7840_v49 = vcombine.low %v1273_v30, %v7830_v36 }
  0xa1   : > { %v884_v46 = vrot.slane %v882_v34, 7  ;;  %v1133_v47 = vsel %vm7781_vm9, %v862_v41, %v1132_v22  ;;  %v663_v51 = vsel %vm10575_vm4, %v7222_v31, %v622_v37  ;;  %v7852_v2 = vld [vmem:[#allocation2 + $0x1c] sm:$0xf]  ;;  %v7857_v5 = vcombine.low %v1275_v52, %v7843_v53  ;;  %v7864_v12 = vld [vmem:[#allocation2 + $0x28] sm:$0xf] }
  0xa2   : > { %v871_v54 = vsel %vm7775_vm8, %v863_v42, %v870_v43  ;;  %1134 = vst [vmem:[#allocation2 + $0x48] sm:$0xf] %v1133_v47  ;;  %v1137_v55 = vsel %vm7789_vm10, %v872_v44, %v1136_v40  ;;  %v879_v58 = vor.u32 %v877_v33, %v876_v45  ;;  %v880_v59 = vrot.slane %v876_v45, 4  ;;  %1964 = vrot.lane.b32.xlu0 %v7840_v49, %s7533_s18  ;;  %v1146_v13 = vld [vmem:[#allocation2 + $0x60] sm:$0xf] }
  0xa3   : > { %1135 = vst.msk [vmem:[#allocation2 + $0x4c] sm:$0xf] %vm327_vm0, %v871_v54  ;;  %1138 = vst [vmem:[#allocation2 + $0x50] sm:$0x1] %v1137_v55  ;;  %v887_v60 = vor.u32 %v885_v35, %v884_v46  ;;  %v889_v61 = vrot.slane %v884_v46, 4  ;;  %v6615_v63 = vcombine.low %v663_v51, %v663_v51  ;;  %v6616_v4 = vcombine.high %v663_v51, %v663_v51 }
  0xa4   : > { %v1140_v3 = vsel %vm7781_vm9, %v879_v58, %v1139_v48  ;;  %1966 = vrot.lane.b32.xlu1 %v7857_v5, %s7533_s18  ;;  %v7870_v17 = vcombine.low %v1338_v1, %v7852_v2  ;;  %v1277_v20 = vld [vmem:[#allocation2 + $0x24] sm:$0xf]  ;;  %v7872_v21 = vld [vmem:[#allocation2 + $0x28] sm:$0xf]  ;;  %v7877_v23 = vcombine.low %v1340_v6, %v7864_v12  ;;  %v1279_v24 = vld [vmem:[#allocation2 + $0x30] sm:$0xf]  ;;  %v666_v29 = vsel %vm10575_vm4, %v7231_v7, %v624_v18 }
  0xa5   : > { %v888_v8 = vsel %vm7775_vm8, %v880_v59, %v887_v60  ;;  %1141 = vst [vmem:[#allocation2 + $0x54] sm:$0xf] %v1140_v3  ;;  %v1144_v9 = vsel %vm7789_vm10, %v889_v61, %v1143_v57  ;;  %v891_v10 = vshrl.u32 %v6615_v63, 16  ;;  %v894_v11 = vshll.u32 %v6615_v63, 16  ;;  %v7879_v25 = vld [vmem:[#allocation2 + $0x34] sm:$0xf] }
  0xa6   : > { %1142 = vst.msk [vmem:[#allocation2 + $0x58] sm:$0xf] %vm327_vm0, %v888_v8  ;;  %1145 = vst [vmem:[#allocation2 + $0x5c] sm:$0x1] %v1144_v9  ;;  %v899_v15 = vshrl.u32 %v6616_v4, 16  ;;  %v902_v16 = vshll.u32 %v6616_v4, 16  ;;  %2476 = vrot.lane.b32.xlu0 %v7870_v17, %s7534_s19  ;;  %v7885_v32 = vcombine.low %v1277_v20, %v7872_v21  ;;  %v6617_v33 = vcombine.low %v666_v29, %v666_v29 }
  0xa7   : > { %v893_v19 = vrot.slane %v891_v10, 7  ;;  %v1150_v26 = vld [vmem:[#allocation2 + $0x68] sm:$0x1]  ;;  %v6618_v35 = vcombine.high %v666_v29, %v666_v29  ;;  %v7890_v37 = vcombine.low %v1279_v24, %v7879_v25  ;;  %v1342_v39 = vld [vmem:[#allocation2 + $0x30] sm:$0xf] }
  0xa8   : > { %v901_v22 = vrot.slane %v899_v15, 7  ;;  %2478 = vrot.lane.b32.xlu1 %v7877_v23, %s7534_s19  ;;  %10588 = vst [vmem:[#allocation7_spill] sm:$0xff] %v7885_v32  ;;  %v7892_v38 = vld [vmem:[#allocation2 + $0x34] sm:$0xf]  ;;  %v908_v42 = vshrl.u32 %v6617_v33, 16  ;;  %v911_v43 = vshll.u32 %v6617_v33, 16 }
  0xa9   : > { %v896_v27 = vor.u32 %v894_v11, %v893_v19  ;;  %v897_v28 = vrot.slane %v893_v19, 4  ;;  %v916_v44 = vshrl.u32 %v6618_v35, 16  ;;  %v919_v45 = vshll.u32 %v6618_v35, 16  ;;  %v1344_v46 = vld [vmem:[#allocation2 + $0x3c] sm:$0xf] }
  0xaa   : > { %v904_v30 = vor.u32 %v902_v16, %v901_v22  ;;  %v906_v31 = vrot.slane %v901_v22, 4  ;;  %1968 = vrot.lane.b32.xlu0 %v7885_v32, %s7533_s18  ;;  %v7901_v47 = vld [vmem:[#allocation2 + $0x40] sm:$0xf]  ;;  %v1153_v48 = vld [vmem:[#allocation2 + $0x6c] sm:$0xf]  ;;  %v910_v51 = vrot.slane %v908_v42, 7  ;;  %v7906_v52 = vcombine.low %v1342_v39, %v7892_v38 }
  0xab   : > { %v1147_v34 = vsel %vm7781_vm9, %v896_v27, %v1146_v13  ;;  %v1281_v54 = vld [vmem:[#allocation2 + $0x3c] sm:$0xf]  ;;  %v918_v55 = vrot.slane %v916_v44, 7  ;;  %v7908_v57 = vld [vmem:[#allocation2 + $0x40] sm:$0xf]  ;;  %v7913_v61 = vcombine.low %v1344_v46, %v7901_v47 }
  0xac   : > { %v905_v40 = vsel %vm7775_vm8, %v897_v28, %v904_v30  ;;  %1148 = vst [vmem:[#allocation2 + $0x60] sm:$0xf] %v1147_v34  ;;  %v1151_v41 = vsel %vm7789_vm10, %v906_v31, %v1150_v26  ;;  %1970 = vrot.lane.b32.xlu1 %v7890_v37, %s7533_s18  ;;  %10589 = vst [vmem:[#allocation8_spill] sm:$0xff] %v7906_v52  ;;  %v1157_v58 = vld [vmem:[#allocation2 + $0x74] sm:$0x1]  ;;  %v913_v59 = vor.u32 %v911_v43, %v910_v51 }
  0xad   : > { %1149 = vst.msk [vmem:[#allocation2 + $0x64] sm:$0xf] %vm327_vm0, %v905_v40  ;;  %1152 = vst [vmem:[#allocation2 + $0x68] sm:$0x1] %v1151_v41  ;;  %v914_v60 = vrot.slane %v910_v51, 4  ;;  %v921_v63 = vor.u32 %v919_v45, %v918_v55  ;;  %v923_v1 = vrot.slane %v918_v55, 4  ;;  %v7922_v8 = vcombine.low %v1281_v54, %v7908_v57 }
  0xae   : > { %2480 = vrot.lane.b32.xlu0 %v7906_v52, %s7534_s19  ;;  %10590 = vst [vmem:[#allocation9_spill] sm:$0xff] %v7913_v61  ;;  %v1283_v3 = vld [vmem:[#allocation2 + $0x48] sm:$0xf]  ;;  %v7915_v4 = vld [vmem:[#allocation2 + $0x4c] sm:$0xf]  ;;  %v1154_v7 = vsel %vm7781_vm9, %v913_v59, %v1153_v48 }
  0xaf   : > { %v1321_v6 = vld [vmem:[#allocation2 + $0xc] sm:$0xe]  ;;  %10591 = vst [vmem:[#allocation10_spill] sm:$0xff] %v7922_v8  ;;  %v1346_v9 = vld [vmem:[#allocation2 + $0x48] sm:$0xf]  ;;  %v922_v13 = vsel %vm7775_vm8, %v914_v60, %v921_v63  ;;  %v1158_v15 = vsel %vm7789_vm10, %v923_v1, %v1157_v58  ;;  %v7942_v24 = vcombine.low %v1283_v3, %v7915_v4  ;;  %v7987_v1 = vpop.permute.xlu0 %627 }
  0xb0   : > { %2482 = vrot.lane.b32.xlu1 %v7913_v61, %s7534_s19  ;;  %v7924_v10 = vld [vmem:[#allocation2 + $0x18] sm:$0xe]  ;;  %v7926_v11 = vld [vmem:[#allocation2 + $0x24] sm:$0xe]  ;;  %1155 = vst [vmem:[#allocation2 + $0x6c] sm:$0xf] %v1154_v7  ;;  %v6713_v28 = vcombine.low %v1321_v6, %v7830_v36 }
  0xb1   : > { %v7932_v16 = vld [vmem:[#allocation2 + $0x4c] sm:$0xf]  ;;  %v1348_v18 = vld [vmem:[#allocation2 + $0x54] sm:$0xf]  ;;  %v7934_v19 = vld [vmem:[#allocation2 + $0x58] sm:$0xf]  ;;  %v6761_v54 = vcombine.low %v7924_v10, %v7852_v2  ;;  %v6762_v55 = vcombine.low %v7926_v11, %v7864_v12 }
  0xb2   : > { %1156 = vst.msk [vmem:[#allocation2 + $0x70] sm:$0xf] %vm327_vm0, %v922_v13  ;;  %1159 = vst [vmem:[#allocation2 + $0x74] sm:$0x1] %v1158_v15  ;;  %1972 = vrot.lane.b32.xlu0 %v7922_v8, %s7533_s18  ;;  %v1285_v26 = vld [vmem:[#allocation2 + $0x54] sm:$0xf]  ;;  %v7958_v40 = vcombine.low %v1346_v9, %v7932_v16  ;;  %v7961_v36 = vcombine.low %v1348_v18, %v7934_v19 }
  0xb3   : > { %10592 = vst [vmem:[#allocation11_spill] sm:$0xff] %v7942_v24  ;;  %v7944_v27 = vld [vmem:[#allocation2 + $0x58] sm:$0xf]  ;;  %v1350_v30 = vld [vmem:[#allocation2 + $0x60] sm:$0xf]  ;;  %v2316_v15 = vrot.slane %v6713_v28, 1 }
  0xb4   : > { %v7947_v29 = vld [vmem:[#allocation2 + $0x18] sm:$0xe]  ;;  %v1351_v31 = vld [vmem:[#allocation2 + $0x64] sm:$0xf]  ;;  %1974 = vrot.lane.b32.xlu1 %v7942_v24, %s7533_s18  ;;  %10593 = vst [vmem:[#allocation12_spill] sm:$0xff] %v7958_v40  ;;  %10594 = vst [vmem:[#allocation13_spill] sm:$0xff] %v7961_v36  ;;  %v7971_v48 = vcombine.low %v1285_v26, %v7944_v27 }
  0xb5   : > { %v7949_v33 = vld [vmem:[#allocation2 + $0x14] ss:$0 sps:$4 sm:$0x11]   ;;  %v7953_v39 = vld [vmem:[#allocation2 + $0x24] sm:$0xe]  ;;  %v7985_v63 = vcombine.low %v1350_v30, %v1351_v31  ;;  %v6714_v9 = vcombine.low %v7947_v29, %v7843_v53  ;;  %v2831_v34 = vrot.slane %v6762_v55, 1 }
  0xb6   : > { %v7963_v41 = vld [vmem:[#allocation2 + $0x20] ss:$0 sps:$4 sm:$0x11]   ;;  %v7965_v42 = vld [vmem:[#allocation2 + $0x10] sm:$0xf]  ;;  %10596 = vst [vmem:[#allocation15_spill] sm:$0xff] %v7971_v48  ;;  %2484 = vrot.lane.b32.xlu0 %v7958_v40, %s7534_s19  ;;  %v6715_v26 = vcombine.low %v7953_v39, %v7872_v21 }
  0xb7   : > { %10595 = vst [vmem:[#allocation14_spill] sm:$0xff] %v7963_v41  ;;  %v1258_v43 = vld [vmem:[#allocation2 + $0xc] sm:$0xe]  ;;  %v7973_v51 = vld [vmem:[#allocation2 + $0x14] ss:$0 sps:$4 sm:$0x11]  }
  0xb8   : > { %v7979_v58 = vld [vmem:[#allocation2 + $0x30] sm:$0xe]  ;;  %v1287_v59 = vld [vmem:[#allocation2 + $0x60] sm:$0xf]  ;;  %v7983_v60 = vld [vmem:[#allocation2 + $0x64] sm:$0xf]  ;;  %v6666_v12 = vcombine.low %v1258_v43, %v7965_v42  ;;  %2486 = vrot.lane.b32.xlu1 %v7961_v36, %s7534_s19 }
  0xb9   : > { %10597 = vst [vmem:[#allocation16_spill] sm:$0xff] %v7985_v63  ;;  %v7993_v7 = vld [vmem:[#allocation2 + $0x2c] ss:$0 sps:$4 sm:$0x11]   ;;  %v7997_v10 = vld [vmem:[#allocation2 + $0x30] sm:$0xe]  ;;  %v8013_v29 = vcombine.low %v1287_v59, %v7983_v60  ;;  %v6716_v6 = vcombine.low %v7979_v58, %v7879_v25 }
  0xba   : > { %v8003_v18 = vld [vmem:[#allocation2 + $0x20] ss:$0 sps:$4 sm:$0x11]   ;;  %v8007_v30 = vld [vmem:[#allocation2 + $0x3c] sm:$0xe]  ;;  %v2317_v13 = vrot.slane %v7949_v33, 1  ;;  %1976 = vrot.lane.b32.xlu0 %v7971_v48, %s7533_s18  ;;  %v632_v48 = vpop.permute.xlu0 %631  ;;  %v6763_v36 = vcombine.low %v7997_v10, %v7892_v38 }
  0xbb   : > { %v8009_v31 = vld [vmem:[#allocation2 + $0x3c] sm:$0xe]  ;;  %10598 = vst [vmem:[#allocation17_spill] sm:$0xff] %v8013_v29  ;;  %v1352_v43 = vld [vmem:[#allocation2 + $0x6c] sm:$0xf]  ;;  %v2828_v39 = vrot.slane %v6761_v54, 1 }
  0xbc   : > { %v1353_v0 = vld [vmem:[#allocation2 + $0x70] sm:$0xf]  ;;  %v8016_v2 = vld [vmem:[#allocation2 + $0x48] sm:$0xe]  ;;  %v2829_v11 = vrot.slane %v7963_v41, 1  ;;  %v1808_v53 = vrot.slane %v7973_v51, 1  ;;  %1978 = vrot.lane.b32.xlu1 %v8013_v29, %s7533_s18 }
  0xbd   : > { %v8018_v28 = vld [vmem:[#allocation2 + $0x48] sm:$0xe]  ;;  %v1214_v59 = vld [vmem:[#allocation2 + $0x1c] sm:$0xf]  ;;  %v8027_v46 = vld [vmem:[#allocation2 + $0x54] sm:$0xe]  ;;  %v8035_v54 = vcombine.low %v1352_v43, %v1353_v0  ;;  %v6764_v0 = vcombine.low %v8007_v30, %v7901_v47  ;;  %v6717_v43 = vcombine.low %v8009_v31, %v7908_v57  ;;  %v6718_v38 = vcombine.low %v8016_v2, %v7915_v4 }
  0xbe   : > { %v8029_v3 = vld [vmem:[#allocation2 + $0x54] sm:$0xe]  ;;  %v8031_v44 = vld [vmem:[#allocation2 + $0x60] sm:$0xe]  ;;  %v1807_v45 = vrot.slane %v6666_v12, 1  ;;  %v2832_v35 = vrot.slane %v7993_v7, 1  ;;  %2488 = vrot.lane.b32.xlu0 %v7985_v63, %s7534_s19  ;;  %v6765_v10 = vcombine.low %v8018_v28, %v7932_v16  ;;  %v626_v63 = vpop.permute.xlu1 %625  ;;  %v2318_v16 = vsel %vm1803_vm3, %v2316_v15, %v2317_v13 }
  0xbf   : > { %v1259_v20 = vld [vmem:[#allocation2 + $0x18] sm:$0xe]  ;;  %10599 = vst [vmem:[#allocation18_spill] sm:$0xff] %v8035_v54  ;;  %v1211_v21 = vld [vmem:[#allocation2 + $0xc] sm:$0xf]  ;;  %v2319_v22 = vrot.slane %v6714_v9, 1  ;;  %v6720_v4 = vcombine.low %v8031_v44, %v7983_v60  ;;  %v2830_v28 = vsel %vm1803_vm3, %v2828_v39, %v2829_v11  ;;  %v636_v11 = vpop.permute.xlu0 %635 }
  0xc0   : > { %v1213_v14 = vld [vmem:[#allocation2 + $0x18] sm:$0xf]  ;;  %v1260_v25 = vld [vmem:[#allocation2 + $0x24] sm:$0xe]  ;;  %v7289_v58 = vld [vmem:[%s7736_s15 + $0x50] sm:$0xff]   ;;  %v2320_v55 = vrot.slane %v8003_v18, 1  ;;  %v6667_v9 = vcombine.low %v1259_v20, %v1214_v59  ;;  %2490 = vrot.lane.b32.xlu1 %v8035_v54, %s7534_s19  ;;  %v8080_v20 = vcombine.low %v1211_v21, %v7965_v42  ;;  %v2833_v13 = vsel %vm1803_vm3, %v2831_v34, %v2832_v35 }
  0xc1   : > { %v8042_v12 = vld [vmem:[#allocation2 + $0x20] ss:$0 sps:$4 sm:$0x11]   ;;  %v1216_v29 = vld [vmem:[#allocation2 + $0x28] sm:$0xf]  ;;  %v8052_v40 = vrot.slane %v6715_v26, 1  ;;  %v8082_v26 = vcombine.low %v1213_v14, %v1214_v59 }
  0xc2   : > { %v8050_v24 = vld [vmem:[#allocation2 + $0x2c] ss:$0 sps:$4 sm:$0x11]   ;;  %v6668_v8 = vcombine.low %v1260_v25, %v1216_v29  ;;  %v8060_v30 = vrot.slane %v6716_v6, 1  ;;  %v7290_v57 = vld [vmem:[%s7736_s15 + $0x60] sm:$0xff]   ;;  %v7291_v31 = vld [vmem:[%s7736_s15 + $0x70] sm:$0xff]   ;;  %v1809_v25 = vsel %vm1803_vm3, %v1807_v45, %v1808_v53  ;;  %2364 = vrot.lane.b32.xlu0 %v2318_v16, %s7535_s20  ;;  %v672_v45 = vsel %vm10575_vm4, %v7289_v58, %v7987_v1 }
  0xc3   : > { %v8058_v47 = vld [vmem:[#allocation2 + $0x2c] ss:$0 sps:$4 sm:$0x11]   ;;  %v8073_v2 = vld [vmem:[#allocation2 + $0x38] ss:$0 sps:$4 sm:$0x11]   ;;  %v2321_v34 = vsel %vm1803_vm3, %v2319_v22, %v2320_v55  ;;  %v678_v16 = vsel %vm10575_vm4, %v7290_v57, %v632_v48  ;;  %v684_v22 = vsel %vm10575_vm4, %v7291_v31, %v636_v11  ;;  %v630_v55 = vpop.permute.xlu1 %629 }
  0xc4   : > { %10600 = vst [vmem:[#allocation19_spill] sm:$0xff] %v8058_v47  ;;  %10601 = vst [vmem:[#allocation20_spill] sm:$0xff] %v8073_v2  ;;  %v8075_v6 = vld [vmem:[#allocation2 + $0x38] ss:$0 sps:$4 sm:$0x11]   ;;  %v1810_v15 = vrot.slane %v6667_v9, 1  ;;  %1854 = vrot.lane.b32.xlu1 %v1809_v25, %s7532_s17 }
  0xc5   : > { %10602 = vst [vmem:[#allocation21_spill] sm:$0xff] %v8075_v6  ;;  %10603 = vst [vmem:[#allocation22_spill] sm:$0xff] %v8080_v20  ;;  %v1215_v44 = vld [vmem:[#allocation2 + $0x24] sm:$0xf]  ;;  %v1262_v60 = vld [vmem:[#allocation2 + $0x3c] sm:$0xe] }
  0xc6   : > { %v1811_v54 = vrot.slane %v8042_v12, 1  ;;  %v1220_v52 = vld [vmem:[#allocation2 + $0x40] sm:$0xf]  ;;  %v1813_v42 = vrot.slane %v6668_v8, 1  ;;  %v8089_v53 = vrot.slane %v6763_v36, 1  ;;  %v8091_v21 = vrot.slane %v6764_v0, 1  ;;  %2876 = vrot.lane.b32.xlu0 %v2830_v28, %s7536_s21 }
  0xc7   : > { %v6670_v14 = vcombine.low %v1262_v60, %v1220_v52  ;;  %v7292_v39 = vld [vmem:[%s7736_s15 + $0x48] sm:$0xff]   ;;  %v1814_v35 = vrot.slane %v8050_v24, 1  ;;  %v2323_v59 = vrot.slane %v8058_v47, 1  ;;  %v8098_v9 = vld [vmem:[#allocation2 + $0x44] ss:$0 sps:$4 sm:$0x11]   ;;  %v8102_v8 = vcombine.low %v1215_v44, %v1216_v29 }
  0xc8   : > { %10604 = vst [vmem:[#allocation23_spill] sm:$0xff] %v8098_v9  ;;  %v8100_v1 = vrot.slane %v6718_v38, 1  ;;  %v8104_v36 = vld [vmem:[#allocation2 + $0x44] ss:$0 sps:$4 sm:$0x11]   ;;  %v8108_v0 = vcombine.low %v672_v45, %v672_v45  ;;  %v7293_v25 = vld [vmem:[%s7736_s15 + $0x58] sm:$0xff]   ;;  %2366 = vrot.lane.b32.xlu1 %v2321_v34, %s7535_s20  ;;  %v669_v41 = vsel %vm10575_vm4, %v7292_v39, %v626_v63  ;;  %v8141_v63 = vcombine.low %v684_v22, %v684_v22 }
  0xc9   : > { %10605 = vst [vmem:[#allocation24_spill] sm:$0xff] %v8104_v36  ;;  %v8106_v58 = vld [vmem:[#allocation2 + $0x50] ss:$0 sps:$4 sm:$0x11]   ;;  %v2326_v38 = vrot.slane %v8073_v2, 1  ;;  %v2835_v29 = vrot.slane %v8075_v6, 1  ;;  %v8134_v2 = vcombine.low %v678_v16, %v678_v16 }
  0xca   : > { %10606 = vst [vmem:[#allocation25_spill] sm:$0xff] %v8106_v58  ;;  %v8116_v44 = vrot.slane %v6717_v43, 1  ;;  %v1546_v60 = vshll.u32 %v8080_v20, 16  ;;  %v1219_v61 = vld [vmem:[#allocation2 + $0x3c] sm:$0xf]  ;;  %v1819_v47 = vrot.slane %v6670_v14, 1  ;;  %v8128_v43 = vcombine.high %v672_v45, %v672_v45  ;;  %2878 = vrot.lane.b32.xlu0 %v2833_v13, %s7536_s21 }
  0xcb   : > { %v8119_v32 = vrot.slane %v6720_v4, 1  ;;  %v8121_v48 = vrot.slane %v6765_v10, 1  ;;  %v1544_v57 = vshrl.u32 %v8080_v20, 16  ;;  %v7294_v31 = vld [vmem:[%s7736_s15 + $0x68] sm:$0xff]   ;;  %v1820_v28 = vrot.slane %v8098_v9, 1  ;;  %10607 = vst [vmem:[#allocation26_spill] sm:$0xff] %v8134_v2  ;;  %v634_v2 = vpop.permute.xlu1 %633 }
  0xcc   : > { %v1261_v11 = vld [vmem:[#allocation2 + $0x30] sm:$0xe]  ;;  %v1551_v6 = vshll.u32 %v7973_v51, 16  ;;  %v1812_v14 = vsel %vm1803_vm3, %v1810_v15, %v1811_v54  ;;  %v2838_v4 = vrot.slane %v8104_v36, 1  ;;  %v2332_v10 = vrot.slane %v8106_v58, 1  ;;  %10608 = vst [vmem:[#allocation27_spill] sm:$0xff] %v8141_v63 }
  0xcd   : > { %v1217_v62 = vld [vmem:[#allocation2 + $0x30] sm:$0xf]  ;;  %v1218_v20 = vld [vmem:[#allocation2 + $0x34] sm:$0xf]  ;;  %v1548_v51 = vrot.slane %v1546_v60, 1  ;;  %v8139_v45 = vcombine.high %v678_v16, %v678_v16  ;;  %v8143_v54 = vcombine.high %v684_v22, %v684_v22  ;;  %v1815_v15 = vsel %vm1803_vm3, %v1813_v42, %v1814_v35  ;;  %v7296_v63 = vld [vmem:[%s7736_s15 + $0x78] sm:$0xff]  }
  0xce   : > { %v1264_v50 = vld [vmem:[#allocation2 + $0x54] sm:$0xe]  ;;  %v8137_v34 = vld [vmem:[#allocation2 + $0x38] ss:$0 sps:$4 sm:$0x11]   ;;  %v6669_v39 = vcombine.low %v1261_v11, %v1218_v20  ;;  %v8146_v9 = vcombine.low %v669_v41, %v669_v41  ;;  %v675_v36 = vsel %vm10575_vm4, %v7293_v25, %v630_v55  ;;  %1858 = vrot.lane.b32.xlu1 %v1815_v15, %s7532_s17  ;;  %v2324_v13 = vsel %vm1803_vm3, %v8052_v40, %v2323_v59  ;;  %s7537_s15 = smov 48  }
  0xcf   : > { %10609 = vst [vmem:[#allocation28_spill] sm:$0xff] %v8143_v54  ;;  %v1224_v58 = vld [vmem:[#allocation2 + $0x58] sm:$0xf]  ;;  %v8152_v16 = vcombine.low %v1219_v61, %v1220_v52  ;;  %v8154_v60 = vld [vmem:[#allocation2 + $0x5c] ss:$0 sps:$4 sm:$0x11]   ;;  %v2327_v42 = vsel %vm1803_vm3, %v8060_v30, %v2326_v38  ;;  %v2836_v35 = vsel %vm1803_vm3, %v8089_v53, %v2835_v29  ;;  %v8165_v11 = vcombine.high %v669_v41, %v669_v41 }
  0xd0   : > { %10610 = vst [vmem:[#allocation29_spill] sm:$0xff] %v8154_v60  ;;  %v6672_v22 = vcombine.low %v1264_v50, %v1224_v58  ;;  %v1553_v54 = vrot.slane %v1551_v6, 1  ;;  %v8161_v55 = vld [vmem:[#allocation2 + $0x44] ss:$0 sps:$4 sm:$0x11]   ;;  %v681_v52 = vsel %vm10575_vm4, %v7294_v31, %v634_v2  ;;  %1856 = vrot.lane.b32.xlu0 %v1812_v14, %s7532_s17  ;;  %v1821_v50 = vsel %vm1803_vm3, %v1819_v47, %v1820_v28 }
  0xd1   : > { %v8163_v25 = vld [vmem:[#allocation2 + $0x68] ss:$0 sps:$4 sm:$0x11]   ;;  %v8170_v61 = vcombine.low %v1217_v62, %v1218_v20  ;;  %v8172_v40 = vld [vmem:[#allocation2 + $0x50] ss:$0 sps:$4 sm:$0x11]   ;;  %v8176_v6 = vcombine.low %v675_v36, %v675_v36  ;;  %v8178_v53 = vcombine.high %v675_v36, %v675_v36  ;;  %v1549_v29 = vor.u32 %v1548_v51, %v1544_v57  ;;  %v638_v51 = vpop.permute.xlu1 %637 }
  0xd2   : > { %10611 = vst [vmem:[#allocation30_spill] sm:$0xff] %v8163_v25  ;;  %v8174_v30 = vld [vmem:[#allocation2 + $0x5c] ss:$0 sps:$4 sm:$0x11]   ;;  %v1816_v59 = vrot.slane %v6669_v39, 1  ;;  %v1817_v41 = vrot.slane %v8137_v34, 1  ;;  %v10612_v2 = vcombine.low %v8027_v46, %v7934_v19  ;;  %2370 = vrot.lane.b32.xlu1 %v2327_v42, %s7535_s20  ;;  %v2839_v62 = vsel %vm1803_vm3, %v8091_v21, %v2838_v4 }
  0xd3   : > { %v1223_v38 = vld [vmem:[#allocation2 + $0x54] sm:$0xf]  ;;  %v1825_v47 = vrot.slane %v6672_v22, 1  ;;  %v1826_v20 = vrot.slane %v8154_v60, 1  ;;  %v1263_v28 = vld [vmem:[#allocation2 + $0x48] sm:$0xe]  ;;  %v8188_v36 = vcombine.low %v681_v52, %v681_v52  ;;  %v2333_v21 = vsel %vm1803_vm3, %v8100_v1, %v2332_v10 }
  0xd4   : > { %v2843_v31 = vrot.slane %v10612_v2, 1  ;;  %v2329_v14 = vrot.slane %v8161_v55, 1  ;;  %v2338_v15 = vrot.slane %v8163_v25, 1  ;;  %v2057_v57 = vshrl.u32 %v7857_v5, 16  ;;  %2368 = vrot.lane.b32.xlu0 %v2324_v13, %s7535_s20  ;;  %v1221_v22 = vld [vmem:[#allocation2 + $0x48] sm:$0xf] }
  0xd5   : > { %v10613_v19 = vshll.u32 %v7857_v5, 16  ;;  %v2841_v4 = vrot.slane %v8172_v40, 1  ;;  %v2844_v39 = vrot.slane %v8174_v30, 1  ;;  %v1222_v42 = vld [vmem:[#allocation2 + $0x4c] sm:$0xf]  ;;  %v687_v2 = vsel %vm10575_vm4, %v7296_v63, %v638_v51  ;;  %v7329_v1 = vld [vmem:[%s10516_s2] sm:$0xff]  }
  0xd6   : > { %v8201_v25 = vcombine.low %v1223_v38, %v1224_v58  ;;  %v8204_v60 = vsel %vm1530_vm2, %v1549_v29, %v1553_v54  ;;  %v8206_v5 = vld [vmem:[#allocation2 + $0x50] ss:$0 sps:$4 sm:$0x11]   ;;  %v8208_v13 = vcombine.high %v681_v52, %v681_v52  ;;  %1862 = vrot.lane.b32.xlu1 %v1821_v50, %s7532_s17  ;;  %v2064_v10 = vshll.u32 %v8003_v18, 16  ;;  %7082 = vmatprep.subr.bf16.mxu0 %v7329_v1 }
  0xd7   : > { %v2061_v46 = vrot.slane %v10613_v19, 1  ;;  %v6671_v19 = vcombine.low %v1263_v28, %v1222_v42  ;;  %v2569_v63 = vshrl.u32 %v7877_v23, 16  ;;  %v10615_v58 = vshll.u32 %v7877_v23, 16  ;;  %v8221_v28 = vld [vmem:[#allocation2 + $0x5c] ss:$0 sps:$4 sm:$0x11]   ;;  %7083 = vmatpush3.bf16.msra.mxu0 %v7329_v1 }
  0xd8   : > { %10614 = vst [vmem:[#allocation31_spill] sm:$0xff] %v8201_v25  ;;  %v2576_v54 = vshll.u32 %v7993_v7, 16  ;;  %v1818_v29 = vsel %vm1803_vm3, %v1816_v59, %v1817_v41  ;;  %v1827_v52 = vsel %vm1803_vm3, %v1825_v47, %v1826_v20  ;;  %v8223_v51 = vcombine.low %v687_v2, %v687_v2  ;;  %2880 = vrot.lane.b32.xlu0 %v2836_v35, %s7536_s21  ;;  %v7332_v59 = vld [vmem:[%s10516_s2 + $0x8] sm:$0xff]  }
  0xd9   : > { %v2573_v38 = vrot.slane %v10615_v58, 1  ;;  %v8225_v25 = vcombine.high %v687_v2, %v687_v2  ;;  %v8230_v18 = vsel %vm1803_vm3, %v8116_v44, %v2329_v14  ;;  %v2339_v23 = vsel %vm1803_vm3, %v8119_v32, %v2338_v15  ;;  %7084 = vmatprep.subr.bf16.mxu0 %v7332_v59 }
  0xda   : > { %v2062_v7 = vor.u32 %v2061_v46, %v2057_v57  ;;  %v1558_v50 = vshll.u32 %v8082_v26, 16  ;;  %v8240_v41 = vsel %vm1803_vm3, %v8121_v48, %v2841_v4  ;;  %v8242_v35 = vcombine.low %v1221_v22, %v1222_v42  ;;  %2374 = vrot.lane.b32.xlu1 %v2333_v21, %s7535_s20 }
  0xdb   : > { %v1822_v47 = vrot.slane %v6671_v19, 1  ;;  %v1823_v44 = vrot.slane %v8206_v5, 1  ;;  %v8247_v32 = vsel %vm1803_vm3, %v2843_v31, %v2844_v39  ;;  %v2066_v20 = vrot.slane %v2064_v10, 1  ;;  %7085 = vmatpush3.bf16.msra.mxu0 %v7332_v59  ;;  %v1171_v59 = vld [vmem:[#allocation2 + $0x8c] sm:$0x1] }
  0xdc   : > { %10616 = vst [vmem:[#allocation32_spill] sm:$0xff] %v8242_v35  ;;  %v2574_v14 = vor.u32 %v2573_v38, %v2569_v63  ;;  %v2578_v15 = vrot.slane %v2576_v54, 1  ;;  %v10617_v57 = vcombine.low %v8029_v3, %v7944_v27  ;;  %v2335_v48 = vrot.slane %v8221_v28, 1  ;;  %2882 = vrot.lane.b32.xlu0 %v2839_v62, %s7536_s21  ;;  %v7336_v62 = vld [vmem:[%s10516_s2 + $0x10] sm:$0xff]  }
  0xdd   : > { %v1556_v4 = vshrl.u32 %v8082_v26, 16  ;;  %v1563_v22 = vshll.u32 %v8042_v12, 16  ;;  %v8257_v21 = vsel %vm1530_vm2, %v2062_v7, %v2066_v20  ;;  %v1560_v31 = vrot.slane %v1558_v50, 1  ;;  %7086 = vmatprep.subr.bf16.mxu0 %v7336_v62  ;;  %v1167_v50 = vld [vmem:[#allocation2 + $0x84] sm:$0xf] }
  0xde   : > { %v2334_v46 = vrot.slane %v10617_v57, 1  ;;  %v10618_v39 = vshll.u32 %v7840_v49, 16  ;;  %v2052_v2 = vshll.u32 %v7949_v33, 16  ;;  %v8263_v27 = vsel %vm1803_vm3, %v1822_v47, %v1823_v44  ;;  %1866 = vrot.lane.b32.xlu1 %v1827_v52, %s7532_s17 }
  0xdf   : > { %v2045_v3 = vshrl.u32 %v7840_v49, 16  ;;  %v942_v19 = vshrl.u32 %v8108_v0, 16  ;;  %v945_v12 = vshll.u32 %v8108_v0, 16  ;;  %v8273_v1 = vsel %vm1530_vm2, %v2574_v14, %v2578_v15  ;;  %7087 = vmatpush3.bf16.msra.mxu0 %v7336_v62 }
  0xe0   : > { %v2049_v42 = vrot.slane %v10618_v39, 1  ;;  %v1570_v33 = vshll.u32 %v8102_v8, 16  ;;  %v950_v10 = vshrl.u32 %v8128_v43, 16  ;;  %v953_v63 = vshll.u32 %v8128_v43, 16  ;;  %1860 = vrot.lane.b32.xlu0 %v1818_v29, %s7532_s17 }
  0xe1   : > { %v8279_v49 = vsel %vm1803_vm3, %v2334_v46, %v2335_v48  ;;  %v8281_v58 = vrot.slane %v1563_v22, 1  ;;  %v1568_v0 = vshrl.u32 %v8102_v8, 16  ;;  %v944_v38 = vrot.slane %v942_v19, 7 }
  0xe2   : > { %v8285_v54 = vor.u32 %v1560_v31, %v1556_v4  ;;  %v8287_v52 = vor.u32 %v2049_v42, %v2045_v3  ;;  %v8289_v7 = vrot.slane %v2052_v2, 1  ;;  %v952_v43 = vrot.slane %v950_v10, 7  ;;  %2378 = vrot.lane.b32.xlu1 %v2339_v23, %s7535_s20  ;;  %v7340_v4 = vld [vmem:[%s10516_s2 + $0x18] sm:$0xff]   ;;  %v10621_v42 = vld [vmem:[#allocation26_spill] sm:$0xff] }
  0xe3   : > { %v1575_v47 = vshll.u32 %v8050_v24, 16  ;;  %v2557_v44 = vshrl.u32 %v7870_v17, 16  ;;  %v947_v20 = vor.u32 %v945_v12, %v944_v38  ;;  %v948_v14 = vrot.slane %v944_v38, 4  ;;  %7088 = vmatprep.subr.bf16.mxu0 %v7340_v4  ;;  %v10625_v10 = vld [vmem:[#allocation14_spill] sm:$0xff] }
  0xe4   : > { %v1572_v15 = vrot.slane %v1570_v33, 1  ;;  %v10619_v29 = vshll.u32 %v7870_v17, 16  ;;  %v955_v46 = vor.u32 %v953_v63, %v952_v43  ;;  %v957_v48 = vrot.slane %v952_v43, 4  ;;  %2372 = vrot.lane.b32.xlu0 %v8230_v18, %s7535_s20  ;;  %v10622_v17 = vld [vmem:[#allocation20_spill] sm:$0xff]  ;;  %v7342_v33 = vld [vmem:[%s10516_s2 + $0x20] sm:$0xff]   ;;  %7089 = vmatpush3.bf16.msra.mxu0 %v7340_v4  ;;  %v10626_v43 = vld [vmem:[#allocation7_spill] sm:$0xff] }
  0xe5   : > { %v2081_v22 = vshrl.u32 %v7890_v37, 16  ;;  %v10620_v24 = vshll.u32 %v7890_v37, 16  ;;  %v1168_v39 = vsel %vm7781_vm9, %v947_v20, %v1167_v50  ;;  %v976_v23 = vshrl.u32 %v10621_v42, 16  ;;  %7090 = vmatprep.subr.bf16.mxu0 %v7342_v33  ;;  %v1225_v12 = vld [vmem:[#allocation2 + $0x60] sm:$0xf] }
  0xe6   : > { %v2561_v57 = vrot.slane %v10619_v29, 1  ;;  %v2088_v2 = vshll.u32 %v10622_v17, 16  ;;  %v956_v19 = vsel %vm7775_vm8, %v948_v14, %v955_v46  ;;  %1169 = vst [vmem:[#allocation2 + $0x84] sm:$0xf] %v1168_v39  ;;  %v1172_v62 = vsel %vm7789_vm10, %v957_v48, %v1171_v59  ;;  %1725 = vrot.lane.b32.xlu1 %v8204_v60, %s7531_s16  ;;  %v10628_v46 = vld [vmem:[#allocation19_spill] sm:$0xff] }
  0xe7   : > { %v2085_v31 = vrot.slane %v10620_v24, 1  ;;  %v979_v37 = vshll.u32 %v10621_v42, 16  ;;  %v2564_v63 = vshll.u32 %v10625_v10, 16  ;;  %1170 = vst.msk [vmem:[#allocation2 + $0x88] sm:$0xf] %vm327_vm0, %v956_v19  ;;  %v978_v18 = vrot.slane %v976_v23, 7 }
  0xe8   : > { %1173 = vst [vmem:[#allocation2 + $0x8c] sm:$0x1] %v1172_v62  ;;  %v984_v38 = vshrl.u32 %v8139_v45, 16  ;;  %v987_v50 = vshll.u32 %v8139_v45, 16  ;;  %v1577_v59 = vrot.slane %v1575_v47, 1  ;;  %v2069_v20 = vshrl.u32 %v10626_v43, 16  ;;  %2884 = vrot.lane.b32.xlu0 %v8240_v41, %s7536_s21  ;;  %7091 = vmatpush3.bf16.msra.mxu0 %v7342_v33 }
  0xe9   : > { %v10627_v14 = vshll.u32 %v10626_v43, 16  ;;  %v2076_v48 = vshll.u32 %v10628_v46, 16  ;;  %v1181_v24 = vld [vmem:[#allocation2 + $0x9c] sm:$0xf]  ;;  %v2562_v39 = vor.u32 %v2561_v57, %v2557_v44  ;;  %v981_v42 = vor.u32 %v979_v37, %v978_v18  ;;  %v1185_v62 = vld [vmem:[#allocation2 + $0xa4] sm:$0x1] }
  0xea   : > { %v982_v23 = vrot.slane %v978_v18, 4  ;;  %v986_v17 = vrot.slane %v984_v38, 7  ;;  %v1573_v45 = vor.u32 %v1572_v15, %v1568_v0  ;;  %v2086_v4 = vor.u32 %v2085_v31, %v2081_v22  ;;  %v10629_v47 = vld [vmem:[#allocation9_spill] sm:$0xff]  ;;  %v7346_v10 = vld [vmem:[%s10516_s2 + $0x28] sm:$0xff]   ;;  %2238 = vrot.lane.b32.xlu1 %v8257_v21, %s7537_s15  ;;  %v10632_v38 = vld [vmem:[#allocation28_spill] sm:$0xff] }
  0xeb   : > { %v2073_v29 = vrot.slane %v10627_v14, 1  ;;  %v2090_v60 = vrot.slane %v2088_v2, 1  ;;  %v2593_v19 = vshrl.u32 %v10629_v47, 16  ;;  %v1182_v44 = vsel %vm7781_vm9, %v981_v42, %v1181_v24  ;;  %v10630_v57 = vld [vmem:[#allocation27_spill] sm:$0xff]  ;;  %7092 = vmatprep.subr.bf16.mxu0 %v7346_v10 }
  0xec   : > { %v989_v43 = vor.u32 %v987_v50, %v986_v17  ;;  %v991_v14 = vrot.slane %v986_v17, 4  ;;  %v1010_v37 = vshrl.u32 %v10630_v57, 16  ;;  %v2078_v0 = vrot.slane %v2076_v48, 1  ;;  %1183 = vst [vmem:[#allocation2 + $0x9c] sm:$0xf] %v1182_v44  ;;  %2886 = vrot.lane.b32.xlu0 %v8247_v32, %s7536_s21  ;;  %7093 = vmatpush3.bf16.msra.mxu0 %v7346_v10 }
  0xed   : > { %v2074_v41 = vor.u32 %v2073_v29, %v2069_v20  ;;  %v10631_v15 = vshll.u32 %v10629_v47, 16  ;;  %v1013_v31 = vshll.u32 %v10630_v57, 16  ;;  %v1018_v50 = vshrl.u32 %v10632_v38, 16  ;;  %v10633_v29 = vld [vmem:[#allocation24_spill] sm:$0xff] }
  0xee   : > { %v990_v2 = vsel %vm7775_vm8, %v982_v23, %v989_v43  ;;  %v1186_v18 = vsel %vm7789_vm10, %v991_v14, %v1185_v62  ;;  %v1012_v33 = vrot.slane %v1010_v37, 7  ;;  %v1566_v21 = vsel %vm1530_vm2, %v8285_v54, %v8281_v58  ;;  %v1195_v48 = vld [vmem:[#allocation2 + $0xb4] sm:$0xf]  ;;  %2750 = vrot.lane.b32.xlu1 %v8273_v1, %s7538_s22  ;;  %v1199_v62 = vld [vmem:[#allocation2 + $0xbc] sm:$0x1] }
  0xef   : > { %v2597_v22 = vrot.slane %v10631_v15, 1  ;;  %v2566_v20 = vrot.slane %v2564_v63, 1  ;;  %v2600_v46 = vshll.u32 %v10633_v29, 16  ;;  %1184 = vst.msk [vmem:[#allocation2 + $0xa0] sm:$0xf] %vm327_vm0, %v990_v2  ;;  %v1021_v24 = vshll.u32 %v10632_v38, 16 }
  0xf0   : > { %1187 = vst [vmem:[#allocation2 + $0xa4] sm:$0x1] %v1186_v18  ;;  %v2055_v42 = vsel %vm1530_vm2, %v8287_v52, %v8289_v7  ;;  %v1015_v23 = vor.u32 %v1013_v31, %v1012_v33  ;;  %v1016_v17 = vrot.slane %v1012_v33, 4  ;;  %v1020_v32 = vrot.slane %v1018_v50, 7  ;;  %1864 = vrot.lane.b32.xlu0 %v8263_v27, %s7532_s17  ;;  %v1160_v37 = vld [vmem:[#allocation2 + $0x78] sm:$0xf] }
  0xf1   : > { %v1578_v58 = vsel %vm1530_vm2, %v1573_v45, %v1577_v59  ;;  %v8360_v54 = vsel %vm1530_vm2, %v2562_v39, %v2566_v20  ;;  %v2091_v63 = vsel %vm1530_vm2, %v2086_v4, %v2090_v60  ;;  %v2598_v47 = vor.u32 %v2597_v22, %v2593_v19  ;;  %v10634_v4 = vld [vmem:[#allocation8_spill] sm:$0xff]  ;;  %v10636_v15 = vld [vmem:[#allocation21_spill] sm:$0xff]  ;;  %v10637_v38 = vld [vmem:[#allocation10_spill] sm:$0xff] }
  0xf2   : > { %v8364_v43 = vsel %vm1530_vm2, %v2074_v41, %v2078_v0  ;;  %v1023_v52 = vor.u32 %v1021_v24, %v1020_v32  ;;  %v1025_v7 = vrot.slane %v1020_v32, 4  ;;  %v1196_v10 = vsel %vm7781_vm9, %v1015_v23, %v1195_v48  ;;  %1727 = vrot.lane.b32.xlu1 %v1566_v21, %s7531_s16  ;;  %v1164_v21 = vld [vmem:[#allocation2 + $0x80] sm:$0x1] }
  0xf3   : > { %v2602_v1 = vrot.slane %v2600_v46, 1  ;;  %v1582_v59 = vshll.u32 %v8170_v61, 16  ;;  %1197 = vst [vmem:[#allocation2 + $0xb4] sm:$0xf] %v1196_v10  ;;  %v925_v39 = vshrl.u32 %v8146_v9, 16  ;;  %v928_v45 = vshll.u32 %v8146_v9, 16 }
  0xf4   : > { %v2581_v60 = vshrl.u32 %v10634_v4, 16  ;;  %v1024_v19 = vsel %vm7775_vm8, %v1016_v17, %v1023_v52  ;;  %v1200_v14 = vsel %vm7789_vm10, %v1025_v7, %v1199_v62  ;;  %v933_v44 = vshrl.u32 %v8165_v11, 16  ;;  %2376 = vrot.lane.b32.xlu0 %v8279_v49, %s7535_s20  ;;  %v10639_v62 = vld [vmem:[#allocation23_spill] sm:$0xff] }
  0xf5   : > { %v10635_v27 = vshll.u32 %v10634_v4, 16  ;;  %1198 = vst.msk [vmem:[#allocation2 + $0xb8] sm:$0xf] %vm327_vm0, %v1024_v19  ;;  %1201 = vst [vmem:[#allocation2 + $0xbc] sm:$0x1] %v1200_v14  ;;  %v1594_v9 = vshll.u32 %v8152_v16, 16 }
  0xf6   : > { %v927_v41 = vrot.slane %v925_v39, 7  ;;  %v936_v0 = vshll.u32 %v8165_v11, 16  ;;  %v2588_v22 = vshll.u32 %v10636_v15, 16  ;;  %v1580_v31 = vshrl.u32 %v8170_v61, 16  ;;  %1729 = vrot.lane.b32.xlu1 %v1578_v58, %s7531_s16 }
  0xf7   : > { %v2585_v57 = vrot.slane %v10635_v27, 1  ;;  %v1587_v2 = vshll.u32 %v8137_v34, 16  ;;  %v935_v18 = vrot.slane %v933_v44, 7  ;;  %v1584_v33 = vrot.slane %v1582_v59, 1  ;;  %v1174_v44 = vld [vmem:[#allocation2 + $0x90] sm:$0xf] }
  0xf8   : > { %v2093_v50 = vshrl.u32 %v10637_v38, 16  ;;  %v930_v20 = vor.u32 %v928_v45, %v927_v41  ;;  %v931_v29 = vrot.slane %v927_v41, 4  ;;  %v10638_v46 = vshll.u32 %v10637_v38, 16  ;;  %2236 = vrot.lane.b32.xlu0 %v2055_v42, %s7537_s15  ;;  %v10640_v41 = vld [vmem:[#allocation12_spill] sm:$0xff] }
  0xf9   : > { %v2100_v11 = vshll.u32 %v8161_v55, 16  ;;  %v938_v24 = vor.u32 %v936_v0, %v935_v18  ;;  %v940_v23 = vrot.slane %v935_v18, 4  ;;  %v1592_v34 = vshrl.u32 %v8152_v16, 16 }
  0xfa   : > { %v2097_v48 = vrot.slane %v10638_v46, 1  ;;  %v1596_v17 = vrot.slane %v1594_v9, 1  ;;  %v1161_v49 = vsel %vm7781_vm9, %v930_v20, %v1160_v37  ;;  %v959_v32 = vshrl.u32 %v8176_v6, 16  ;;  %2242 = vrot.lane.b32.xlu1 %v2091_v63, %s7537_s15  ;;  %v1178_v9 = vld [vmem:[#allocation2 + $0x98] sm:$0x1] }
  0xfb   : > { %v1599_v52 = vshll.u32 %v10639_v62, 16  ;;  %v939_v7 = vsel %vm7775_vm8, %v931_v29, %v938_v24  ;;  %1162 = vst [vmem:[#allocation2 + $0x78] sm:$0xf] %v1161_v49  ;;  %v1165_v55 = vsel %vm7789_vm10, %v940_v23, %v1164_v21  ;;  %v962_v10 = vshll.u32 %v8176_v6, 16 }
  0xfc   : > { %v2603_v58 = vsel %vm1530_vm2, %v2598_v47, %v2602_v1  ;;  %v2586_v59 = vor.u32 %v2585_v57, %v2581_v60  ;;  %1163 = vst.msk [vmem:[#allocation2 + $0x7c] sm:$0xf] %vm327_vm0, %v939_v7  ;;  %1166 = vst [vmem:[#allocation2 + $0x80] sm:$0x1] %v1165_v55  ;;  %v961_v39 = vrot.slane %v959_v32, 7  ;;  %v967_v45 = vshrl.u32 %v8178_v53, 16  ;;  %2748 = vrot.lane.b32.xlu0 %v8360_v54, %s7538_s22 }
  0xfd   : > { %v2590_v4 = vrot.slane %v2588_v22, 1  ;;  %v1585_v19 = vor.u32 %v1584_v33, %v1580_v31  ;;  %v1589_v14 = vrot.slane %v1587_v2, 1  ;;  %v970_v27 = vshll.u32 %v8178_v53, 16  ;;  %v10642_v2 = vld [vmem:[#allocation11_spill] sm:$0xff]  ;;  %v10643_v33 = vld [vmem:[#allocation25_spill] sm:$0xff] }
  0xfe   : > { %v2098_v6 = vor.u32 %v2097_v48, %v2093_v50  ;;  %v964_v42 = vor.u32 %v962_v10, %v961_v39  ;;  %v965_v37 = vrot.slane %v961_v39, 4  ;;  %v969_v47 = vrot.slane %v967_v45, 7  ;;  %2754 = vrot.lane.b32.xlu1 %v2603_v58, %s7538_s22  ;;  %v1188_v32 = vld [vmem:[#allocation2 + $0xa8] sm:$0xf]  ;;  %v1192_v55 = vld [vmem:[#allocation2 + $0xb0] sm:$0x1] }
  0xff   : > { %v2102_v1 = vrot.slane %v2100_v11, 1  ;;  %v1597_v60 = vor.u32 %v1596_v17, %v1592_v34  ;;  %v1601_v57 = vrot.slane %v1599_v52, 1  ;;  %v2605_v0 = vshrl.u32 %v10640_v41, 16 }
 0x100   : > { %v10641_v15 = vshll.u32 %v10640_v41, 16  ;;  %v972_v31 = vor.u32 %v970_v27, %v969_v47  ;;  %v974_v53 = vrot.slane %v969_v47, 4  ;;  %v1175_v63 = vsel %vm7781_vm9, %v964_v42, %v1174_v44  ;;  %2240 = vrot.lane.b32.xlu0 %v8364_v43, %s7537_s15 }
 0x101   : > { %v2105_v18 = vshrl.u32 %v10642_v2, 16  ;;  %v2112_v38 = vshll.u32 %v10643_v33, 16  ;;  %1176 = vst [vmem:[#allocation2 + $0x90] sm:$0xf] %v1175_v63  ;;  %v993_v50 = vshrl.u32 %v8188_v36, 16  ;;  %v996_v21 = vshll.u32 %v8188_v36, 16 }
 0x102   : > { %v2609_v22 = vrot.slane %v10641_v15, 1  ;;  %v10644_v54 = vshll.u32 %v10642_v2, 16  ;;  %v973_v29 = vsel %vm7775_vm8, %v965_v37, %v972_v31  ;;  %v1179_v46 = vsel %vm7789_vm10, %v974_v53, %v1178_v9  ;;  %v8463_v53 = vld [vmem:[#allocation2 + $0x68] ss:$0 sps:$4 sm:$0x11]  }
 0x103   : > { %v1001_v48 = vshrl.u32 %v8208_v13, 16  ;;  %v2591_v11 = vsel %vm1530_vm2, %v2586_v59, %v2590_v4  ;;  %v1590_v24 = vsel %vm1530_vm2, %v1585_v19, %v1589_v14  ;;  %1177 = vst.msk [vmem:[#allocation2 + $0x94] sm:$0xf] %vm327_vm0, %v973_v29  ;;  %1180 = vst [vmem:[#allocation2 + $0x98] sm:$0x1] %v1179_v46  ;;  %v995_v36 = vrot.slane %v993_v50, 7 }
 0x104   : > { %v2109_v20 = vrot.slane %v10644_v54, 1  ;;  %v1004_v23 = vshll.u32 %v8208_v13, 16  ;;  %v2103_v34 = vsel %vm1530_vm2, %v2098_v6, %v2102_v1  ;;  %v1602_v17 = vsel %vm1530_vm2, %v1597_v60, %v1601_v57  ;;  %1731 = vrot.lane.b32.xlu1 %v1590_v24, %s7531_s16  ;;  %v10645_v13 = vld [vmem:[#allocation13_spill] sm:$0xff]  ;;  %2752 = vrot.lane.b32.xlu0 %v2591_v11, %s7538_s22  ;;  %v1202_v1 = vld [vmem:[#allocation2 + $0xc0] sm:$0xf] }
 0x105   : > { %v2612_v49 = vshll.u32 %v8172_v40, 16  ;;  %v1003_v62 = vrot.slane %v1001_v48, 7  ;;  %v2610_v52 = vor.u32 %v2609_v22, %v2605_v0  ;;  %v2114_v7 = vrot.slane %v2112_v38, 1  ;;  %v1206_v54 = vld [vmem:[#allocation2 + $0xc8] sm:$0x1] }
 0x106   : > { %v998_v10 = vor.u32 %v996_v21, %v995_v36  ;;  %v999_v58 = vrot.slane %v995_v36, 4  ;;  %v2110_v59 = vor.u32 %v2109_v20, %v2105_v18  ;;  %v2617_v39 = vshrl.u32 %v10645_v13, 16  ;;  %v1392_v48 = vld [vmem:[#allocation2 + $0x60] sm:$0xe] }
 0x107   : > { %v1006_v45 = vor.u32 %v1004_v23, %v1003_v62  ;;  %v1008_v43 = vrot.slane %v1003_v62, 4  ;;  %v10646_v4 = vshll.u32 %v10645_v13, 16  ;;  %v2624_v14 = vshll.u32 %v8174_v30, 16  ;;  %v10647_v30 = vld [vmem:[#allocation15_spill] sm:$0xff]  ;;  %v10650_v23 = vld [vmem:[#allocation16_spill] sm:$0xff] }
 0x108   : > { %v1189_v40 = vsel %vm7781_vm9, %v998_v10, %v1188_v32  ;;  %v1027_v44 = vshrl.u32 %v8223_v51, 16  ;;  %v1606_v9 = vshll.u32 %v8242_v35, 16  ;;  %v1030_v42 = vshll.u32 %v8223_v51, 16  ;;  %1733 = vrot.lane.b32.xlu1 %v1602_v17, %s7531_s16  ;;  %2244 = vrot.lane.b32.xlu0 %v2103_v34, %s7537_s15  ;;  %v8474_v17 = vpop.permute.xlu0 %1723 }
 0x109   : > { %v2621_v19 = vrot.slane %v10646_v4, 1  ;;  %v1007_v27 = vsel %vm7775_vm8, %v999_v58, %v1006_v45  ;;  %1190 = vst [vmem:[#allocation2 + $0xa8] sm:$0xf] %v1189_v40  ;;  %v1193_v6 = vsel %vm7789_vm10, %v1008_v43, %v1192_v55  ;;  %v2614_v37 = vrot.slane %v2612_v49, 1  ;;  %v7516_v43 = vld [vmem:[#allocation2 + $0x64] sm:$0xf] }
 0x10a   : > { %v2117_v47 = vshrl.u32 %v10647_v30, 16  ;;  %1191 = vst.msk [vmem:[#allocation2 + $0xac] sm:$0xf] %vm327_vm0, %v1007_v27  ;;  %1194 = vst [vmem:[#allocation2 + $0xb0] sm:$0x1] %v1193_v6  ;;  %v1029_v60 = vrot.slane %v1027_v44, 7  ;;  %v2115_v41 = vsel %vm1530_vm2, %v2110_v59, %v2114_v7  ;;  %v6767_v4 = vcombine.low %v1392_v48, %v7516_v43 }
 0x10b   : > { %v1035_v57 = vshrl.u32 %v8225_v25, 16  ;;  %v10648_v0 = vshll.u32 %v10647_v30, 16  ;;  %v2124_v22 = vshll.u32 %v8221_v28, 16  ;;  %v1038_v51 = vshll.u32 %v8225_v25, 16  ;;  %v10649_v28 = vld [vmem:[#allocation31_spill] sm:$0xff] }
 0x10c   : > { %v2622_v31 = vor.u32 %v2621_v19, %v2617_v39  ;;  %v1032_v63 = vor.u32 %v1030_v42, %v1029_v60  ;;  %v1033_v2 = vrot.slane %v1029_v60, 4  ;;  %v2626_v33 = vrot.slane %v2624_v14, 1  ;;  %2246 = vrot.lane.b32.xlu1 %v2115_v41, %s7537_s15  ;;  %v10653_v39 = vld [vmem:[#allocation29_spill] sm:$0xff]  ;;  %v1226_v19 = vld [vmem:[#allocation2 + $0x64] sm:$0xf] }
 0x10d   : > { %v2121_v15 = vrot.slane %v10648_v0, 1  ;;  %v1037_v18 = vrot.slane %v1035_v57, 7  ;;  %v1604_v38 = vshrl.u32 %v8242_v35, 16  ;;  %v1608_v50 = vrot.slane %v1606_v9, 1  ;;  %v1393_v14 = vld [vmem:[#allocation2 + $0x6c] sm:$0xe] }
 0x10e   : > { %v1611_v21 = vshll.u32 %v8206_v5, 16  ;;  %v1203_v25 = vsel %vm7781_vm9, %v1032_v63, %v1202_v1  ;;  %v1618_v46 = vshll.u32 %v10649_v28, 16  ;;  %v2615_v11 = vsel %vm1530_vm2, %v2610_v52, %v2614_v37  ;;  %v10652_v52 = vld [vmem:[#allocation17_spill] sm:$0xff]  ;;  %v7297_v6 = vld [vmem:[#allocation2 + $0x74] ss:$0 sps:$4 sm:$0x11]   ;;  %v8495_v1 = vpop.permute.xlu0 %1852 }
 0x10f   : > { %v1040_v20 = vor.u32 %v1038_v51, %v1037_v18  ;;  %v1042_v29 = vrot.slane %v1037_v18, 4  ;;  %v2122_v24 = vor.u32 %v2121_v15, %v2117_v47  ;;  %v2126_v36 = vrot.slane %v2124_v22, 1  ;;  %1204 = vst [vmem:[#allocation2 + $0xc0] sm:$0xf] %v1203_v25  ;;  %2756 = vrot.lane.b32.xlu0 %v2615_v11, %s7538_s22  ;;  %v10654_v9 = vld [vmem:[#allocation18_spill] sm:$0xff] }
 0x110   : > { %v2629_v34 = vshrl.u32 %v10650_v23, 16  ;;  %v10651_v5 = vshll.u32 %v10650_v23, 16  ;;  %v2636_v56 = vshll.u32 %v8463_v53, 16  ;;  %v2131_v7 = vshll.u32 %v10652_v52, 16  ;;  %v10655_v41 = vld [vmem:[#allocation30_spill] sm:$0xff] }
 0x111   : > { %v1041_v32 = vsel %vm7775_vm8, %v1033_v2, %v1040_v20  ;;  %v1207_v62 = vsel %vm7789_vm10, %v1042_v29, %v1206_v54  ;;  %v1609_v55 = vor.u32 %v1608_v50, %v1604_v38  ;;  %v1613_v10 = vrot.slane %v1611_v21, 1  ;;  %v1227_v22 = vld [vmem:[#allocation2 + $0x6c] sm:$0xf]  ;;  %v8502_v63 = vld [vmem:[#allocation2 + $0x70] sm:$0xf] }
 0x112   : > { %v2633_v49 = vrot.slane %v10651_v5, 1  ;;  %1205 = vst.msk [vmem:[#allocation2 + $0xc4] sm:$0xf] %vm327_vm0, %v1041_v32  ;;  %1208 = vst [vmem:[#allocation2 + $0xc8] sm:$0x1] %v1207_v62  ;;  %v2627_v58 = vsel %vm1530_vm2, %v2622_v31, %v2626_v33  ;;  %v1616_v59 = vshrl.u32 %v10649_v28, 16  ;;  %v2127_v40 = vsel %vm1530_vm2, %v2122_v24, %v2126_v36 }
 0x113   : > { %v1620_v13 = vrot.slane %v1618_v46, 1  ;;  %v1623_v45 = vshll.u32 %v10653_v39, 16  ;;  %2758 = vrot.lane.b32.xlu1 %v2627_v58, %s7538_s22  ;;  %v2638_v27 = vrot.slane %v2636_v56, 1  ;;  %v2643_v42 = vshll.u32 %v10654_v9, 16  ;;  %2248 = vrot.lane.b32.xlu0 %v2127_v40, %s7537_s15  ;;  %v7517_v2 = vld [vmem:[#allocation2 + $0x70] sm:$0xf] }
 0x114   : > { %v2634_v44 = vor.u32 %v2633_v49, %v2629_v34  ;;  %v1614_v37 = vsel %vm1530_vm2, %v1609_v55, %v1613_v10  ;;  %v2129_v30 = vshrl.u32 %v10652_v52, 16  ;;  %v2133_v47 = vrot.slane %v2131_v7, 1  ;;  %v1265_v38 = vld [vmem:[#allocation2 + $0x60] sm:$0xe]  ;;  %v1289_v50 = vld [vmem:[#allocation2 + $0x6c] sm:$0xf]  ;;  %v8509_v46 = vpop.permute.xlu0 %1964 }
 0x115   : > { %v1621_v60 = vor.u32 %v1620_v13, %v1616_v59  ;;  %v1625_v57 = vrot.slane %v1623_v45, 1  ;;  %v2136_v0 = vshll.u32 %v10655_v41, 16  ;;  %v8498_v15 = vcombine.low %v1225_v12, %v1226_v19  ;;  %v8507_v25 = vld [vmem:[#allocation2 + $0x70] sm:$0xf] }
 0x116   : > { %v2846_v51 = vrot.slane %v6767_v4, 1  ;;  %v2847_v31 = vrot.slane %v8463_v53, 1  ;;  %v6768_v18 = vcombine.low %v1393_v14, %v7517_v2  ;;  %v2639_v33 = vsel %vm1530_vm2, %v2634_v44, %v2638_v27  ;;  %v7299_v11 = vld [vmem:[#allocation2 + $0x68] ss:$0 sps:$4 sm:$0x11]   ;;  %v8522_v62 = vpop.permute.xlu1 %1966 }
 0x117   : > { %10656 = vst [vmem:[#allocation26_spill] sm:$0xff] %v8498_v15  ;;  %1735 = vrot.lane.b32.xlu1 %v1614_v37, %s7531_s16  ;;  %2760 = vrot.lane.b32.xlu0 %v2639_v33, %s7538_s22  ;;  %v2134_v21 = vor.u32 %v2133_v47, %v2129_v30  ;;  %v2641_v54 = vshrl.u32 %v10654_v9, 16  ;;  %v2645_v20 = vrot.slane %v2643_v42, 1  ;;  %v2648_v29 = vshll.u32 %v7297_v6, 16  ;;  %v1329_v30 = vld [vmem:[#allocation2 + $0x6c] sm:$0xe] }
 0x118   : > { %v1626_v53 = vsel %vm1530_vm2, %v1621_v60, %v1625_v57  ;;  %v2138_v48 = vrot.slane %v2136_v0, 1  ;;  %v1630_v24 = vshll.u32 %v8498_v15, 16  ;;  %v8514_v36 = vcombine.low %v1227_v22, %v8502_v63  ;;  %v8518_v34 = vld [vmem:[#allocation2 + $0x74] ss:$0 sps:$4 sm:$0x11]   ;;  %v8527_v39 = vpop.permute.xlu0 %2476 }
 0x119   : > { %v2848_v23 = vsel %vm1803_vm3, %v2846_v51, %v2847_v31  ;;  %v2849_v5 = vrot.slane %v6768_v18, 1  ;;  %v2850_v49 = vrot.slane %v7297_v6, 1  ;;  %v6673_v56 = vcombine.low %v1265_v38, %v1226_v19  ;;  %v7303_v19 = vld [vmem:[#allocation2 + $0x74] ss:$0 sps:$4 sm:$0x11]  }
 0x11a   : > { %10657 = vst [vmem:[#allocation20_spill] sm:$0xff] %v8514_v36  ;;  %v6689_v32 = vcombine.low %v1289_v50, %v8507_v25  ;;  %v2646_v52 = vor.u32 %v2645_v20, %v2641_v54  ;;  %v2650_v7 = vrot.slane %v2648_v29, 1  ;;  %v1628_v55 = vshrl.u32 %v8498_v15, 16  ;;  %v8532_v14 = vpop.permute.xlu1 %2478  ;;  %v1266_v47 = vld [vmem:[#allocation2 + $0x6c] sm:$0xe] }
 0x11b   : > { %1737 = vrot.lane.b32.xlu1 %v1626_v53, %s7531_s16  ;;  %2888 = vrot.lane.b32.xlu0 %v2848_v23, %s7536_s21  ;;  %v2139_v10 = vsel %vm1530_vm2, %v2134_v21, %v2138_v48  ;;  %v1632_v58 = vrot.slane %v1630_v24, 1  ;;  %v1635_v59 = vshll.u32 %v7299_v11, 16  ;;  %v1642_v13 = vshll.u32 %v8514_v36, 16  ;;  %v1291_v60 = vld [vmem:[#allocation2 + $0x78] sm:$0xf] }
 0x11c   : > { %v2851_v45 = vsel %vm1803_vm3, %v2849_v5, %v2850_v49  ;;  %v1828_v43 = vrot.slane %v6673_v56, 1  ;;  %v1829_v4 = vrot.slane %v7299_v11, 1  ;;  %v2143_v12 = vshll.u32 %v6689_v32, 16  ;;  %v8537_v37 = vpop.permute.xlu0 %1968  ;;  %v8540_v57 = vld [vmem:[#allocation2 + $0x7c] sm:$0xf] }
 0x11d   : > { %v2651_v40 = vsel %vm1530_vm2, %v2646_v52, %v2650_v7  ;;  %v1647_v44 = vshll.u32 %v8518_v34, 16  ;;  %v1633_v27 = vor.u32 %v1632_v58, %v1628_v55  ;;  %v1637_v6 = vrot.slane %v1635_v59, 1  ;;  %v1354_v31 = vld [vmem:[#allocation2 + $0x78] sm:$0xf]  ;;  %v8546_v33 = vld [vmem:[#allocation2 + $0x7c] sm:$0xf] }
 0x11e   : > { %v1640_v9 = vshrl.u32 %v8514_v36, 16  ;;  %v1644_v42 = vrot.slane %v1642_v13, 1  ;;  %v1830_v41 = vsel %vm1803_vm3, %v1828_v43, %v1829_v4  ;;  %v2141_v0 = vshrl.u32 %v6689_v32, 16  ;;  %v8544_v2 = vpop.permute.xlu1 %1970  ;;  %v8561_v56 = vld [vmem:[#allocation2 + $0x80] ss:$0 sps:$4 sm:$0x11]  }
 0x11f   : > { %2250 = vrot.lane.b32.xlu1 %v2139_v10, %s7537_s15  ;;  %2890 = vrot.lane.b32.xlu0 %v2851_v45, %s7536_s21  ;;  %v2145_v22 = vrot.slane %v2143_v12, 1  ;;  %v2148_v51 = vshll.u32 %v7303_v19, 16  ;;  %v1649_v18 = vrot.slane %v1647_v44, 1  ;;  %v1638_v38 = vsel %vm1530_vm2, %v1633_v27, %v1637_v6  ;;  %v1356_v59 = vld [vmem:[#allocation2 + $0x84] sm:$0xf] }
 0x120   : > { %v1645_v50 = vor.u32 %v1644_v42, %v1640_v9  ;;  %v6674_v21 = vcombine.low %v1266_v47, %v8502_v63  ;;  %v6690_v54 = vcombine.low %v1291_v60, %v8540_v57  ;;  %v8551_v20 = vpop.permute.xlu0 %2480  ;;  %v6721_v29 = vcombine.low %v1329_v30, %v8507_v25  ;;  %v1357_v4 = vld [vmem:[#allocation2 + $0x88] sm:$0xf] }
 0x121   : > { %v2146_v53 = vor.u32 %v2145_v22, %v2141_v0  ;;  %v2150_v48 = vrot.slane %v2148_v51, 1  ;;  %v6737_v11 = vcombine.low %v1354_v31, %v8546_v33  ;;  %v1832_v63 = vrot.slane %v8518_v34, 1  ;;  %v1229_v51 = vld [vmem:[#allocation2 + $0x78] sm:$0xf]  ;;  %v1230_v31 = vld [vmem:[#allocation2 + $0x7c] sm:$0xf] }
 0x122   : > { %v8557_v24 = vpop.permute.xlu1 %2482  ;;  %v1650_v23 = vsel %vm1530_vm2, %v1645_v50, %v1649_v18  ;;  %v1831_v5 = vrot.slane %v6674_v21, 1  ;;  %v2155_v49 = vshll.u32 %v6690_v54, 16  ;;  %v2340_v7 = vrot.slane %v6721_v29, 1  ;;  %v1395_v21 = vld [vmem:[#allocation2 + $0x84] sm:$0xe] }
 0x123   : > { %2762 = vrot.lane.b32.xlu1 %v2651_v40, %s7538_s22  ;;  %1868 = vrot.lane.b32.xlu0 %v1830_v41, %s7532_s17  ;;  %v2151_v25 = vsel %vm1530_vm2, %v2146_v53, %v2150_v48  ;;  %v2341_v55 = vrot.slane %v7303_v19, 1  ;;  %v2655_v10 = vshll.u32 %v6737_v11, 16  ;;  %v2153_v13 = vshrl.u32 %v6690_v54, 16  ;;  %v1394_v40 = vld [vmem:[#allocation2 + $0x78] sm:$0xe] }
 0x124   : > { %v8563_v52 = vpop.permute.xlu0 %1972  ;;  %v1833_v34 = vsel %vm1803_vm3, %v1831_v5, %v1832_v63  ;;  %v2157_v45 = vrot.slane %v2155_v49, 1  ;;  %v2160_v43 = vshll.u32 %v8561_v56, 16  ;;  %v1330_v19 = vld [vmem:[#allocation2 + $0x78] sm:$0xe]  ;;  %v2653_v27 = vshrl.u32 %v6737_v11, 16 }
 0x125   : > { %v2342_v44 = vsel %vm1803_vm3, %v2340_v7, %v2341_v55  ;;  %v2657_v6 = vrot.slane %v2655_v10, 1  ;;  %v6738_v30 = vcombine.low %v1356_v59, %v1357_v4  ;;  %v6722_v47 = vcombine.low %v1330_v19, %v8540_v57  ;;  %v7313_v29 = vld [vmem:[#allocation2 + $0x8c] ss:$0 sps:$4 sm:$0x11]   ;;  %v1231_v49 = vld [vmem:[#allocation2 + $0x84] sm:$0xf] }
 0x126   : > { %v8568_v58 = vpop.permute.xlu1 %1974  ;;  %v2158_v60 = vor.u32 %v2157_v45, %v2153_v13  ;;  %v2162_v41 = vrot.slane %v2160_v43, 1  ;;  %v6769_v22 = vcombine.low %v1394_v40, %v8546_v33  ;;  %v8589_v5 = vcombine.low %v1229_v51, %v1230_v31  ;;  %v1267_v55 = vld [vmem:[#allocation2 + $0x78] sm:$0xe]  ;;  %v1293_v10 = vld [vmem:[#allocation2 + $0x84] sm:$0xf] }
 0x127   : > { %1739 = vrot.lane.b32.xlu1 %v1638_v38, %s7531_s16  ;;  %1980 = vrot.lane.b32.xlu0 %v6689_v32, %s7533_s18  ;;  %v7311_v32 = vld [vmem:[#allocation2 + $0x80] ss:$0 sps:$4 sm:$0x11]   ;;  %v2658_v18 = vor.u32 %v2657_v6, %v2653_v27  ;;  %v2667_v53 = vshll.u32 %v6738_v30, 16  ;;  %v2343_v48 = vrot.slane %v6722_v47, 1  ;;  %v6770_v7 = vcombine.low %v1395_v21, %v1357_v4 }
 0x128   : > { %v8572_v12 = vpop.permute.xlu0 %2484  ;;  %v2660_v9 = vshll.u32 %v7311_v32, 16  ;;  %v2163_v57 = vsel %vm1530_vm2, %v2158_v60, %v2162_v41  ;;  %10660 = vst [vmem:[#allocation7_spill] sm:$0xff] %v8589_v5  ;;  %v2853_v63 = vrot.slane %v7311_v32, 1  ;;  %v8597_v59 = vld [vmem:[#allocation2 + $0x88] sm:$0xf]  ;;  %v2665_v13 = vshrl.u32 %v6738_v30, 16 }
 0x129   : > { %v2669_v45 = vrot.slane %v2667_v53, 1  ;;  %v2672_v43 = vshll.u32 %v7313_v29, 16  ;;  %v1654_v40 = vshll.u32 %v8589_v5, 16  ;;  %v2855_v27 = vrot.slane %v6770_v7, 1 }
 0x12a   : > { %v8577_v42 = vpop.permute.xlu1 %2486  ;;  %v2662_v38 = vrot.slane %v2660_v9, 1  ;;  %v2856_v6 = vrot.slane %v7313_v29, 1  ;;  %v6675_v9 = vcombine.low %v1267_v55, %v1230_v31  ;;  %v6691_v47 = vcombine.low %v1293_v10, %v8597_v59  ;;  %v7349_v31 = vld [vmem:[%s10516_s2 + $0x30] sm:$0x3f]  }
 0x12b   : > { %1741 = vrot.lane.b32.xlu1 %v1650_v23, %s7531_s16  ;;  %2252 = vrot.lane.b32.xlu0 %v2151_v25, %s7537_s15  ;;  %v2344_v23 = vrot.slane %v8561_v56, 1  ;;  %v2670_v41 = vor.u32 %v2669_v45, %v2665_v13  ;;  %v1656_v21 = vrot.slane %v1654_v40, 1  ;;  %v3262_v45 = vsel %vm3260_vm11, %v7349_v31, 0  ;;  %v8637_v40 = vld [vmem:[#allocation2 + $0x94] sm:$0xf] }
 0x12c   : > { %v8580_v0 = vpop.permute.xlu0 %1976  ;;  %v2663_v25 = vsel %vm1530_vm2, %v2658_v18, %v2662_v38  ;;  %v8615_v18 = vld [vmem:[#allocation2 + $0x8c] ss:$0 sps:$4 sm:$0x11]   ;;  %v1652_v38 = vshrl.u32 %v8589_v5, 16  ;;  %7170 = vmatprep.subr.msk.bf16.mxu0 %vm3260_vm11, %v7349_v31  ;;  %vm3040_vm0 = vcmask 490496   ;;  %vm3139_vm9 = vcmask 785408  }
 0x12d   : > { %10658 = vst [vmem:[#allocation6_spill] sm:$0xff] %v8580_v0  ;;  %v2345_v32 = vsel %vm1803_vm3, %v2343_v48, %v2344_v23  ;;  %v1834_v48 = vrot.slane %v6675_v9, 1  ;;  %v1671_v55 = vshll.u32 %v8615_v18, 16  ;;  %7095 = vmatpush3.bf16.msra.mxu0 %v3262_v45  ;;  %vm3227_vm10 = vcmask 883712  }
 0x12e   : > { %v8585_v50 = vpop.permute.xlu1 %1978  ;;  %v1657_v10 = vor.u32 %v1656_v21, %v1652_v38  ;;  %v1358_v38 = vld [vmem:[#allocation2 + $0x90] sm:$0xf]  ;;  %v8644_v21 = vld [vmem:[#allocation2 + $0x94] sm:$0xf]  ;;  %vm3535_vm11 = vcmask 60416   ;;  %vm3538_vm4 = vcmask 57344  }
 0x12f   : > { %1870 = vrot.lane.b32.xlu1 %v1833_v34, %s7532_s17  ;;  %2380 = vrot.lane.b32.xlu0 %v2342_v44, %s7535_s20  ;;  %10659 = vst [vmem:[#allocation14_spill] sm:$0xff] %v8585_v50  ;;  %v7317_v34 = vld [vmem:[#allocation2 + $0x80] ss:$0 sps:$4 sm:$0x11]  }
 0x130   : > { %v8591_v33 = vpop.permute.xlu0 %2488  ;;  %v1659_v51 = vshll.u32 %v7317_v34, 16  ;;  %v1835_v23 = vrot.slane %v7317_v34, 1 }
 0x131   : > { %10661 = vst [vmem:[#allocation19_spill] sm:$0xff] %v8591_v33  ;;  %v8713_v33 = vld [vmem:[#allocation2 + $0xa4] ss:$0 sps:$4 sm:$0x11]  }
 0x132   : > { %v8600_v56 = vpop.permute.xlu1 %2490  ;;  %v1661_v7 = vrot.slane %v1659_v51, 1  ;;  %v1673_v51 = vrot.slane %v1671_v55, 1  ;;  %v6739_v55 = vcombine.low %v1358_v38, %v8644_v21 }
 0x133   : > { %1982 = vrot.lane.b32.xlu1 %v6690_v54, %s7533_s18  ;;  %2492 = vrot.lane.b32.xlu0 %v6737_v11, %s7534_s19  ;;  %v2852_v54 = vrot.slane %v6769_v22, 1  ;;  %v8594_v11 = vld [vmem:[#allocation2 + $0x88] sm:$0xf]  ;;  %10662 = vst [vmem:[#allocation9_spill] sm:$0xff] %v8600_v56  ;;  %v2674_v22 = vrot.slane %v2672_v43, 1 }
 0x134   : > { %v8605_v19 = vcombine.low %v1231_v49, %v8594_v11  ;;  %v8607_v4 = vpop.permute.xlu0 %2364  ;;  %v1268_v43 = vld [vmem:[#allocation2 + $0x84] sm:$0xe] }
 0x135   : > { %v2854_v44 = vsel %vm1803_vm3, %v2852_v54, %v2853_v63  ;;  %v8626_v54 = vld [vmem:[#allocation2 + $0x8c] ss:$0 sps:$4 sm:$0x11]   ;;  %v2167_v63 = vshll.u32 %v6691_v47, 16 }
 0x136   : > { %10663 = vst [vmem:[#allocation27_spill] sm:$0xff] %v8605_v19  ;;  %v8613_v60 = vpop.permute.xlu1 %1854  ;;  %v1666_v53 = vshll.u32 %v8605_v19, 16  ;;  %v2172_v9 = vshll.u32 %v8626_v54, 16 }
 0x137   : > { %2254 = vrot.lane.b32.xlu1 %v2163_v57, %s7537_s15  ;;  %2764 = vrot.lane.b32.xlu0 %v2663_v25, %s7538_s22  ;;  %v2857_v57 = vsel %vm1803_vm3, %v2855_v27, %v2856_v6  ;;  %v2675_v25 = vsel %vm1530_vm2, %v2670_v41, %v2674_v22  ;;  %v2165_v27 = vshrl.u32 %v6691_v47, 16  ;;  %v2169_v6 = vrot.slane %v2167_v63, 1  ;;  %v1331_v41 = vld [vmem:[#allocation2 + $0x84] sm:$0xe] }
 0x138   : > { %v8622_v29 = vpop.permute.xlu0 %2876  ;;  %v1668_v13 = vrot.slane %v1666_v53, 1  ;;  %v1662_v53 = vsel %vm1530_vm2, %v1657_v10, %v1661_v7  ;;  %v6723_v45 = vcombine.low %v1331_v41, %v8597_v59 }
 0x139   : > { %v2170_v63 = vor.u32 %v2169_v6, %v2165_v27  ;;  %v2347_v27 = vrot.slane %v8626_v54, 1  ;;  %v8664_v6 = vld [vmem:[#allocation2 + $0x98] ss:$0 sps:$4 sm:$0x11]  }
 0x13a   : > { %v8629_v49 = vpop.permute.xlu1 %2366  ;;  %v2346_v59 = vrot.slane %v6723_v45, 1 }
 0x13b   : > { %2382 = vrot.lane.b32.xlu1 %v2345_v32, %s7535_s20  ;;  %2892 = vrot.lane.b32.xlu0 %v2854_v44, %s7536_s21  ;;  %v1295_v32 = vld [vmem:[#allocation2 + $0x90] sm:$0xf]  ;;  %v1836_v44 = vsel %vm1803_vm3, %v1834_v48, %v1835_v23 }
 0x13c   : > { %v8634_v34 = vpop.permute.xlu0 %2878  ;;  %v6692_v48 = vcombine.low %v1295_v32, %v8637_v40  ;;  %v2348_v54 = vsel %vm1803_vm3, %v2346_v59, %v2347_v27  ;;  %v1234_v59 = vld [vmem:[#allocation2 + $0x94] sm:$0xf] }
 0x13e   : > { %v2177_v41 = vshrl.u32 %v6692_v48, 16 }
 0x13f   : > { %2494 = vrot.lane.b32.xlu1 %v6738_v30, %s7534_s19  ;;  %2894 = vrot.lane.b32.xlu0 %v2857_v57, %s7536_s21  ;;  %v1664_v30 = vshrl.u32 %v8605_v19, 16  ;;  %v6676_v57 = vcombine.low %v1268_v43, %v8594_v11  ;;  %v1838_v11 = vrot.slane %v8615_v18, 1 }
 0x140   : > { %v8642_v22 = vpop.permute.xlu1 %1858 }
 0x141   : > { %v1669_v31 = vor.u32 %v1668_v13, %v1664_v30  ;;  %v1837_v10 = vrot.slane %v6676_v57, 1  ;;  %v7328_v30 = vld [vmem:[#allocation2 + $0x98] ss:$0 sps:$4 sm:$0x11]   ;;  %v2179_v13 = vshll.u32 %v6692_v48, 16 }
 0x142   : > { %v8649_v23 = vpop.permute.xlu0 %1856  ;;  %v2184_v38 = vshll.u32 %v7328_v30, 16  ;;  %v1361_v57 = vld [vmem:[#allocation2 + $0xa0] sm:$0xf]  ;;  %v2350_v56 = vrot.slane %v7328_v30, 1 }
 0x143   : > { %2766 = vrot.lane.b32.xlu1 %v2675_v25, %s7538_s22  ;;  %1872 = vrot.lane.b32.xlu0 %v1836_v44, %s7532_s17  ;;  %v2174_v25 = vrot.slane %v2172_v9, 1  ;;  %v1674_v7 = vsel %vm1530_vm2, %v1669_v31, %v1673_v51  ;;  %v1839_v18 = vsel %vm1803_vm3, %v1837_v10, %v1838_v11  ;;  %v2181_v51 = vrot.slane %v2179_v13, 1  ;;  %v1396_v10 = vld [vmem:[#allocation2 + $0x90] sm:$0xe] }
 0x144   : > { %v8655_v44 = vpop.permute.xlu1 %2370  ;;  %v2186_v3 = vrot.slane %v2184_v38, 1  ;;  %v6771_v36 = vcombine.low %v1396_v10, %v8644_v21  ;;  %v1297_v10 = vld [vmem:[#allocation2 + $0x9c] sm:$0xf] }
 0x145   : > { %v2175_v32 = vsel %vm1530_vm2, %v2170_v63, %v2174_v25  ;;  %v1360_v63 = vld [vmem:[#allocation2 + $0x9c] sm:$0xf]  ;;  %v2677_v25 = vshrl.u32 %v6739_v55, 16  ;;  %v2182_v13 = vor.u32 %v2181_v51, %v2177_v41  ;;  %v7333_v51 = vld [vmem:[#allocation2 + $0xa4] ss:$0 sps:$4 sm:$0x11]  }
 0x146   : > { %v8659_v43 = vpop.permute.xlu0 %2368  ;;  %v6740_v19 = vcombine.low %v1360_v63, %v1361_v57  ;;  %v1235_v63 = vld [vmem:[#allocation2 + $0x9c] sm:$0xf] }
 0x147   : > { %1743 = vrot.lane.b32.xlu1 %v1662_v53, %s7531_s16  ;;  %1984 = vrot.lane.b32.xlu0 %v6691_v47, %s7533_s18  ;;  %v2679_v47 = vshll.u32 %v6739_v55, 16  ;;  %v1332_v53 = vld [vmem:[#allocation2 + $0x90] sm:$0xe]  ;;  %v2187_v41 = vsel %vm1530_vm2, %v2182_v13, %v2186_v3  ;;  %v7338_v13 = vld [vmem:[#allocation2 + $0x98] ss:$0 sps:$4 sm:$0x11]  }
 0x148   : > { %v8667_v9 = vpop.permute.xlu1 %1862  ;;  %v6724_v11 = vcombine.low %v1332_v53, %v8637_v40  ;;  %v1397_v40 = vld [vmem:[#allocation2 + $0x9c] sm:$0xe]  ;;  %v2691_v53 = vshll.u32 %v6740_v19, 16 }
 0x149   : > { %v2681_v45 = vrot.slane %v2679_v47, 1  ;;  %v6772_v30 = vcombine.low %v1397_v40, %v1361_v57 }
 0x14a   : > { %v8670_v31 = vpop.permute.xlu0 %2880  ;;  %v2349_v15 = vrot.slane %v6724_v11, 1  ;;  %v2693_v50 = vrot.slane %v2691_v53, 1 }
 0x14b   : > { %1745 = vrot.lane.b32.xlu1 %v1674_v7, %s7531_s16  ;;  %2256 = vrot.lane.b32.xlu0 %v2175_v32, %s7537_s15  ;;  %v2684_v7 = vshll.u32 %v8664_v6, 16  ;;  %v2682_v27 = vor.u32 %v2681_v45, %v2677_v25  ;;  %v8692_v25 = vld [vmem:[#allocation2 + $0xa0] sm:$0xf]  ;;  %v2859_v45 = vrot.slane %v8664_v6, 1  ;;  %v2861_v40 = vrot.slane %v6772_v30, 1 }
 0x14c   : > { %v8676_v32 = vpop.permute.xlu1 %2374  ;;  %v2351_v11 = vsel %vm1803_vm3, %v2349_v15, %v2350_v56  ;;  %v2862_v15 = vrot.slane %v7333_v51, 1  ;;  %v8720_v30 = vld [vmem:[#allocation2 + $0xa4] ss:$0 sps:$4 sm:$0x11]  }
 0x14d   : > { %v2686_v47 = vrot.slane %v2684_v7, 1  ;;  %v1269_v7 = vld [vmem:[#allocation2 + $0x90] sm:$0xe] }
 0x14e   : > { %v8679_v5 = vpop.permute.xlu0 %2882  ;;  %v6677_v57 = vcombine.low %v1269_v7, %v1234_v59 }
 0x14f   : > { %1874 = vrot.lane.b32.xlu1 %v1839_v18, %s7532_s17  ;;  %2384 = vrot.lane.b32.xlu0 %v2348_v54, %s7535_s20  ;;  %v1233_v18 = vld [vmem:[#allocation2 + $0x90] sm:$0xf]  ;;  %v2687_v21 = vsel %vm1530_vm2, %v2682_v27, %v2686_v47 }
 0x150   : > { %v8684_v54 = vpop.permute.xlu1 %1866  ;;  %v8687_v38 = vcombine.low %v1233_v18, %v1234_v59  ;;  %v2689_v18 = vshrl.u32 %v6740_v19, 16 }
 0x151   : > { %10664 = vst [vmem:[#allocation28_spill] sm:$0xff] %v8684_v54  ;;  %v2696_v54 = vshll.u32 %v7333_v51, 16  ;;  %v1840_v51 = vrot.slane %v6677_v57, 1 }
 0x152   : > { %10665 = vst [vmem:[#allocation24_spill] sm:$0xff] %v8687_v38  ;;  %v1678_v27 = vshll.u32 %v8687_v38, 16 }
 0x153   : > { %1986 = vrot.lane.b32.xlu1 %v6692_v48, %s7533_s18  ;;  %2496 = vrot.lane.b32.xlu0 %v6739_v55, %s7534_s19  ;;  %v8689_v48 = vpop.permute.xlu0 %1860  ;;  %v2858_v55 = vrot.slane %v6771_v36, 1  ;;  %v8704_v36 = vcombine.low %v1235_v63, %v8692_v25  ;;  %v2694_v63 = vor.u32 %v2693_v50, %v2689_v18  ;;  %v2698_v28 = vrot.slane %v2696_v54, 1 }
 0x154   : > { %v8697_v3 = vpop.permute.xlu1 %2378  ;;  %v1680_v0 = vrot.slane %v1678_v27, 1  ;;  %v1695_v18 = vshll.u32 %v8713_v33, 16  ;;  %v1333_v27 = vld [vmem:[#allocation2 + $0x9c] sm:$0xe] }
 0x155   : > { %10666 = vst [vmem:[#allocation8_spill] sm:$0xff] %v8697_v3  ;;  %10667 = vst [vmem:[#allocation21_spill] sm:$0xff] %v8704_v36  ;;  %v2860_v47 = vsel %vm1803_vm3, %v2858_v55, %v2859_v45  ;;  %v1683_v3 = vshll.u32 %v7338_v13, 16  ;;  %v1841_v55 = vrot.slane %v7338_v13, 1  ;;  %v2863_v45 = vsel %vm1803_vm3, %v2861_v40, %v2862_v15  ;;  %v1270_v40 = vld [vmem:[#allocation2 + $0x9c] sm:$0xe] }
 0x156   : > { %v1688_v13 = vshrl.u32 %v8704_v36, 16 }
 0x157   : > { %2258 = vrot.lane.b32.xlu1 %v2187_v41, %s7537_s15  ;;  %2768 = vrot.lane.b32.xlu0 %v2687_v21, %s7538_s22  ;;  %v8700_v41 = vld [vmem:[#allocation2 + $0xa0] sm:$0xf]  ;;  %v8706_v6 = vpop.permute.xlu0 %2372  ;;  %v1676_v21 = vshrl.u32 %v8687_v38, 16  ;;  %v1685_v54 = vrot.slane %v1683_v3, 1  ;;  %v1842_v35 = vsel %vm1803_vm3, %v1840_v51, %v1841_v55  ;;  %v8732_v3 = vld [vmem:[#allocation2 + $0xac] sm:$0xf] }
 0x158   : > { %v6693_v56 = vcombine.low %v1297_v10, %v8700_v41  ;;  %v1726_v53 = vpop.permute.xlu1 %1725  ;;  %v10668_v10 = vld [vmem:[#allocation22_spill] sm:$0xff] }
 0x159   : > { %v1681_v57 = vor.u32 %v1680_v0, %v1676_v21  ;;  %v2196_v0 = vshll.u32 %v8720_v30, 16  ;;  %v6725_v21 = vcombine.low %v1333_v27, %v8700_v41 }
 0x15a   : > { %v2191_v7 = vshll.u32 %v6693_v56, 16 }
 0x15b   : > { %2386 = vrot.lane.b32.xlu1 %v2351_v11, %s7535_s20  ;;  %2896 = vrot.lane.b32.xlu0 %v2860_v47, %s7536_s21  ;;  %v1690_v11 = vshll.u32 %v8704_v36, 16  ;;  %v8716_v59 = vpop.permute.xlu0 %2884  ;;  %v2912_v47 = vsel %vm2908_vm12, %v10668_v10, %v1726_v53  ;;  %v2189_v53 = vshrl.u32 %v6693_v56, 16  ;;  %v10670_v36 = vld [vmem:[#allocation4_spill] sm:$0xff] }
 0x15c   : > { %v2239_v50 = vpop.permute.xlu1 %2238  ;;  %v2945_v10 = vsel %vm2941_vm13, %v2912_v47, %v8613_v60  ;;  %v2910_v51 = vsel %vm2908_vm12, %v10670_v36, %v8474_v17  ;;  %v1686_v60 = vsel %vm1530_vm2, %v1681_v57, %v1685_v54  ;;  %v1697_v47 = vrot.slane %v1695_v18, 1 }
 0x15d   : > { %v1692_v38 = vrot.slane %v1690_v11, 1  ;;  %v8738_v11 = vld [vmem:[#allocation2 + $0xac] sm:$0xf]  ;;  %v2978_v27 = vsel %vm2974_vm14, %v2945_v10, %v8522_v62  ;;  %v2352_v36 = vrot.slane %v6725_v21, 1  ;;  %v2943_v54 = vsel %vm2941_vm13, %v2910_v51, %v8495_v1  ;;  %v1334_v51 = vld [vmem:[#allocation2 + $0xa8] sm:$0xe] }
 0x15e   : > { %v1844_v57 = vrot.slane %v8713_v33, 1  ;;  %v2976_v1 = vsel %vm2974_vm14, %v2943_v54, %v8509_v46 }
 0x15f   : > { %2498 = vrot.lane.b32.xlu1 %v6740_v19, %s7534_s19  ;;  %2898 = vrot.lane.b32.xlu0 %v2863_v45, %s7536_s21  ;;  %v2699_v19 = vsel %vm1530_vm2, %v2694_v63, %v2698_v28  ;;  %v8728_v15 = vpop.permute.xlu0 %2886  ;;  %v1299_v45 = vld [vmem:[#allocation2 + $0xa8] sm:$0xf]  ;;  %v2193_v28 = vrot.slane %v2191_v7, 1  ;;  %v1693_v7 = vor.u32 %v1692_v38, %v1688_v13  ;;  %v2353_v38 = vrot.slane %v8720_v30, 1 }
 0x160   : > { %10669 = vst [vmem:[#allocation10_spill] sm:$0xff] %v8728_v15  ;;  %v1362_v63 = vld [vmem:[#allocation2 + $0xa8] sm:$0xf]  ;;  %v8744_v55 = vpop.permute.xlu1 %2750  ;;  %v8749_v41 = vcombine.low %v1299_v45, %v8732_v3  ;;  %v8764_v13 = vld [vmem:[#allocation2 + $0xb0] ss:$0 sps:$4 sm:$0x11]  }
 0x161   : > { %v2194_v17 = vor.u32 %v2193_v28, %v2189_v53  ;;  %v1698_v53 = vsel %vm1530_vm2, %v1693_v7, %v1697_v47  ;;  %v8768_v45 = vld [vmem:[#allocation2 + $0xb0] ss:$0 sps:$4 sm:$0x11]   ;;  %v1398_v28 = vld [vmem:[#allocation2 + $0xa8] sm:$0xe] }
 0x162   : > { %v2203_v30 = vshll.u32 %v8749_v41, 16  ;;  %v2201_v7 = vshrl.u32 %v8749_v41, 16  ;;  %v6773_v54 = vcombine.low %v1398_v28, %v8738_v11  ;;  %v1237_v28 = vld [vmem:[#allocation2 + $0xa8] sm:$0xf] }
 0x163   : > { %2770 = vrot.lane.b32.xlu1 %v2699_v19, %s7538_s22  ;;  %1876 = vrot.lane.b32.xlu0 %v1842_v35, %s7532_s17  ;;  %v6678_v19 = vcombine.low %v1270_v40, %v8692_v25  ;;  %v8753_v15 = vpop.permute.xlu0 %1864  ;;  %v8757_v35 = vcombine.low %v1362_v63, %v8738_v11  ;;  %v2198_v25 = vrot.slane %v2196_v0, 1  ;;  %v3011_v40 = vsel %vm3007_vm15, %v2978_v27, %v2239_v50 }
 0x164   : > { %v1728_v18 = vpop.permute.xlu1 %1727  ;;  %v2354_v50 = vsel %vm1803_vm3, %v2352_v36, %v2353_v38  ;;  %v3044_v0 = vsel %vm3040_vm0, %v3011_v40, %v8629_v49  ;;  %v2708_v63 = vshll.u32 %v8764_v13, 16  ;;  %v2205_v47 = vrot.slane %v2203_v30, 1  ;;  %v1364_v49 = vld [vmem:[#allocation2 + $0xb4] sm:$0xf] }
 0x165   : > { %v1843_v62 = vrot.slane %v6678_v19, 1  ;;  %v2703_v33 = vshll.u32 %v8757_v35, 16  ;;  %v2199_v10 = vsel %vm1530_vm2, %v2194_v17, %v2198_v25  ;;  %v8784_v19 = vld [vmem:[#allocation2 + $0xb8] sm:$0xf]  ;;  %v2208_v27 = vshll.u32 %v8768_v45, 16 }
 0x166   : > { %v2701_v36 = vshrl.u32 %v8757_v35, 16  ;;  %v6726_v40 = vcombine.low %v1334_v51, %v8732_v3  ;;  %v2710_v11 = vrot.slane %v2708_v63, 1  ;;  %v2206_v3 = vor.u32 %v2205_v47, %v2201_v7 }
 0x167   : > { %1747 = vrot.lane.b32.xlu1 %v1686_v60, %s7531_s16  ;;  %1988 = vrot.lane.b32.xlu0 %v6693_v56, %s7533_s18  ;;  %v8773_v56 = vpop.permute.xlu0 %2376  ;;  %v1845_v21 = vsel %vm1803_vm3, %v1843_v62, %v1844_v57  ;;  %v2705_v38 = vrot.slane %v2703_v33, 1  ;;  %v1399_v33 = vld [vmem:[#allocation2 + $0xb4] sm:$0xe] }
 0x168   : > { %v1730_v46 = vpop.permute.xlu1 %1729  ;;  %v2355_v51 = vrot.slane %v6726_v40, 1 }
 0x169   : > { %v2916_v60 = vsel %vm2908_vm12, %v8102_v8, %v1730_v46  ;;  %v3077_v8 = vsel %vm3073_vm1, %v3044_v0, %v8532_v14  ;;  %v8807_v14 = vcombine.low %v1364_v49, %v8784_v19  ;;  %v2864_v0 = vrot.slane %v6773_v54, 1 }
 0x16a   : > { %v2949_v25 = vsel %vm2941_vm13, %v2916_v60, %v8642_v22  ;;  %v2914_v22 = vsel %vm2908_vm12, %v8082_v26, %v1728_v18  ;;  %v8812_v26 = vld [vmem:[#allocation2 + $0xac] sm:$0xf]  ;;  %v2865_v46 = vrot.slane %v8764_v13, 1  ;;  %v2356_v60 = vrot.slane %v8768_v45, 1 }
 0x16b   : > { %1749 = vrot.lane.b32.xlu1 %v1698_v53, %s7531_s16  ;;  %2260 = vrot.lane.b32.xlu0 %v2199_v10, %s7537_s15  ;;  %v2237_v17 = vpop.permute.xlu0 %2236  ;;  %v2982_v57 = vsel %vm2974_vm14, %v2949_v25, %v8544_v2  ;;  %v2210_v10 = vrot.slane %v2208_v27, 1  ;;  %v8832_v7 = vcombine.low %v1237_v28, %v8812_v26  ;;  %v1271_v27 = vld [vmem:[#allocation2 + $0xa8] sm:$0xe] }
 0x16c   : > { %v3009_v62 = vsel %vm3007_vm15, %v2976_v1, %v2237_v17  ;;  %v2243_v30 = vpop.permute.xlu1 %2242  ;;  %v2866_v25 = vsel %vm1803_vm3, %v2864_v0, %v2865_v46  ;;  %v6679_v28 = vcombine.low %v1271_v27, %v8812_v26 }
 0x16d   : > { %v3042_v53 = vsel %vm3040_vm0, %v3009_v62, %v8607_v4  ;;  %v3015_v2 = vsel %vm3007_vm15, %v2982_v57, %v2243_v30  ;;  %v3110_v4 = vsel %vm3106_vm6, %v3077_v8, %v8744_v55  ;;  %v2211_v47 = vsel %vm1530_vm2, %v2206_v3, %v2210_v10  ;;  %v7360_v8 = vld [vmem:[#allocation2 + $0xb0] ss:$0 sps:$4 sm:$0x11]   ;;  %v8854_v57 = vld [vmem:[#allocation2 + $0xb8] sm:$0xf] }
 0x16e   : > { %v3075_v1 = vsel %vm3073_vm1, %v3042_v53, %v8527_v39  ;;  %v2947_v39 = vsel %vm2941_vm13, %v2914_v22, %v8649_v23  ;;  %v3048_v55 = vsel %vm3040_vm0, %v3015_v2, %v8655_v44  ;;  %v2715_v23 = vshll.u32 %v8807_v14, 16 }
 0x16f   : > { %1878 = vrot.lane.b32.xlu1 %v1845_v21, %s7532_s17  ;;  %2388 = vrot.lane.b32.xlu0 %v2354_v50, %s7535_s20  ;;  %v2749_v18 = vpop.permute.xlu0 %2748  ;;  %v2706_v50 = vor.u32 %v2705_v38, %v2701_v36  ;;  %v8819_v21 = vld [vmem:[#allocation2 + $0xbc] ss:$0 sps:$4 sm:$0x11]   ;;  %v3143_v45 = vsel %vm3139_vm9, %v3110_v4, %v8634_v34  ;;  %v6774_v44 = vcombine.low %v1399_v33, %v8784_v19  ;;  %v1239_v36 = vld [vmem:[#allocation2 + $0xb4] sm:$0xf]  ;;  %v2713_v53 = vshrl.u32 %v8807_v14, 16 }
 0x170   : > { %v3108_v63 = vsel %vm3106_vm6, %v3075_v1, %v2749_v18  ;;  %v2755_v13 = vpop.permute.xlu1 %2754  ;;  %v2868_v34 = vrot.slane %v8819_v21, 1  ;;  %v8847_v38 = vld [vmem:[#allocation2 + $0xb8] sm:$0xf]  ;;  %v3081_v54 = vsel %vm3073_vm1, %v3048_v55, %v8557_v24  ;;  %v2720_v62 = vshll.u32 %v8819_v21, 16 }
 0x171   : > { %v2711_v17 = vsel %vm1530_vm2, %v2706_v50, %v2710_v11  ;;  %v2717_v30 = vrot.slane %v2715_v23, 1  ;;  %v1702_v11 = vshll.u32 %v8832_v7, 16  ;;  %v2867_v1 = vrot.slane %v6774_v44, 1 }
 0x172   : > { %v8866_v2 = vcombine.low %v1239_v36, %v8847_v38  ;;  %v1700_v18 = vshrl.u32 %v8832_v7, 16  ;;  %v1707_v50 = vshll.u32 %v7360_v8, 16 }
 0x173   : > { %1990 = vrot.lane.b32.xlu1 %v8749_v41, %s7533_s18  ;;  %2500 = vrot.lane.b32.xlu0 %v8757_v35, %s7534_s19  ;;  %v3141_v41 = vsel %vm3139_vm9, %v3108_v63, %v8622_v29  ;;  %v1301_v35 = vld [vmem:[#allocation2 + $0xb4] sm:$0xf]  ;;  %v2241_v49 = vpop.permute.xlu0 %2240  ;;  %v2980_v29 = vsel %vm2974_vm14, %v2947_v39, %v8537_v37  ;;  %v2357_v37 = vsel %vm1803_vm3, %v2355_v51, %v2356_v60  ;;  %v1704_v26 = vrot.slane %v1702_v11, 1  ;;  %v8883_v39 = vld [vmem:[#allocation2 + $0xbc] ss:$0 sps:$4 sm:$0x11]  }
 0x174   : > { %7096 = vmatprep.mubr.msk.bf16.mxu0 %vm3227_vm10, %v3141_v41  ;;  %v3013_v19 = vsel %vm3007_vm15, %v2980_v29, %v2241_v49  ;;  %v8874_v4 = vcombine.low %v1301_v35, %v8854_v57  ;;  %v2718_v21 = vor.u32 %v2717_v30, %v2713_v53  ;;  %v1714_v60 = vshll.u32 %v8866_v2, 16 }
 0x175   : > { %7097 = vmatmul.mubr.msk.bf16.vlgmr.msra.gmra.mrb[0].mxu0 %vm3227_vm10, %v3143_v45  ;;  %v3046_v40 = vsel %vm3040_vm0, %v3013_v19, %v8659_v43  ;;  %v3114_v43 = vsel %vm3106_vm6, %v3081_v54, %v2755_v13  ;;  %v1846_v41 = vrot.slane %v6679_v28, 1  ;;  %v1847_v13 = vrot.slane %v7360_v8, 1  ;;  %v8900_v45 = vld [vmem:[#allocation2 + $0xbc] ss:$0 sps:$4 sm:$0x11]  }
 0x176   : > { %v1732_v22 = vpop.permute.xlu1 %1731  ;;  %v3079_v24 = vsel %vm3073_vm1, %v3046_v40, %v8551_v20  ;;  %v3147_v63 = vsel %vm3139_vm9, %v3114_v43, %v8679_v5  ;;  %v1709_v23 = vrot.slane %v1707_v50, 1  ;;  %v1705_v27 = vor.u32 %v1704_v26, %v1700_v18  ;;  %v8917_v8 = vld [vmem:[#allocation2 + $0xc4] sm:$0xf] }
 0x177   : > { %2262 = vrot.lane.b32.xlu1 %v2211_v47, %s7537_s15  ;;  %2772 = vrot.lane.b32.xlu0 %v2711_v17, %s7538_s22  ;;  %v2918_v33 = vsel %vm2908_vm12, %v8170_v61, %v1732_v22  ;;  %v2753_v3 = vpop.permute.xlu0 %2752  ;;  %v2722_v61 = vrot.slane %v2720_v62, 1  ;;  %v2215_v47 = vshll.u32 %v8874_v4, 16  ;;  %v1719_v35 = vshll.u32 %v8883_v39, 16 }
 0x178   : > { %v2951_v10 = vsel %vm2941_vm13, %v2918_v33, %v8689_v48  ;;  %v3112_v20 = vsel %vm3106_vm6, %v3079_v24, %v2753_v3  ;;  %v1712_v29 = vshrl.u32 %v8866_v2, 16  ;;  %v1716_v17 = vrot.slane %v1714_v60, 1  ;;  %v1366_v33 = vld [vmem:[#allocation2 + $0xc0] sm:$0xf] }
 0x179   : > { %v3145_v0 = vsel %vm3139_vm9, %v3112_v20, %v8670_v31  ;;  %v2984_v48 = vsel %vm2974_vm14, %v2951_v10, %v8563_v52  ;;  %v2869_v31 = vsel %vm1803_vm3, %v2867_v1, %v2868_v34  ;;  %v1272_v34 = vld [vmem:[#allocation2 + $0xb4] sm:$0xe]  ;;  %v1848_v19 = vsel %vm1803_vm3, %v1846_v41, %v1847_v13  ;;  %v8928_v1 = vld [vmem:[#allocation2 + $0xc4] sm:$0xf] }
 0x17a   : > { %v1734_v46 = vpop.permute.xlu1 %1733  ;;  %7100 = vmatprep.mubr.msk.bf16.mxu0 %vm3227_vm10, %v3145_v0  ;;  %v2213_v54 = vshrl.u32 %v8874_v4, 16  ;;  %v2217_v40 = vrot.slane %v2215_v47, 1  ;;  %v2220_v22 = vshll.u32 %v8900_v45, 16  ;;  %v1710_v30 = vsel %vm1530_vm2, %v1705_v27, %v1709_v23  ;;  %v1368_v47 = vld [vmem:[#allocation2 + $0xcc] sm:$0xf] }
 0x17b   : > { %2390 = vrot.lane.b32.xlu1 %v2357_v37, %s7535_s20  ;;  %2900 = vrot.lane.b32.xlu0 %v2866_v25, %s7536_s21  ;;  %v2920_v51 = vsel %vm2908_vm12, %v8152_v16, %v1734_v46  ;;  %v2245_v55 = vpop.permute.xlu0 %2244  ;;  %v1335_v25 = vld [vmem:[#allocation2 + $0xb4] sm:$0xe]  ;;  %v1303_v37 = vld [vmem:[#allocation2 + $0xc0] sm:$0xf]  ;;  %v1721_v11 = vrot.slane %v1719_v35, 1  ;;  %v1717_v43 = vor.u32 %v1716_v17, %v1712_v29  ;;  %v6680_v3 = vcombine.low %v1272_v34, %v8847_v38  ;;  %v10675_v29 = vld [vmem:[#allocation19_spill] sm:$0xff] }
 0x17c   : > { %v2953_v52 = vsel %vm2941_vm13, %v2920_v51, %v8667_v9  ;;  %v3017_v5 = vsel %vm3007_vm15, %v2984_v48, %v2245_v55  ;;  %v6727_v24 = vcombine.low %v1335_v25, %v8854_v57  ;;  %v6696_v10 = vcombine.low %v1303_v37, %v8917_v8  ;;  %v8943_v46 = vld [vmem:[#allocation2 + $0xc8] ss:$0 sps:$4 sm:$0x11]   ;;  %v10676_v25 = vld [vmem:[#allocation28_spill] sm:$0xff] }
 0x17d   : > { %7101 = vmatmul.mubr.msk.bf16.gmra.mrb[4].mxu0 %vm3227_vm10, %v3147_v63  ;;  %v2986_v16 = vsel %vm2974_vm14, %v2953_v52, %v8568_v58  ;;  %v3050_v9 = vsel %vm3040_vm0, %v3017_v5, %v8706_v6  ;;  %v2218_v57 = vor.u32 %v2217_v40, %v2213_v54  ;;  %v6743_v18 = vcombine.low %v1366_v33, %v8928_v1  ;;  %v10677_v54 = vld [vmem:[#allocation14_spill] sm:$0xff] }
 0x17e   : > { %v2247_v44 = vpop.permute.xlu1 %2246  ;;  %v3083_v49 = vsel %vm3073_vm1, %v3050_v9, %v8572_v12  ;;  %v2358_v0 = vrot.slane %v6727_v24, 1  ;;  %v2359_v38 = vrot.slane %v8900_v45, 1  ;;  %v1850_v48 = vrot.slane %v8883_v39, 1  ;;  %v8960_v9 = vld [vmem:[#allocation2 + $0xd0] sm:$0xf] }
 0x17f   : > { %2502 = vrot.lane.b32.xlu1 %v8807_v14, %s7534_s19  ;;  %2902 = vrot.lane.b32.xlu0 %v2869_v31, %s7536_s21  ;;  %v2723_v14 = vsel %vm1530_vm2, %v2718_v21, %v2722_v61  ;;  %v3019_v58 = vsel %vm3007_vm15, %v2986_v16, %v2247_v44  ;;  %v2222_v61 = vrot.slane %v2220_v22, 1  ;;  %v10672_v21 = vld [vmem:[#allocation32_spill] sm:$0xff]  ;;  %v1722_v63 = vsel %vm1530_vm2, %v1717_v43, %v1721_v11  ;;  %v10673_v31 = vld [vmem:[#allocation6_spill] sm:$0xff] }
 0x180   : > { %v3052_v6 = vsel %vm3040_vm0, %v3019_v58, %v8676_v32  ;;  %v1849_v51 = vrot.slane %v6680_v3, 1  ;;  %v2227_v60 = vshll.u32 %v6696_v10, 16  ;;  %v2727_v13 = vshll.u32 %v6743_v18, 16 }
 0x181   : > { %v2757_v36 = vpop.permute.xlu0 %2756  ;;  %v3085_v62 = vsel %vm3073_vm1, %v3052_v6, %v8577_v42  ;;  %v2223_v41 = vsel %vm1530_vm2, %v2218_v57, %v2222_v61  ;;  %v2360_v23 = vsel %vm1803_vm3, %v2358_v0, %v2359_v38  ;;  %v2225_v45 = vshrl.u32 %v6696_v10, 16 }
 0x182   : > { %v3116_v12 = vsel %vm3106_vm6, %v3083_v49, %v2757_v36  ;;  %v1851_v35 = vsel %vm1803_vm3, %v1849_v51, %v1850_v48  ;;  %v2229_v49 = vrot.slane %v2227_v60, 1  ;;  %v2725_v36 = vshrl.u32 %v6743_v18, 16 }
 0x183   : > { %2774 = vrot.lane.b32.xlu1 %v2723_v14, %s7538_s22  ;;  %1880 = vrot.lane.b32.xlu0 %v1848_v19, %s7532_s17  ;;  %v3149_v32 = vsel %vm3139_vm9, %v3116_v12, %v8716_v59  ;;  %v10671_v59 = vld [vmem:[#allocation10_spill] sm:$0xff]  ;;  %v10674_v14 = vld [vmem:[#allocation31_spill] sm:$0xff]  ;;  %v2729_v12 = vrot.slane %v2727_v13, 1 }
 0x184   : > { %7104 = vmatprep.mubr.msk.bf16.mxu0 %vm3227_vm10, %v3149_v32  ;;  %v1336_v19 = vld [vmem:[#allocation2 + $0xc0] sm:$0xe] }
 0x185   : > { %v2759_v53 = vpop.permute.xlu1 %2758  ;;  %v2249_v28 = vpop.permute.xlu0 %2248  ;;  %v1400_v32 = vld [vmem:[#allocation2 + $0xc0] sm:$0xe]  ;;  %v6728_v24 = vcombine.low %v1336_v19, %v8917_v8  ;;  %v2730_v57 = vor.u32 %v2729_v12, %v2725_v36  ;;  %v10681_v12 = vld [vmem:[#allocation20_spill] sm:$0xff] }
 0x186   : > { %v3118_v42 = vsel %vm3106_vm6, %v3085_v62, %v2759_v53  ;;  %v6744_v62 = vcombine.low %v1368_v47, %v8960_v9  ;;  %v6775_v61 = vcombine.low %v1400_v32, %v8928_v1 }
 0x187   : > { %1751 = vrot.lane.b32.xlu1 %v1710_v30, %s7531_s16  ;;  %v3151_v20 = vsel %vm3139_vm9, %v3118_v42, %v10671_v59  ;;  %1992 = vrot.lane.b32.xlu0 %v8874_v4, %s7533_s18  ;;  %v8951_v4 = vld [vmem:[#allocation2 + $0xc8] ss:$0 sps:$4 sm:$0x11]   ;;  %v2230_v30 = vor.u32 %v2229_v49, %v2225_v45  ;;  %v10678_v42 = vld [vmem:[#allocation8_spill] sm:$0xff]  ;;  %v10679_v59 = vld [vmem:[#allocation9_spill] sm:$0xff]  ;;  %v2361_v48 = vrot.slane %v6728_v24, 1 }
 0x188   : > { %7105 = vmatmul.mubr.msk.bf16.gmra.mrb[8].mxu0 %vm3227_vm10, %v3151_v20  ;;  %v2732_v6 = vshll.u32 %v8951_v4, 16  ;;  %v2737_v60 = vshrl.u32 %v6744_v62, 16 }
 0x189   : > { %v1736_v50 = vpop.permute.xlu1 %1735  ;;  %v2761_v55 = vpop.permute.xlu0 %2760 }
 0x18a   : > { %v2922_v26 = vsel %vm2908_vm12, %v10672_v21, %v1736_v50  ;;  %v2734_v3 = vrot.slane %v2732_v6, 1  ;;  %v2739_v50 = vshll.u32 %v6744_v62, 16  ;;  %v2362_v21 = vrot.slane %v8943_v46, 1 }
 0x18b   : > { %v2955_v52 = vsel %vm2941_vm13, %v2922_v26, %v8753_v15  ;;  %1753 = vrot.lane.b32.xlu1 %v1722_v63, %s7531_s16  ;;  %2264 = vrot.lane.b32.xlu0 %v2223_v41, %s7537_s15  ;;  %v2232_v15 = vshll.u32 %v8943_v46, 16  ;;  %v2871_v63 = vrot.slane %v8951_v4, 1  ;;  %s7539_s16 = smov 16  }
 0x18c   : > { %v2988_v39 = vsel %vm2974_vm14, %v2955_v52, %v10673_v31  ;;  %v2735_v1 = vsel %vm1530_vm2, %v2730_v57, %v2734_v3  ;;  %v1401_v31 = vld [vmem:[#allocation2 + $0xcc] sm:$0xe]  ;;  %v2363_v46 = vsel %vm1803_vm3, %v2361_v48, %v2362_v21 }
 0x18d   : > { %v3021_v5 = vsel %vm3007_vm15, %v2988_v39, %v2249_v28  ;;  %v1738_v16 = vpop.permute.xlu1 %1737  ;;  %v2889_v58 = vpop.permute.xlu0 %2888  ;;  %v2234_v11 = vrot.slane %v2232_v15, 1  ;;  %v7375_v28 = vld [vmem:[#allocation2 + $0xd4] ss:$0 sps:$4 sm:$0x11]  }
 0x18e   : > { %v3054_v44 = vsel %vm3040_vm0, %v3021_v5, %v8773_v56  ;;  %v2924_v27 = vsel %vm2908_vm12, %v10674_v14, %v1738_v16  ;;  %v2744_v51 = vshll.u32 %v7375_v28, 16  ;;  %v6776_v5 = vcombine.low %v1401_v31, %v8960_v9  ;;  %v10680_v14 = vld [vmem:[#allocation26_spill] sm:$0xff] }
 0x18f   : > { %v3087_v17 = vsel %vm3073_vm1, %v3054_v44, %v10675_v29  ;;  %v2957_v34 = vsel %vm2941_vm13, %v2924_v27, %v10676_v25  ;;  %1882 = vrot.lane.b32.xlu1 %v1851_v35, %s7532_s17  ;;  %2392 = vrot.lane.b32.xlu0 %v2360_v23, %s7535_s20  ;;  %v2235_v38 = vsel %vm1530_vm2, %v2230_v30, %v2234_v11  ;;  %v2874_v47 = vrot.slane %v7375_v28, 1 }
 0x190   : > { %v3120_v56 = vsel %vm3106_vm6, %v3087_v17, %v2761_v55  ;;  %v2990_v37 = vsel %vm2974_vm14, %v2957_v34, %v10677_v54  ;;  %v2741_v55 = vrot.slane %v2739_v50, 1  ;;  %v2746_v13 = vrot.slane %v2744_v51, 1 }
 0x191   : > { %v3153_v40 = vsel %vm3139_vm9, %v3120_v56, %v2889_v58  ;;  %v2251_v22 = vpop.permute.xlu1 %2250  ;;  %v2891_v33 = vpop.permute.xlu0 %2890  ;;  %v2873_v15 = vrot.slane %v6776_v5, 1 }
 0x192   : > { %v3023_v53 = vsel %vm3007_vm15, %v2990_v37, %v2251_v22  ;;  %7108 = vmatprep.mubr.msk.bf16.mxu0 %vm3227_vm10, %v3153_v40  ;;  %v2742_v4 = vor.u32 %v2741_v55, %v2737_v60 }
 0x193   : > { %v3056_v43 = vsel %vm3040_vm0, %v3023_v53, %v10678_v42  ;;  %1994 = vrot.lane.b32.xlu1 %v6696_v10, %s7533_s18  ;;  %2504 = vrot.lane.b32.xlu0 %v6743_v18, %s7534_s19  ;;  %v2870_v18 = vrot.slane %v6775_v61, 1  ;;  %v2875_v49 = vsel %vm1803_vm3, %v2873_v15, %v2874_v47 }
 0x194   : > { %v3089_v20 = vsel %vm3073_vm1, %v3056_v43, %v10679_v59  ;;  %v2747_v45 = vsel %vm1530_vm2, %v2742_v4, %v2746_v13  ;;  %v10684_v4 = vmov 0  }
 0x195   : > { %v2763_v0 = vpop.permute.xlu1 %2762  ;;  %v1869_v10 = vpop.permute.xlu0 %1868  ;;  %v2872_v41 = vsel %vm1803_vm3, %v2870_v18, %v2871_v63  ;;  %3543 = vst.msk [vmem:[#allocation3 + $0x18] sm:$0xf] %vm3535_vm11, %v10684_v4  ;;  %3536 = vst.msk [vmem:[#allocation3] sm:$0xf] %vm3535_vm11, %v10684_v4 }
 0x196   : > { %v3122_v8 = vsel %vm3106_vm6, %v3089_v20, %v2763_v0  ;;  %v10682_v0 = vld [vmem:[#allocation7_spill] sm:$0xff]  ;;  %3537 = vst.msk [vmem:[#allocation3 + $0x4] sm:$0xf] %vm3535_vm11, %v10684_v4  ;;  %3540 = vst.msk [vmem:[#allocation3 + $0xc] sm:$0xf] %vm3535_vm11, %v10684_v4 }
 0x197   : > { %2266 = vrot.lane.b32.xlu1 %v2235_v38, %s7537_s15  ;;  %v3155_v26 = vsel %vm3139_vm9, %v3122_v8, %v2891_v33  ;;  %2776 = vrot.lane.b32.xlu0 %v2735_v1, %s7538_s22  ;;  %3541 = vst.msk [vmem:[#allocation3 + $0x10] sm:$0xf] %vm3535_vm11, %v10684_v4  ;;  %3544 = vst.msk [vmem:[#allocation3 + $0x1c] sm:$0xf] %vm3535_vm11, %v10684_v4 }
 0x198   : > { %7109 = vmatmul.mubr.msk.bf16.gmra.mrb[12].mxu0 %vm3227_vm10, %v3155_v26  ;;  %3546 = vst.msk [vmem:[#allocation3 + $0x24] sm:$0xf] %vm3535_vm11, %v10684_v4  ;;  %3547 = vst.msk [vmem:[#allocation3 + $0x28] sm:$0xf] %vm3535_vm11, %v10684_v4 }
 0x199   : > { %v1740_v52 = vpop.permute.xlu1 %1739  ;;  %v1981_v39 = vpop.permute.xlu0 %1980  ;;  %3549 = vst.msk [vmem:[#allocation3 + $0x30] sm:$0xf] %vm3535_vm11, %v10684_v4  ;;  %3550 = vst.msk [vmem:[#allocation3 + $0x34] sm:$0xf] %vm3535_vm11, %v10684_v4 }
 0x19a   : > { %v2926_v27 = vsel %vm2908_vm12, %v10680_v14, %v1740_v52  ;;  %3552 = vst.msk [vmem:[#allocation3 + $0x3c] sm:$0xf] %vm3535_vm11, %v10684_v4  ;;  %3553 = vst.msk [vmem:[#allocation3 + $0x40] sm:$0xf] %vm3535_vm11, %v10684_v4 }
 0x19b   : > { %2394 = vrot.lane.b32.xlu1 %v2363_v46, %s7535_s20  ;;  %2904 = vrot.lane.b32.xlu0 %v2872_v41, %s7536_s21  ;;  %v2959_v58 = vsel %vm2941_vm13, %v2926_v27, %v1869_v10  ;;  %v10683_v46 = vld [vmem:[#allocation27_spill] sm:$0xff]  ;;  %3555 = vst.msk [vmem:[#allocation3 + $0x48] sm:$0xf] %vm3535_vm11, %v10684_v4  ;;  %3556 = vst.msk [vmem:[#allocation3 + $0x4c] sm:$0xf] %vm3535_vm11, %v10684_v4 }
 0x19c   : > { %v2992_v17 = vsel %vm2974_vm14, %v2959_v58, %v1981_v39  ;;  %3558 = vst.msk [vmem:[#allocation3 + $0x54] sm:$0xf] %vm3535_vm11, %v10684_v4  ;;  %3559 = vst.msk [vmem:[#allocation3 + $0x58] sm:$0xf] %vm3535_vm11, %v10684_v4 }
 0x19d   : > { %v1742_v16 = vpop.permute.xlu1 %1741  ;;  %v2253_v23 = vpop.permute.xlu0 %2252  ;;  %3561 = vst.msk [vmem:[#allocation3 + $0x60] sm:$0xf] %vm3535_vm11, %v10684_v4  ;;  %3562 = vst.msk [vmem:[#allocation3 + $0x64] sm:$0xf] %vm3535_vm11, %v10684_v4 }
 0x19e   : > { %v3025_v36 = vsel %vm3007_vm15, %v2992_v17, %v2253_v23  ;;  %3564 = vst.msk [vmem:[#allocation3 + $0x6c] sm:$0xf] %vm3535_vm11, %v10684_v4  ;;  %3565 = vst.msk [vmem:[#allocation3 + $0x70] sm:$0xf] %vm3535_vm11, %v10684_v4 }
 0x19f   : > { %2506 = vrot.lane.b32.xlu1 %v6744_v62, %s7534_s19  ;;  %v2928_v62 = vsel %vm2908_vm12, %v10681_v12, %v1742_v16  ;;  %3567 = vst.msk [vmem:[#allocation3 + $0x78] sm:$0xf] %vm3535_vm11, %v10684_v4  ;;  %3568 = vst.msk [vmem:[#allocation3 + $0x7c] sm:$0xf] %vm3535_vm11, %v10684_v4 }
 0x1a0   : > { %3570 = vst.msk [vmem:[#allocation3 + $0x84] sm:$0xf] %vm3535_vm11, %v10684_v4  ;;  %3571 = vst.msk [vmem:[#allocation3 + $0x88] sm:$0xf] %vm3535_vm11, %v10684_v4 }
 0x1a1   : > { %v1871_v44 = vpop.permute.xlu1 %1870  ;;  %v2381_v35 = vpop.permute.xlu0 %2380  ;;  %3573 = vst.msk [vmem:[#allocation3 + $0x90] sm:$0xf] %vm3535_vm11, %v10684_v4  ;;  %3574 = vst.msk [vmem:[#allocation3 + $0x94] sm:$0xf] %vm3535_vm11, %v10684_v4 }
 0x1a2   : > { %v3058_v6 = vsel %vm3040_vm0, %v3025_v36, %v2381_v35  ;;  %v2961_v22 = vsel %vm2941_vm13, %v2928_v62, %v1871_v44  ;;  %3576 = vst.msk [vmem:[#allocation3 + $0x9c] sm:$0xf] %vm3535_vm11, %v10684_v4  ;;  %3577 = vst.msk [vmem:[#allocation3 + $0xa0] sm:$0xf] %vm3535_vm11, %v10684_v4 }
 0x1a3   : > { %2778 = vrot.lane.b32.xlu1 %v2747_v45, %s7538_s22  ;;  %3579 = vst.msk [vmem:[#allocation3 + $0xa8] sm:$0xf] %vm3535_vm11, %v10684_v4  ;;  %3580 = vst.msk [vmem:[#allocation3 + $0xac] sm:$0xf] %vm3535_vm11, %v10684_v4 }
 0x1a4   : > { %3582 = vst.msk [vmem:[#allocation3 + $0xb4] sm:$0xf] %vm3535_vm11, %v10684_v4  ;;  %3583 = vst.msk [vmem:[#allocation3 + $0xb8] sm:$0xf] %vm3535_vm11, %v10684_v4 }
 0x1a5   : > { %v1983_v9 = vpop.permute.xlu1 %1982  ;;  %v2493_v29 = vpop.permute.xlu0 %2492  ;;  %3585 = vst.msk [vmem:[#allocation3 + $0xc0] sm:$0xf] %vm3535_vm11, %v10684_v4  ;;  %3586 = vst.msk [vmem:[#allocation3 + $0xc4] sm:$0xf] %vm3535_vm11, %v10684_v4 }
 0x1a6   : > { %v3091_v56 = vsel %vm3073_vm1, %v3058_v6, %v2493_v29  ;;  %v2994_v53 = vsel %vm2974_vm14, %v2961_v22, %v1983_v9  ;;  %3588 = vst.msk [vmem:[#allocation3 + $0xcc] sm:$0xf] %vm3535_vm11, %v10684_v4  ;;  %3589 = vst.msk [vmem:[#allocation3 + $0xd0] sm:$0xf] %vm3535_vm11, %v10684_v4 }
 0x1a7   : > { %2906 = vrot.lane.b32.xlu1 %v2875_v49, %s7536_s21  ;;  %3545 = vst.msk [vmem:[#allocation3 + $0x20] sm:$0x1] %vm3538_vm4, %v10684_v4  ;;  %3539 = vst.msk [vmem:[#allocation3 + $0x8] sm:$0x1] %vm3538_vm4, %v10684_v4 }
 0x1a8   : > { %3542 = vst.msk [vmem:[#allocation3 + $0x14] sm:$0x1] %vm3538_vm4, %v10684_v4  ;;  %3548 = vst.msk [vmem:[#allocation3 + $0x2c] sm:$0x1] %vm3538_vm4, %v10684_v4 }
 0x1a9   : > { %v2255_v25 = vpop.permute.xlu1 %2254  ;;  %v2765_v34 = vpop.permute.xlu0 %2764  ;;  %3551 = vst.msk [vmem:[#allocation3 + $0x38] sm:$0x1] %vm3538_vm4, %v10684_v4  ;;  %3554 = vst.msk [vmem:[#allocation3 + $0x44] sm:$0x1] %vm3538_vm4, %v10684_v4 }
 0x1aa   : > { %v3124_v54 = vsel %vm3106_vm6, %v3091_v56, %v2765_v34  ;;  %v3027_v30 = vsel %vm3007_vm15, %v2994_v53, %v2255_v25  ;;  %3557 = vst.msk [vmem:[#allocation3 + $0x50] sm:$0x1] %vm3538_vm4, %v10684_v4  ;;  %3560 = vst.msk [vmem:[#allocation3 + $0x5c] sm:$0x1] %vm3538_vm4, %v10684_v4  ;;  %v10685_v25 = vld [vmem:[#allocation24_spill] sm:$0xff] }
 0x1ab   : > { %3563 = vst.msk [vmem:[#allocation3 + $0x68] sm:$0x1] %vm3538_vm4, %v10684_v4  ;;  %3566 = vst.msk [vmem:[#allocation3 + $0x74] sm:$0x1] %vm3538_vm4, %v10684_v4  ;;  %v4125_v53 = vld [vmem:[#allocation3 + $0x4] sm:$0xf] }
 0x1ac   : > { %3569 = vst.msk [vmem:[#allocation3 + $0x80] sm:$0x1] %vm3538_vm4, %v10684_v4  ;;  %3572 = vst.msk [vmem:[#allocation3 + $0x8c] sm:$0x1] %vm3538_vm4, %v10684_v4 }
 0x1ad   : > { %v2383_v19 = vpop.permute.xlu1 %2382  ;;  %v2893_v37 = vpop.permute.xlu0 %2892  ;;  %3575 = vst.msk [vmem:[#allocation3 + $0x98] sm:$0x1] %vm3538_vm4, %v10684_v4  ;;  %3578 = vst.msk [vmem:[#allocation3 + $0xa4] sm:$0x1] %vm3538_vm4, %v10684_v4 }
 0x1ae   : > { %v3157_v40 = vsel %vm3139_vm9, %v3124_v54, %v2893_v37  ;;  %v3060_v24 = vsel %vm3040_vm0, %v3027_v30, %v2383_v19  ;;  %3581 = vst.msk [vmem:[#allocation3 + $0xb0] sm:$0x1] %vm3538_vm4, %v10684_v4  ;;  %3584 = vst.msk [vmem:[#allocation3 + $0xbc] sm:$0x1] %vm3538_vm4, %v10684_v4 }
 0x1af   : > { %7112 = vmatprep.mubr.msk.bf16.mxu0 %vm3227_vm10, %v3157_v40  ;;  %3587 = vst.msk [vmem:[#allocation3 + $0xc8] sm:$0x1] %vm3538_vm4, %v10684_v4  ;;  %3590 = vst.msk [vmem:[#allocation3 + $0xd4] sm:$0x1] %vm3538_vm4, %v10684_v4 }
 0x1b1   : > { %v2495_v32 = vpop.permute.xlu1 %2494  ;;  %v2895_v11 = vpop.permute.xlu0 %2894 }
 0x1b2   : > { %v3093_v33 = vsel %vm3073_vm1, %v3060_v24, %v2495_v32  ;;  %v4124_v32 = vld [vmem:[#allocation3] sm:$0xf]  ;;  %v7378_v24 = vld [vmem:[#allocation3 + $0x8] ss:$0 sps:$4 sm:$0x11]  }
 0x1b5   : > { %v2767_v42 = vpop.permute.xlu1 %2766  ;;  %v1873_v3 = vpop.permute.xlu0 %1872 }
 0x1b6   : > { %v3126_v43 = vsel %vm3106_vm6, %v3093_v33, %v2767_v42  ;;  %v10686_v33 = vld [vmem:[#allocation21_spill] sm:$0xff] }
 0x1b7   : > { %v3159_v28 = vsel %vm3139_vm9, %v3126_v43, %v2895_v11  ;;  %v9163_v11 = vcombine.low %v4124_v32, %v4125_v53 }
 0x1b8   : > { %7113 = vmatmul.mubr.msk.bf16.gmra.mrb[16].mxu0 %vm3227_vm10, %v3159_v28 }
 0x1b9   : > { %v1744_v59 = vpop.permute.xlu1 %1743  ;;  %v1985_v20 = vpop.permute.xlu0 %1984 }
 0x1ba   : > { %v2930_v8 = vsel %vm2908_vm12, %v10682_v0, %v1744_v59  ;;  %v4446_v59 = vshrl.u32 %v9163_v11, 16 }
 0x1bb   : > { %v2963_v21 = vsel %vm2941_vm13, %v2930_v8, %v1873_v3 }
 0x1bc   : > { %v2996_v26 = vsel %vm2974_vm14, %v2963_v21, %v1985_v20  ;;  %v4448_v20 = vshll.u32 %v9163_v11, 16 }
 0x1bd   : > { %v1746_v57 = vpop.permute.xlu1 %1745  ;;  %v2257_v61 = vpop.permute.xlu0 %2256 }
 0x1be   : > { %v3029_v1 = vsel %vm3007_vm15, %v2996_v26, %v2257_v61  ;;  %v2932_v39 = vsel %vm2908_vm12, %v10683_v46, %v1746_v57  ;;  %v4453_v57 = vshll.u32 %v7378_v24, 16  ;;  %v4450_v8 = vrot.slane %v4448_v20, 1 }
 0x1bf   : > { %v4718_v46 = vrot.slane %v7378_v24, 1 }
 0x1c0   : > { %v4451_v26 = vor.u32 %v4450_v8, %v4446_v59 }
 0x1c1   : > { %v1875_v50 = vpop.permute.xlu1 %1874  ;;  %v2385_v38 = vpop.permute.xlu0 %2384 }
 0x1c2   : > { %v3062_v18 = vsel %vm3040_vm0, %v3029_v1, %v2385_v38  ;;  %v2965_v13 = vsel %vm2941_vm13, %v2932_v39, %v1875_v50  ;;  %v4455_v38 = vrot.slane %v4453_v57, 1  ;;  %v4283_v39 = vld [vmem:[#allocation3 + $0xcc] sm:$0xf] }
 0x1c5   : > { %v1987_v48 = vpop.permute.xlu1 %1986  ;;  %v2497_v10 = vpop.permute.xlu0 %2496 }
 0x1c6   : > { %v3095_v55 = vsel %vm3073_vm1, %v3062_v18, %v2497_v10  ;;  %v2998_v16 = vsel %vm2974_vm14, %v2965_v13, %v1987_v48  ;;  %v4456_v18 = vsel %vm1530_vm2, %v4451_v26, %v4455_v38 }
 0x1c7   : > { %4637 = vrot.lane.b32.xlu0 %v4456_v18, %s7530_s12 }
 0x1c9   : > { %v2259_v63 = vpop.permute.xlu1 %2258  ;;  %v2769_v51 = vpop.permute.xlu0 %2768 }
 0x1ca   : > { %v3128_v52 = vsel %vm3106_vm6, %v3095_v55, %v2769_v51  ;;  %v3031_v23 = vsel %vm3007_vm15, %v2998_v16, %v2259_v63 }
 0x1cd   : > { %v2387_v60 = vpop.permute.xlu1 %2386  ;;  %v2897_v31 = vpop.permute.xlu0 %2896 }
 0x1ce   : > { %v3161_v41 = vsel %vm3139_vm9, %v3128_v52, %v2897_v31  ;;  %v3064_v15 = vsel %vm3040_vm0, %v3031_v23, %v2387_v60  ;;  %v4172_v60 = vld [vmem:[#allocation3] sm:$0xe] }
 0x1cf   : > { %7116 = vmatprep.mubr.msk.bf16.mxu0 %vm3227_vm10, %v3161_v41  ;;  %v6866_v31 = vcombine.low %v4172_v60, %v4125_v53  ;;  %v4284_v41 = vld [vmem:[#allocation3 + $0xd0] sm:$0xf] }
 0x1d0   : > { %v9182_v4 = vcombine.low %v4283_v39, %v4284_v41 }
 0x1d1   : > { %v2499_v5 = vpop.permute.xlu1 %2498  ;;  %v2899_v45 = vpop.permute.xlu0 %2898 }
 0x1d2   : > { %v3097_v47 = vsel %vm3073_vm1, %v3064_v15, %v2499_v5  ;;  %v4717_v5 = vrot.slane %v6866_v31, 1  ;;  %5419 = vrot.lane.b32.xlu1 %v9182_v4, %s7537_s15 }
 0x1d4   : > { %v4719_v23 = vsel %vm1803_vm3, %v4717_v5, %v4718_v46 }
 0x1d5   : > { %v2771_v44 = vpop.permute.xlu1 %2770  ;;  %v1877_v27 = vpop.permute.xlu0 %1876  ;;  %4765 = vrot.lane.b32.xlu0 %v4719_v23, %s7539_s16 }
 0x1d6   : > { %v3130_v14 = vsel %vm3106_vm6, %v3097_v47, %v2771_v44 }
 0x1d7   : > { %v3163_v35 = vsel %vm3139_vm9, %v3130_v14, %v2899_v45 }
 0x1d8   : > { %7117 = vmatmul.mubr.msk.bf16.gmra.mrb[20].mxu0 %vm3227_vm10, %v3163_v35 }
 0x1d9   : > { %v1748_v49 = vpop.permute.xlu1 %1747  ;;  %v1989_v9 = vpop.permute.xlu0 %1988 }
 0x1da   : > { %v2934_v34 = vsel %vm2908_vm12, %v10685_v25, %v1748_v49 }
 0x1db   : > { %v2967_v19 = vsel %vm2941_vm13, %v2934_v34, %v1877_v27 }
 0x1dc   : > { %v3000_v54 = vsel %vm2974_vm14, %v2967_v19, %v1989_v9 }
 0x1dd   : > { %v1750_v58 = vpop.permute.xlu1 %1749  ;;  %v2261_v29 = vpop.permute.xlu0 %2260 }
 0x1de   : > { %v3033_v62 = vsel %vm3007_vm15, %v3000_v54, %v2261_v29  ;;  %v2936_v42 = vsel %vm2908_vm12, %v10686_v33, %v1750_v58 }
 0x1e1   : > { %v1879_v17 = vpop.permute.xlu1 %1878  ;;  %v2389_v36 = vpop.permute.xlu0 %2388 }
 0x1e2   : > { %v3066_v40 = vsel %vm3040_vm0, %v3033_v62, %v2389_v36  ;;  %v2969_v61 = vsel %vm2941_vm13, %v2936_v42, %v1879_v17  ;;  %v9216_v42 = vld [vmem:[%s10518_s4] ss:$0 sm:$0xff] }
 0x1e5   : > { %v1991_v6 = vpop.permute.xlu1 %1990  ;;  %v2501_v56 = vpop.permute.xlu0 %2500 }
 0x1e6   : > { %v3099_v30 = vsel %vm3073_vm1, %v3066_v40, %v2501_v56  ;;  %v3002_v0 = vsel %vm2974_vm14, %v2969_v61, %v1991_v6 }
 0x1e9   : > { %v2263_v37 = vpop.permute.xlu1 %2262  ;;  %v2773_v12 = vpop.permute.xlu0 %2772 }
 0x1ea   : > { %v3132_v43 = vsel %vm3106_vm6, %v3099_v30, %v2773_v12  ;;  %v3035_v48 = vsel %vm3007_vm15, %v3002_v0, %v2263_v37 }
 0x1ed   : > { %v2391_v22 = vpop.permute.xlu1 %2390  ;;  %v2901_v3 = vpop.permute.xlu0 %2900 }
 0x1ee   : > { %v3165_v28 = vsel %vm3139_vm9, %v3132_v43, %v2901_v3  ;;  %v3068_v10 = vsel %vm3040_vm0, %v3035_v48, %v2391_v22 }
 0x1ef   : > { %7120 = vmatprep.mubr.msk.bf16.mxu0 %vm3227_vm10, %v3165_v28 }
 0x1f1   : > { %v2503_v50 = vpop.permute.xlu1 %2502  ;;  %v2903_v21 = vpop.permute.xlu0 %2902 }
 0x1f2   : > { %v3101_v63 = vsel %vm3073_vm1, %v3068_v10, %v2503_v50 }
 0x1f5   : > { %v2775_v51 = vpop.permute.xlu1 %2774  ;;  %v1881_v55 = vpop.permute.xlu0 %1880 }
 0x1f6   : > { %v3134_v1 = vsel %vm3106_vm6, %v3101_v63, %v2775_v51 }
 0x1f7   : > { %v3167_v52 = vsel %vm3139_vm9, %v3134_v1, %v2903_v21 }
 0x1f8   : > { %7121 = vmatmul.mubr.msk.bf16.gmra.mrb[24].mxu0 %vm3227_vm10, %v3167_v52 }
 0x1f9   : > { %v1752_v13 = vpop.permute.xlu1 %1751  ;;  %v1993_v16 = vpop.permute.xlu0 %1992 }
 0x1fa   : > { %v2938_v44 = vsel %vm2908_vm12, %v8832_v7, %v1752_v13 }
 0x1fb   : > { %v2971_v35 = vsel %vm2941_vm13, %v2938_v44, %v1881_v55 }
 0x1fc   : > { %v3004_v9 = vsel %vm2974_vm14, %v2971_v35, %v1993_v16 }
 0x1fd   : > { %v1754_v45 = vpop.permute.xlu1 %1753  ;;  %v2265_v15 = vpop.permute.xlu0 %2264 }
 0x1fe   : > { %v3037_v17 = vsel %vm3007_vm15, %v3004_v9, %v2265_v15  ;;  %v2940_v54 = vsel %vm2908_vm12, %v8866_v2, %v1754_v45  ;;  %v9211_v2 = vld [vmem:[%s10517_s3] ss:$0 sm:$0xff]  ;;  %vm9231_vm12 = vmand %vm3535_vm11, %vm1093_vm7  ;;  %vm5918_vm7 = vcmask 261120  }
 0x201   : > { %v1883_v47 = vpop.permute.xlu1 %1882  ;;  %v2393_v14 = vpop.permute.xlu0 %2392 }
 0x202   : > { %v3070_v25 = vsel %vm3040_vm0, %v3037_v17, %v2393_v14  ;;  %v2973_v37 = vsel %vm2941_vm13, %v2940_v54, %v1883_v47  ;;  %v4019_v14 = vld [vmem:[#allocation3 + $0x18] sm:$0xf]  ;;  %v4010_v17 = vld [vmem:[#allocation3 + $0xc] sm:$0xf] }
 0x205   : > { %v1995_v27 = vpop.permute.xlu1 %1994  ;;  %v2505_v49 = vpop.permute.xlu0 %2504 }
 0x206   : > { %v3103_v36 = vsel %vm3073_vm1, %v3070_v25, %v2505_v49  ;;  %v3006_v12 = vsel %vm2974_vm14, %v2973_v37, %v1995_v27  ;;  %vm9238_vm14 = vmand %vm3538_vm4, %vm768_vm5  ;;  %vm5853_vm4 = vcmask 130048   ;;  %vm10694_vm5 = vcmask 64512  }
 0x209   : > { %v2267_v58 = vpop.permute.xlu1 %2266  ;;  %v2777_v29 = vpop.permute.xlu0 %2776 }
 0x20a   : > { %v3136_v6 = vsel %vm3106_vm6, %v3103_v36, %v2777_v29  ;;  %v3039_v40 = vsel %vm3007_vm15, %v3006_v12, %v2267_v58 }
 0x20d   : > { %v2395_v34 = vpop.permute.xlu1 %2394  ;;  %v2905_v19 = vpop.permute.xlu0 %2904 }
 0x20e   : > { %v3169_v7 = vsel %vm3139_vm9, %v3136_v6, %v2905_v19  ;;  %v3072_v22 = vsel %vm3040_vm0, %v3039_v40, %v2395_v34  ;;  %v4016_v40 = vld [vmem:[#allocation3 + $0x14] sm:$0x1]  ;;  %vm5951_vm0 = vcmask 326656  }
 0x20f   : > { %7124 = vmatprep.mubr.msk.bf16.mxu0 %vm3227_vm10, %v3169_v7  ;;  %v4023_v7 = vld [vmem:[#allocation3 + $0x20] sm:$0x1] }
 0x211   : > { %v2507_v56 = vpop.permute.xlu1 %2506 }
 0x212   : > { %v3105_v32 = vsel %vm3073_vm1, %v3072_v22, %v2507_v56 }
 0x215   : > { %v2779_v62 = vpop.permute.xlu1 %2778 }
 0x216   : > { %v3138_v53 = vsel %vm3106_vm6, %v3105_v32, %v2779_v62  ;;  %vm6016_vm6 = vcmask 457728  }
 0x219   : > { %v2907_v30 = vpop.permute.xlu1 %2906 }
 0x21a   : > { %v3171_v24 = vsel %vm3139_vm9, %v3138_v53, %v2907_v30  ;;  %vm6049_vm9 = vcmask 523264  }
 0x21b   : > { %7125 = vmatmul.mubr.msk.bf16.gmra.mrb[28].mxu0 %vm3227_vm10, %v3171_v24  ;;  %vm6150_vm10 = vcmask 1043456  }
 0x248   : > { %v7098_v33 = vpop.f32.mrb[0].mxu0 }
 0x249   : > { %v3434_v43 = vmul.f32 %v7098_v33, %v9211_v2  ;;  %v3298_v3 = vpop.f32.mrb[1].mxu0 }
 0x24a   : > { %v3432_v28 = vmul.f32 %v9211_v2, %v3298_v3  ;;  %v7099_v59 = vpop.f32.mrb[2].mxu0 }
 0x24b   : > { %v3473_v20 = vadd.f32 %v9216_v42, %v3434_v43  ;;  %v3435_v57 = vmul.f32 %v7099_v59, %v9211_v2  ;;  %v3301_v61 = vpop.f32.mrb[3].mxu0 }
 0x24c   : > { %v3471_v50 = vadd.f32 %v9216_v42, %v3432_v28  ;;  %v3433_v0 = vmul.f32 %v9211_v2, %v3301_v61 }
 0x24d   : > { %v3505_v8 = vmax.f32 %v3473_v20, 0.0  ;;  %v3474_v38 = vadd.f32 %v9216_v42, %v3435_v57 }
 0x24e   : > { %v3503_v48 = vmax.f32 %v3471_v50, 0.0  ;;  %v3472_v21 = vadd.f32 %v9216_v42, %v3433_v0 }
 0x24f   : > { %v7008_v10 = vpack.c.bf16 %v3505_v8, %v3505_v8  ;;  %v3506_v26 = vmax.f32 %v3474_v38, 0.0 }
 0x250   : > { %v7006_v63 = vpack.c.bf16 %v3503_v48, %v3503_v48  ;;  %v3504_v51 = vmax.f32 %v3472_v21, 0.0  ;;  %v7102_v1 = vpop.f32.mrb[4].mxu0 }
 0x251   : > { %v3705_v18 = vshrl.u32 %v7008_v10, 16  ;;  %v3708_v60 = vshll.u32 %v7008_v10, 16  ;;  %v7009_v55 = vpack.c.bf16 %v3506_v26, %v3506_v26  ;;  %v3438_v52 = vmul.f32 %v7102_v1, %v9211_v2  ;;  %v3314_v31 = vpop.f32.mrb[5].mxu0  ;;  %v4033_v26 = vld [vmem:[#allocation3 + $0x30] sm:$0xf] }
 0x252   : > { %v3688_v46 = vshrl.u32 %v7006_v63, 16  ;;  %v3691_v39 = vshll.u32 %v7006_v63, 16  ;;  %v7007_v41 = vpack.c.bf16 %v3504_v51, %v3504_v51  ;;  %v3436_v13 = vmul.f32 %v9211_v2, %v3314_v31  ;;  %v7103_v5 = vpop.f32.mrb[6].mxu0 }
 0x253   : > { %v3707_v16 = vrot.slane %v3705_v18, 7  ;;  %v3713_v23 = vshrl.u32 %v7009_v55, 16  ;;  %v3716_v45 = vshll.u32 %v7009_v55, 16  ;;  %v3477_v15 = vadd.f32 %v9216_v42, %v3438_v52  ;;  %v3317_v47 = vpop.f32.mrb[7].mxu0  ;;  %v4026_v52 = vld [vmem:[#allocation3 + $0x24] sm:$0xf] }
 0x254   : > { %v3690_v27 = vrot.slane %v3688_v46, 7  ;;  %v3696_v35 = vshrl.u32 %v7007_v41, 16  ;;  %v3699_v49 = vshll.u32 %v7007_v41, 16  ;;  %v3475_v9 = vadd.f32 %v9216_v42, %v3436_v13 }
 0x255   : > { %v3710_v58 = vor.u32 %v3708_v60, %v3707_v16  ;;  %v3711_v29 = vrot.slane %v3707_v16, 4  ;;  %v3715_v25 = vrot.slane %v3713_v23, 7  ;;  %v3509_v34 = vmax.f32 %v3477_v15, 0.0 }
 0x256   : > { %v3693_v36 = vor.u32 %v3691_v39, %v3690_v27  ;;  %v3694_v6 = vrot.slane %v3690_v27, 4  ;;  %v3698_v56 = vrot.slane %v3696_v35, 7  ;;  %v3507_v54 = vmax.f32 %v3475_v9, 0.0 }
 0x257   : > { %v4020_v37 = vsel %vm9231_vm12, %v3710_v58, %v4019_v14  ;;  %v3718_v12 = vor.u32 %v3716_v45, %v3715_v25  ;;  %v3720_v62 = vrot.slane %v3715_v25, 4  ;;  %v7012_v22 = vpack.c.bf16 %v3509_v34, %v3509_v34 }
 0x258   : > { %4021 = vst [vmem:[#allocation3 + $0x18] sm:$0xf] %v4020_v37  ;;  %v4011_v32 = vsel %vm9231_vm12, %v3693_v36, %v4010_v17  ;;  %v3701_v53 = vor.u32 %v3699_v49, %v3698_v56  ;;  %v3703_v30 = vrot.slane %v3698_v56, 4  ;;  %v7010_v24 = vpack.c.bf16 %v3507_v54, %v3507_v54 }
 0x259   : > { %4012 = vst [vmem:[#allocation3 + $0xc] sm:$0xf] %v4011_v32  ;;  %v3719_v43 = vsel %vm7775_vm8, %v3711_v29, %v3718_v12  ;;  %v4024_v3 = vsel %vm9238_vm14, %v3720_v62, %v4023_v7  ;;  %v3739_v28 = vshrl.u32 %v7012_v22, 16  ;;  %v3742_v61 = vshll.u32 %v7012_v22, 16  ;;  %v4037_v22 = vld [vmem:[#allocation3 + $0x38] sm:$0x1] }
 0x25a   : > { %4022 = vst.msk [vmem:[#allocation3 + $0x1c] sm:$0xf] %vm3535_vm11, %v3719_v43  ;;  %4025 = vst [vmem:[#allocation3 + $0x20] sm:$0x1] %v4024_v3  ;;  %v3702_v20 = vsel %vm7775_vm8, %v3694_v6, %v3701_v53  ;;  %v4017_v57 = vsel %vm9238_vm14, %v3703_v30, %v4016_v40  ;;  %v3722_v50 = vshrl.u32 %v7010_v24, 16  ;;  %v3439_v38 = vmul.f32 %v7103_v5, %v9211_v2 }
 0x25b   : > { %v7106_v59 = vpop.f32.mrb[8].mxu0  ;;  %4013 = vst.msk [vmem:[#allocation3 + $0x10] sm:$0xf] %vm3535_vm11, %v3702_v20  ;;  %4018 = vst [vmem:[#allocation3 + $0x14] sm:$0x1] %v4017_v57  ;;  %v9256_v8 = vrot.slane %v3739_v28, 7  ;;  %v3437_v48 = vmul.f32 %v9211_v2, %v3317_v47 }
 0x25c   : > { %v3330_v0 = vpop.f32.mrb[9].mxu0  ;;  %v3442_v21 = vmul.f32 %v7106_v59, %v9211_v2  ;;  %v9261_v63 = vrot.slane %v3722_v50, 7  ;;  %v3725_v51 = vshll.u32 %v7010_v24, 16  ;;  %v3478_v31 = vadd.f32 %v9216_v42, %v3439_v38  ;;  %v4030_v32 = vld [vmem:[#allocation3 + $0x2c] sm:$0x1] }
 0x25d   : > { %v7107_v10 = vpop.f32.mrb[10].mxu0  ;;  %v3440_v1 = vmul.f32 %v9211_v2, %v3330_v0  ;;  %v3744_v55 = vor.u32 %v3742_v61, %v9256_v8  ;;  %v3476_v46 = vadd.f32 %v9216_v42, %v3437_v48  ;;  %v3745_v39 = vrot.slane %v9256_v8, 4  ;;  %v4047_v59 = vld [vmem:[#allocation3 + $0x48] sm:$0xf]  ;;  %v4040_v20 = vld [vmem:[#allocation3 + $0x3c] sm:$0xf] }
 0x25e   : > { %v3443_v18 = vmul.f32 %v7107_v10, %v9211_v2  ;;  %v3333_v60 = vpop.f32.mrb[11].mxu0  ;;  %v3727_v41 = vor.u32 %v3725_v51, %v9261_v63  ;;  %v3481_v13 = vadd.f32 %v9216_v42, %v3442_v21  ;;  %v3510_v23 = vmax.f32 %v3478_v31, 0.0 }
 0x25f   : > { %v3479_v5 = vadd.f32 %v9216_v42, %v3440_v1  ;;  %v4034_v16 = vsel %vm9231_vm12, %v3744_v55, %v4033_v26  ;;  %v3508_v45 = vmax.f32 %v3476_v46, 0.0  ;;  %v3441_v35 = vmul.f32 %v9211_v2, %v3333_v60  ;;  %v4253_v17 = vld [vmem:[#allocation3 + $0x18] sm:$0xf] }
 0x260   : > { %v3482_v15 = vadd.f32 %v9216_v42, %v3443_v18  ;;  %4035 = vst [vmem:[#allocation3 + $0x30] sm:$0xf] %v4034_v16  ;;  %v4027_v47 = vsel %vm9231_vm12, %v3727_v41, %v4026_v52  ;;  %v3513_v14 = vmax.f32 %v3481_v13, 0.0  ;;  %v3728_v49 = vrot.slane %v9261_v63, 4  ;;  %v4190_v62 = vld [vmem:[#allocation3 + $0x18] sm:$0xf] }
 0x261   : > { %v3511_v27 = vmax.f32 %v3479_v5, 0.0  ;;  %4028 = vst [vmem:[#allocation3 + $0x24] sm:$0xf] %v4027_v47  ;;  %v7013_v9 = vpack.c.bf16 %v3510_v23, %v3510_v23  ;;  %v7011_v58 = vpack.c.bf16 %v3508_v45, %v3508_v45  ;;  %v9279_v25 = vld [vmem:[#allocation3 + $0x1c] sm:$0xf]  ;;  %v3480_v6 = vadd.f32 %v9216_v42, %v3441_v35 }
 0x262   : > { %v3514_v29 = vmax.f32 %v3482_v15, 0.0  ;;  %v7016_v34 = vpack.c.bf16 %v3513_v14, %v3513_v14  ;;  %v9283_v7 = vcombine.low %v4253_v17, %v9279_v25  ;;  %v4191_v40 = vld [vmem:[#allocation3 + $0x1c] sm:$0xf]  ;;  %v4237_v50 = vld [vmem:[#allocation3 + $0x18] sm:$0xe] }
 0x263   : > { %v7014_v36 = vpack.c.bf16 %v3511_v27, %v3511_v27  ;;  %v3747_v56 = vshrl.u32 %v7013_v9, 16  ;;  %v3750_v54 = vshll.u32 %v7013_v9, 16  ;;  %v3730_v37 = vshrl.u32 %v7011_v58, 16  ;;  %v9293_v48 = vld [vmem:[#allocation3 + $0x20] ss:$0 sps:$4 sm:$0x11]  }
 0x264   : > { %v3733_v12 = vshll.u32 %v7011_v58, 16  ;;  %v3773_v53 = vshrl.u32 %v7016_v34, 16  ;;  %v3776_v30 = vshll.u32 %v7016_v34, 16  ;;  %5389 = vrot.lane.b32.xlu0 %v9283_v7, %s7537_s15  ;;  %v7017_v57 = vpack.c.bf16 %v3514_v29, %v3514_v29  ;;  %v9295_v1 = vld [vmem:[#allocation3 + $0x20] ss:$0 sps:$4 sm:$0x11]  }
 0x265   : > { %v3756_v24 = vshrl.u32 %v7014_v36, 16  ;;  %v3759_v43 = vshll.u32 %v7014_v36, 16  ;;  %v3749_v3 = vrot.slane %v3747_v56, 7  ;;  %v3732_v28 = vrot.slane %v3730_v37, 7  ;;  %v4188_v31 = vld [vmem:[#allocation3 + $0xc] sm:$0xf] }
 0x266   : > { %v3512_v61 = vmax.f32 %v3480_v6, 0.0  ;;  %v9287_v0 = vrot.slane %v3773_v53, 7  ;;  %v9291_v38 = vcombine.low %v4190_v62, %v4191_v40  ;;  %v6915_v21 = vcombine.low %v4237_v50, %v4191_v40  ;;  %v9303_v46 = vld [vmem:[#allocation3 + $0x10] sm:$0xf]  ;;  %v4301_v45 = vld [vmem:[#allocation3 + $0x18] sm:$0xe] }
 0x267   : > { %v9289_v8 = vrot.slane %v3756_v24, 7  ;;  %v3752_v10 = vor.u32 %v3750_v54, %v3749_v3  ;;  %v3754_v26 = vrot.slane %v3749_v3, 4  ;;  %v3735_v63 = vor.u32 %v3733_v12, %v3732_v28  ;;  %v4127_v15 = vld [vmem:[#allocation3 + $0x10] sm:$0xf]  ;;  %v4173_v37 = vld [vmem:[#allocation3 + $0xc] sm:$0xe] }
 0x268   : > { %v3737_v51 = vrot.slane %v3732_v28, 4  ;;  %v3778_v18 = vor.u32 %v3776_v30, %v9287_v0  ;;  %v3779_v60 = vrot.slane %v9287_v0, 4  ;;  %4879 = vrot.lane.b32.xlu1 %v9291_v38, %s7532_s17  ;;  %v3781_v14 = vshrl.u32 %v7017_v57, 16  ;;  %v9319_v35 = vld [vmem:[#allocation3 + $0x14] ss:$0 sps:$4 sm:$0x11]  }
 0x269   : > { %v3761_v55 = vor.u32 %v3759_v43, %v9289_v8  ;;  %v3762_v52 = vrot.slane %v9289_v8, 4  ;;  %v3753_v41 = vsel %vm7775_vm8, %v3745_v39, %v3752_v10  ;;  %v4038_v13 = vsel %vm9238_vm14, %v3754_v26, %v4037_v22  ;;  %v4051_v62 = vld [vmem:[#allocation3 + $0x50] sm:$0x1]  ;;  %v4126_v3 = vld [vmem:[#allocation3 + $0xc] sm:$0xf] }
 0x26a   : > { %v3736_v5 = vsel %vm7775_vm8, %v3728_v49, %v3735_v63  ;;  %v4031_v16 = vsel %vm9238_vm14, %v3737_v51, %v4030_v32  ;;  %4036 = vst.msk [vmem:[#allocation3 + $0x34] sm:$0xf] %vm3535_vm11, %v3753_v41  ;;  %4039 = vst [vmem:[#allocation3 + $0x38] sm:$0x1] %v4038_v13  ;;  %v4048_v39 = vsel %vm9231_vm12, %v3778_v18, %v4047_v59  ;;  %v3784_v27 = vshll.u32 %v7017_v57, 16 }
 0x26b   : > { %v7110_v23 = vpop.f32.mrb[12].mxu0  ;;  %4029 = vst.msk [vmem:[#allocation3 + $0x28] sm:$0xf] %vm3535_vm11, %v3736_v5  ;;  %4032 = vst [vmem:[#allocation3 + $0x2c] sm:$0x1] %v4031_v16  ;;  %v4041_v47 = vsel %vm9231_vm12, %v3761_v55, %v4040_v20  ;;  %v7015_v9 = vpack.c.bf16 %v3512_v61, %v3512_v61  ;;  %v5232_v58 = vrot.slane %v6915_v21, 1  ;;  %v9323_v17 = vcombine.low %v4188_v31, %v9303_v46 }
 0x26c   : > { %v3346_v49 = vpop.f32.mrb[13].mxu0  ;;  %4049 = vst [vmem:[#allocation3 + $0x48] sm:$0xf] %v4048_v39  ;;  %4042 = vst [vmem:[#allocation3 + $0x3c] sm:$0xf] %v4041_v47  ;;  %v5233_v29 = vrot.slane %v9293_v48, 1  ;;  %v3446_v6 = vmul.f32 %v7110_v23, %v9211_v2  ;;  %v6962_v56 = vcombine.low %v4301_v45, %v9279_v25  ;;  %v6867_v53 = vcombine.low %v4173_v37, %v4127_v15 }
 0x26d   : > { %v7111_v34 = vpop.f32.mrb[14].mxu0  ;;  %v3783_v36 = vrot.slane %v3781_v14, 7  ;;  %v5742_v54 = vrot.slane %v9295_v1, 1  ;;  %v3764_v40 = vshrl.u32 %v7015_v9, 16  ;;  %v3767_v22 = vshll.u32 %v7015_v9, 16  ;;  %4877 = vrot.lane.b32.xlu0 %v9323_v17, %s7532_s17 }
 0x26e   : > { %v3349_v12 = vpop.f32.mrb[15].mxu0  ;;  %v5234_v32 = vsel %vm1803_vm3, %v5232_v58, %v5233_v29  ;;  %v3485_v25 = vadd.f32 %v9216_v42, %v3446_v6  ;;  %v5741_v43 = vrot.slane %v6962_v56, 1  ;;  %v4720_v59 = vrot.slane %v6867_v53, 1  ;;  %v4129_v61 = vld [vmem:[#allocation3 + $0x1c] sm:$0xf] }
 0x26f   : > { %v3786_v30 = vor.u32 %v3784_v27, %v3783_v36  ;;  %v3788_v24 = vrot.slane %v3783_v36, 4  ;;  %5279 = vrot.lane.b32.xlu1 %v5234_v32, %s7540_s25  ;;  %v3766_v28 = vrot.slane %v3764_v40, 7  ;;  %v4721_v20 = vrot.slane %v9319_v35, 1  ;;  %v4044_v21 = vld [vmem:[#allocation3 + $0x44] sm:$0x1] }
 0x270   : > { %v9334_v57 = vcombine.low %v4126_v3, %v4127_v15  ;;  %v3517_v10 = vmax.f32 %v3485_v25, 0.0  ;;  %v5743_v26 = vsel %vm1803_vm3, %v5741_v43, %v5742_v54  ;;  %v3444_v55 = vmul.f32 %v9211_v2, %v3346_v49  ;;  %v9345_v31 = vld [vmem:[#allocation3 + $0x20] ss:$0 sps:$4 sm:$0x11]   ;;  %v4174_v16 = vld [vmem:[#allocation3 + $0x18] sm:$0xe] }
 0x271   : > { %v3787_v50 = vsel %vm7775_vm8, %v3779_v60, %v3786_v30  ;;  %v4052_v0 = vsel %vm9238_vm14, %v3788_v24, %v4051_v62  ;;  %v3769_v63 = vor.u32 %v3767_v22, %v3766_v28  ;;  %v3771_v51 = vrot.slane %v3766_v28, 4  ;;  %5789 = vrot.lane.b32.xlu0 %v5743_v26, %s7541_s26  ;;  %v4128_v60 = vld [vmem:[#allocation3 + $0x18] sm:$0xf]  ;;  %v4236_v54 = vld [vmem:[#allocation3 + $0xc] sm:$0xe] }
 0x272   : > { %4050 = vst.msk [vmem:[#allocation3 + $0x4c] sm:$0xf] %vm3535_vm11, %v3787_v50  ;;  %4053 = vst [vmem:[#allocation3 + $0x50] sm:$0x1] %v4052_v0  ;;  %v4722_v18 = vsel %vm1803_vm3, %v4720_v59, %v4721_v20  ;;  %v7020_v41 = vpack.c.bf16 %v3517_v10, %v3517_v10  ;;  %v3447_v13 = vmul.f32 %v7111_v34, %v9211_v2  ;;  %v4724_v29 = vrot.slane %v9345_v31, 1 }
 0x273   : > { %4767 = vrot.lane.b32.xlu1 %v4722_v18, %s7539_s16  ;;  %v3445_v5 = vmul.f32 %v9211_v2, %v3349_v12  ;;  %v9350_v23 = vcombine.low %v4128_v60, %v4129_v61  ;;  %v3770_v45 = vsel %vm7775_vm8, %v3762_v52, %v3769_v63  ;;  %v4045_v15 = vsel %vm9238_vm14, %v3771_v51, %v4044_v21  ;;  %v4061_v37 = vld [vmem:[#allocation3 + $0x60] sm:$0xf]  ;;  %v9369_v25 = vld [vmem:[#allocation3 + $0x14] ss:$0 sps:$4 sm:$0x11]  }
 0x274   : > { %v3483_v39 = vadd.f32 %v9216_v42, %v3444_v55  ;;  %v6868_v47 = vcombine.low %v4174_v16, %v4129_v61  ;;  %4043 = vst.msk [vmem:[#allocation3 + $0x40] sm:$0xf] %vm3535_vm11, %v3770_v45  ;;  %4046 = vst [vmem:[#allocation3 + $0x44] sm:$0x1] %v4045_v15  ;;  %v3807_v14 = vshrl.u32 %v7020_v41, 16  ;;  %v3810_v27 = vshll.u32 %v7020_v41, 16 }
 0x275   : > { %v3486_v49 = vadd.f32 %v9216_v42, %v3447_v13  ;;  %v3484_v9 = vadd.f32 %v9216_v42, %v3445_v5  ;;  %v4970_v52 = vshrl.u32 %v9291_v38, 16  ;;  %v4972_v56 = vshll.u32 %v9291_v38, 16  ;;  %v4054_v50 = vld [vmem:[#allocation3 + $0x54] sm:$0xf]  ;;  %v4065_v63 = vld [vmem:[#allocation3 + $0x68] sm:$0x1] }
 0x276   : > { %v3515_v58 = vmax.f32 %v3483_v39, 0.0  ;;  %v4723_v8 = vrot.slane %v6868_v47, 1  ;;  %v3809_v34 = vrot.slane %v3807_v14, 7  ;;  %v4977_v40 = vshll.u32 %v9293_v48, 16  ;;  %v4058_v13 = vld [vmem:[#allocation3 + $0x5c] sm:$0x1] }
 0x277   : > { %v3518_v36 = vmax.f32 %v3486_v49, 0.0  ;;  %v3516_v6 = vmax.f32 %v3484_v9, 0.0  ;;  %v6914_v22 = vcombine.low %v4236_v54, %v9303_v46  ;;  %v4974_v38 = vrot.slane %v4972_v56, 1 }
 0x278   : > { %v7018_v12 = vpack.c.bf16 %v3515_v58, %v3515_v58  ;;  %v4725_v62 = vsel %vm1803_vm3, %v4723_v8, %v4724_v29  ;;  %v3812_v32 = vor.u32 %v3810_v27, %v3809_v34  ;;  %v3813_v53 = vrot.slane %v3809_v34, 4 }
 0x279   : > { %v7021_v30 = vpack.c.bf16 %v3518_v36, %v3518_v36  ;;  %v7019_v24 = vpack.c.bf16 %v3516_v6, %v3516_v6  ;;  %4769 = vrot.lane.b32.xlu0 %v4725_v62, %s7539_s16  ;;  %v4979_v28 = vrot.slane %v4977_v40, 1  ;;  %v4975_v21 = vor.u32 %v4974_v38, %v4970_v52 }
 0x27a   : > { %v3790_v43 = vshrl.u32 %v7018_v12, 16  ;;  %v3793_v3 = vshll.u32 %v7018_v12, 16  ;;  %v4062_v59 = vsel %vm9231_vm12, %v3812_v32, %v4061_v37  ;;  %v5229_v10 = vrot.slane %v6914_v22, 1  ;;  %v4195_v37 = vld [vmem:[#allocation3 + $0x34] sm:$0xf] }
 0x27b   : > { %v3815_v20 = vshrl.u32 %v7021_v30, 16  ;;  %v3818_v61 = vshll.u32 %v7021_v30, 16  ;;  %v3798_v48 = vshrl.u32 %v7019_v24, 16  ;;  %4063 = vst [vmem:[#allocation3 + $0x60] sm:$0xf] %v4062_v59  ;;  %v3801_v0 = vshll.u32 %v7019_v24, 16 }
 0x27c   : > { %v3792_v46 = vrot.slane %v3790_v43, 7  ;;  %v5230_v18 = vrot.slane %v9369_v25, 1  ;;  %v4470_v55 = vshrl.u32 %v9350_v23, 16  ;;  %v4980_v5 = vsel %vm1530_vm2, %v4975_v21, %v4979_v28  ;;  %v4258_v32 = vld [vmem:[#allocation3 + $0x34] sm:$0xf] }
 0x27d   : > { %v3817_v26 = vrot.slane %v3815_v20, 7  ;;  %v3800_v51 = vrot.slane %v3798_v48, 7  ;;  %v4472_v16 = vshll.u32 %v9350_v23, 16  ;;  %5151 = vrot.lane.b32.xlu1 %v4980_v5, %s7542_s29  ;;  %v4477_v9 = vshll.u32 %v9345_v31, 16  ;;  %v9403_v24 = vld [vmem:[#allocation3 + $0x28] sm:$0xf] }
 0x27e   : > { %v3795_v60 = vor.u32 %v3793_v3, %v3792_v46  ;;  %v3796_v41 = vrot.slane %v3792_v46, 4  ;;  %v5231_v27 = vsel %vm1803_vm3, %v5229_v10, %v5230_v18  ;;  %v5472_v36 = vshll.u32 %v9283_v7, 16  ;;  %v4239_v43 = vld [vmem:[#allocation3 + $0x30] sm:$0xe]  ;;  %v9408_v20 = vld [vmem:[#allocation3 + $0x28] sm:$0xf] }
 0x27f   : > { %v3820_v45 = vor.u32 %v3818_v61, %v3817_v26  ;;  %v3822_v15 = vrot.slane %v3817_v26, 4  ;;  %v3803_v39 = vor.u32 %v3801_v0, %v3800_v51  ;;  %v3805_v47 = vrot.slane %v3800_v51, 4  ;;  %5277 = vrot.lane.b32.xlu0 %v5231_v27, %s7540_s25  ;;  %v4194_v59 = vld [vmem:[#allocation3 + $0x30] sm:$0xf]  ;;  %v7459_v48 = vld [vmem:[%s10519_s5] sm:$0xff]  }
 0x280   : > { %v4055_v14 = vsel %vm9231_vm12, %v3795_v60, %v4054_v50  ;;  %v4474_v49 = vrot.slane %v4472_v16, 1  ;;  %v4479_v34 = vrot.slane %v4477_v9, 1  ;;  %v5477_v6 = vshll.u32 %v9295_v1, 16  ;;  %v4303_v61 = vld [vmem:[#allocation3 + $0x30] sm:$0xe]  ;;  %7128 = vmatprep.subr.bf16.mxu1 %v7459_v48 }
 0x281   : > { %4056 = vst [vmem:[#allocation3 + $0x54] sm:$0xf] %v4055_v14  ;;  %v3821_v58 = vsel %vm7775_vm8, %v3813_v53, %v3820_v45  ;;  %v4066_v8 = vsel %vm9238_vm14, %v3822_v15, %v4065_v63  ;;  %v3804_v29 = vsel %vm7775_vm8, %v3796_v41, %v3803_v39  ;;  %v4059_v52 = vsel %vm9238_vm14, %v3805_v47, %v4058_v13  ;;  %v4257_v50 = vld [vmem:[#allocation3 + $0x30] sm:$0xf]  ;;  %v4255_v0 = vld [vmem:[#allocation3 + $0x24] sm:$0xf] }
 0x282   : > { %4064 = vst.msk [vmem:[#allocation3 + $0x64] sm:$0xf] %vm3535_vm11, %v3821_v58  ;;  %4067 = vst [vmem:[#allocation3 + $0x68] sm:$0x1] %v4066_v8  ;;  %v4475_v31 = vor.u32 %v4474_v49, %v4470_v55  ;;  %v4460_v56 = vshll.u32 %v9334_v57, 16  ;;  %v4465_v54 = vshll.u32 %v9319_v35, 16  ;;  %v9420_v41 = vcombine.low %v4194_v59, %v4195_v37  ;;  %7129 = vmatpush3.bf16.msra.mxu1 %v7459_v48 }
 0x283   : > { %4057 = vst.msk [vmem:[#allocation3 + $0x58] sm:$0xf] %vm3535_vm11, %v3804_v29  ;;  %4060 = vst [vmem:[#allocation3 + $0x5c] sm:$0x1] %v4059_v52  ;;  %v5470_v62 = vshrl.u32 %v9283_v7, 16  ;;  %v5474_v40 = vrot.slane %v5472_v36, 1  ;;  %v6964_v13 = vcombine.low %v4303_v61, %v4258_v32  ;;  %v9423_v15 = vcombine.low %v4257_v50, %v4258_v32 }
 0x284   : > { %v4480_v12 = vsel %vm1530_vm2, %v4475_v31, %v4479_v34  ;;  %v4960_v22 = vshll.u32 %v9323_v17, 16  ;;  %v4458_v53 = vshrl.u32 %v9334_v57, 16  ;;  %v4462_v30 = vrot.slane %v4460_v56, 1  ;;  %v9405_v35 = vld [vmem:[#allocation3 + $0x38] ss:$0 sps:$4 sm:$0x11]  }
 0x285   : > { %4641 = vrot.lane.b32.xlu1 %v4480_v12, %s7530_s12  ;;  %v4958_v1 = vshrl.u32 %v9323_v17, 16  ;;  %v5475_v3 = vor.u32 %v5474_v40, %v5470_v62  ;;  %v5479_v38 = vrot.slane %v5477_v6, 1  ;;  %v4965_v7 = vshll.u32 %v9369_v25, 16  ;;  %v9413_v21 = vld [vmem:[#allocation3 + $0x38] ss:$0 sps:$4 sm:$0x11]  }
 0x286   : > { %v4962_v28 = vrot.slane %v4960_v22, 1  ;;  %v4463_v46 = vor.u32 %v4462_v30, %v4458_v53  ;;  %v4467_v17 = vrot.slane %v4465_v54, 1  ;;  %v4131_v10 = vld [vmem:[#allocation3 + $0x28] sm:$0xf]  ;;  %v4192_v51 = vld [vmem:[#allocation3 + $0x24] sm:$0xf]  ;;  %v6917_v25 = vcombine.low %v4239_v43, %v4195_v37 }
 0x287   : > { %v5480_v26 = vsel %vm1530_vm2, %v5475_v3, %v5479_v38  ;;  %v9416_v18 = vld [vmem:[#allocation3 + $0x2c] ss:$0 sps:$4 sm:$0x11]   ;;  %v4133_v55 = vld [vmem:[#allocation3 + $0x34] sm:$0xf]  ;;  %v4967_v45 = vrot.slane %v4965_v7, 1  ;;  %v9426_v39 = vcombine.low %v4255_v0, %v9403_v24  ;;  %v9431_v49 = vcombine.low %v4192_v51, %v9408_v20 }
 0x288   : > { %v4963_v63 = vor.u32 %v4962_v28, %v4958_v1  ;;  %5661 = vrot.lane.b32.xlu0 %v5480_v26, %s7543_s10  ;;  %v4468_v60 = vsel %vm1530_vm2, %v4463_v46, %v4467_v17  ;;  %v4175_v5 = vld [vmem:[#allocation3 + $0x24] sm:$0xe]  ;;  %v4176_v16 = vld [vmem:[#allocation3 + $0x30] sm:$0xe]  ;;  %v5239_v9 = vrot.slane %v9405_v35, 1  ;;  %v5238_v34 = vrot.slane %v6917_v25, 1 }
 0x289   : > { %4639 = vrot.lane.b32.xlu1 %v4468_v60, %s7530_s12  ;;  %v6869_v47 = vcombine.low %v4175_v5, %v4131_v10  ;;  %v9428_v27 = vld [vmem:[#allocation3 + $0x38] ss:$0 sps:$4 sm:$0x11]   ;;  %v4130_v58 = vld [vmem:[#allocation3 + $0x24] sm:$0xf]  ;;  %v6870_v29 = vcombine.low %v4176_v16, %v4133_v55  ;;  %v5748_v36 = vrot.slane %v9413_v21, 1 }
 0x28a   : > { %v4968_v31 = vsel %vm1530_vm2, %v4963_v63, %v4967_v45  ;;  %v9437_v6 = vcombine.low %v4130_v58, %v4131_v10  ;;  %v5747_v54 = vrot.slane %v6964_v13, 1  ;;  %v4727_v37 = vrot.slane %v9416_v18, 1  ;;  %v4132_v62 = vld [vmem:[#allocation3 + $0x30] sm:$0xf]  ;;  %v4302_v26 = vld [vmem:[#allocation3 + $0x24] sm:$0xe] }
 0x28b   : > { %v7114_v14 = vpop.f32.mrb[16].mxu0  ;;  %v4996_v40 = vshll.u32 %v9420_v41, 16  ;;  %v4726_v32 = vrot.slane %v6869_v47, 1  ;;  %v9445_v53 = vcombine.low %v4132_v62, %v4133_v55  ;;  %v7460_v43 = vld [vmem:[%s10519_s5 + $0x8] sm:$0xff]   ;;  %v4729_v38 = vrot.slane %v6870_v29, 1 }
 0x28c   : > { %v3450_v8 = vmul.f32 %v7114_v14, %v9211_v2  ;;  %v3362_v52 = vpop.f32.mrb[17].mxu0  ;;  %5149 = vrot.lane.b32.xlu0 %v4968_v31, %s7542_s29  ;;  %v4730_v28 = vrot.slane %v9428_v27, 1  ;;  %v5001_v61 = vshll.u32 %v9405_v35, 16  ;;  %v9457_v17 = vld [vmem:[#allocation3 + $0x2c] ss:$0 sps:$4 sm:$0x11]   ;;  %7130 = vmatprep.subr.bf16.mxu1 %v7460_v43  ;;  %v5240_v50 = vsel %vm1803_vm3, %v5238_v34, %v5239_v9 }
 0x28d   : > { %v7115_v56 = vpop.f32.mrb[18].mxu0  ;;  %4883 = vrot.lane.b32.xlu1 %v9420_v41, %s7532_s17  ;;  %v3448_v30 = vmul.f32 %v9211_v2, %v3362_v52  ;;  %v4998_v59 = vrot.slane %v4996_v40, 1  ;;  %v4994_v10 = vshrl.u32 %v9420_v41, 16  ;;  %7131 = vmatpush3.bf16.msra.mxu1 %v7460_v43  ;;  %v7462_v35 = vld [vmem:[%s10519_s5 + $0x10] sm:$0xff]   ;;  %v5749_v63 = vsel %vm1803_vm3, %v5747_v54, %v5748_v36  ;;  %v4068_v40 = vld [vmem:[#allocation3 + $0x6c] sm:$0xf] }
 0x28e   : > { %v3489_v12 = vadd.f32 %v9216_v42, %v3450_v8  ;;  %v3365_v22 = vpop.f32.mrb[19].mxu0  ;;  %v3451_v1 = vmul.f32 %v7115_v56, %v9211_v2  ;;  %v6963_v55 = vcombine.low %v4302_v26, %v9403_v24  ;;  %v4728_v60 = vsel %vm1803_vm3, %v4726_v32, %v4727_v37  ;;  %7132 = vmatprep.subr.bf16.mxu1 %v7462_v35  ;;  %v4075_v24 = vld [vmem:[#allocation3 + $0x78] sm:$0xf] }
 0x28f   : > { %v3449_v7 = vmul.f32 %v9211_v2, %v3365_v22  ;;  %v3487_v48 = vadd.f32 %v9216_v42, %v3448_v30  ;;  %v4999_v5 = vor.u32 %v4998_v59, %v4994_v10  ;;  %v5003_v16 = vrot.slane %v5001_v61, 1 }
 0x290   : > { %v3521_v3 = vmax.f32 %v3489_v12, 0.0  ;;  %v3490_v46 = vadd.f32 %v9216_v42, %v3451_v1  ;;  %5393 = vrot.lane.b32.xlu0 %v9423_v15, %s7537_s15  ;;  %v4496_v8 = vshll.u32 %v9445_v53, 16  ;;  %v5744_v31 = vrot.slane %v6963_v55, 1  ;;  %v4079_v1 = vld [vmem:[#allocation3 + $0x80] sm:$0x1] }
 0x291   : > { %v3488_v2 = vadd.f32 %v9216_v42, %v3449_v7  ;;  %5391 = vrot.lane.b32.xlu1 %v9426_v39, %s7537_s15  ;;  %v3519_v51 = vmax.f32 %v3487_v48, 0.0  ;;  %v4731_v42 = vsel %vm1803_vm3, %v4729_v38, %v4730_v28  ;;  %7133 = vmatpush3.bf16.msra.mxu1 %v7462_v35  ;;  %v5745_v34 = vrot.slane %v9457_v17, 1  ;;  %v7465_v28 = vld [vmem:[%s10519_s5 + $0x18] sm:$0xff]   ;;  %v4072_v48 = vld [vmem:[#allocation3 + $0x74] sm:$0x1] }
 0x292   : > { %v7024_v0 = vpack.c.bf16 %v3521_v3, %v3521_v3  ;;  %v3522_v25 = vmax.f32 %v3490_v46, 0.0  ;;  %v4494_v54 = vshrl.u32 %v9445_v53, 16  ;;  %v4501_v37 = vshll.u32 %v9428_v27, 16  ;;  %7134 = vmatprep.subr.bf16.mxu1 %v7465_v28 }
 0x293   : > { %v3520_v13 = vmax.f32 %v3488_v2, 0.0  ;;  %v7022_v45 = vpack.c.bf16 %v3519_v51, %v3519_v51  ;;  %v4498_v38 = vrot.slane %v4496_v8, 1  ;;  %v5004_v46 = vsel %vm1530_vm2, %v4999_v5, %v5003_v16  ;;  %v4238_v2 = vld [vmem:[#allocation3 + $0x24] sm:$0xe] }
 0x294   : > { %v3841_v41 = vshrl.u32 %v7024_v0, 16  ;;  %v7025_v47 = vpack.c.bf16 %v3522_v25, %v3522_v25  ;;  %4881 = vrot.lane.b32.xlu0 %v9431_v49, %s7532_s17  ;;  %v3844_v9 = vshll.u32 %v7024_v0, 16  ;;  %v9494_v51 = vld [vmem:[#allocation3 + $0x2c] ss:$0 sps:$4 sm:$0x11]   ;;  %v6916_v25 = vcombine.low %v4238_v2, %v9408_v20 }
 0x295   : > { %v7023_v58 = vpack.c.bf16 %v3520_v13, %v3520_v13  ;;  %5283 = vrot.lane.b32.xlu1 %v5240_v50, %s7540_s25  ;;  %v3824_v29 = vshrl.u32 %v7022_v45, 16  ;;  %v3827_v62 = vshll.u32 %v7022_v45, 16  ;;  %7135 = vmatpush3.bf16.msra.mxu1 %v7465_v28  ;;  %v5484_v13 = vshll.u32 %v9426_v39, 16 }
 0x296   : > { %v3843_v14 = vrot.slane %v3841_v41, 7  ;;  %v3849_v52 = vshrl.u32 %v7025_v47, 16  ;;  %v3852_v32 = vshll.u32 %v7025_v47, 16  ;;  %v4499_v41 = vor.u32 %v4498_v38, %v4494_v54 }
 0x297   : > { %v3832_v56 = vshrl.u32 %v7023_v58, 16  ;;  %v3826_v12 = vrot.slane %v3824_v29, 7  ;;  %v3835_v3 = vshll.u32 %v7023_v58, 16  ;;  %v4503_v20 = vrot.slane %v4501_v37, 1  ;;  %v4262_v37 = vld [vmem:[#allocation3 + $0x4c] sm:$0xf] }
 0x298   : > { %v3846_v36 = vor.u32 %v3844_v9, %v3843_v14  ;;  %v3851_v22 = vrot.slane %v3849_v52, 7  ;;  %5793 = vrot.lane.b32.xlu0 %v5749_v63, %s7541_s26  ;;  %v3847_v27 = vrot.slane %v3843_v14, 4  ;;  %v5482_v5 = vshrl.u32 %v9426_v39, 16 }
 0x299   : > { %v3834_v43 = vrot.slane %v3832_v56, 7  ;;  %4771 = vrot.lane.b32.xlu1 %v4728_v60, %s7539_s16  ;;  %v3829_v7 = vor.u32 %v3827_v62, %v3826_v12  ;;  %v3830_v50 = vrot.slane %v3826_v12, 4  ;;  %v5486_v16 = vrot.slane %v5484_v13, 1  ;;  %v4199_v56 = vld [vmem:[#allocation3 + $0x4c] sm:$0xf] }
 0x29a   : > { %v4076_v30 = vsel %vm9231_vm12, %v3846_v36, %v4075_v24  ;;  %v3854_v59 = vor.u32 %v3852_v32, %v3851_v22  ;;  %v3856_v61 = vrot.slane %v3851_v22, 4  ;;  %v5489_v45 = vshll.u32 %v9457_v17, 16  ;;  %v9521_v22 = vld [vmem:[#allocation3 + $0x40] sm:$0xf] }
 0x29b   : > { %4077 = vst [vmem:[#allocation3 + $0x78] sm:$0xf] %v4076_v30  ;;  %v3837_v0 = vor.u32 %v3835_v3, %v3834_v43  ;;  %v3839_v10 = vrot.slane %v3834_v43, 4  ;;  %v4069_v26 = vsel %vm9231_vm12, %v3829_v7, %v4068_v40  ;;  %v4484_v47 = vshll.u32 %v9437_v6, 16  ;;  %v4198_v30 = vld [vmem:[#allocation3 + $0x48] sm:$0xf] }
 0x29c   : > { %v3855_v35 = vsel %vm7775_vm8, %v3847_v27, %v3854_v59  ;;  %v4080_v63 = vsel %vm9238_vm14, %v3856_v61, %v4079_v1  ;;  %4773 = vrot.lane.b32.xlu0 %v4731_v42, %s7539_s16  ;;  %4070 = vst [vmem:[#allocation3 + $0x6c] sm:$0xf] %v4069_v26  ;;  %v5496_v42 = vshll.u32 %v9423_v15, 16  ;;  %v5746_v14 = vsel %vm1803_vm3, %v5744_v31, %v5745_v34  ;;  %v9523_v32 = vld [vmem:[#allocation3 + $0x50] ss:$0 sps:$4 sm:$0x11]  }
 0x29d   : > { %4078 = vst.msk [vmem:[#allocation3 + $0x7c] sm:$0xf] %vm3535_vm11, %v3855_v35  ;;  %4081 = vst [vmem:[#allocation3 + $0x80] sm:$0x1] %v4080_v63  ;;  %v3838_v55 = vsel %vm7775_vm8, %v3830_v50, %v3837_v0  ;;  %v4073_v60 = vsel %vm9238_vm14, %v3839_v10, %v4072_v48  ;;  %5155 = vrot.lane.b32.xlu1 %v5004_v46, %s7542_s29  ;;  %v5235_v9 = vrot.slane %v6916_v25, 1  ;;  %v5236_v58 = vrot.slane %v9494_v51, 1 }
 0x29e   : > { %4071 = vst.msk [vmem:[#allocation3 + $0x70] sm:$0xf] %vm3535_vm11, %v3838_v55  ;;  %4074 = vst [vmem:[#allocation3 + $0x74] sm:$0x1] %v4073_v60  ;;  %v5498_v8 = vrot.slane %v5496_v42, 1  ;;  %v4504_v24 = vsel %vm1530_vm2, %v4499_v41, %v4503_v20  ;;  %v5487_v29 = vor.u32 %v5486_v16, %v5482_v5  ;;  %v4486_v52 = vrot.slane %v4484_v47, 1 }
 0x29f   : > { %v4984_v36 = vshll.u32 %v9431_v49, 16  ;;  %v5494_v39 = vshrl.u32 %v9423_v15, 16  ;;  %v5501_v17 = vshll.u32 %v9413_v21, 16  ;;  %v5491_v31 = vrot.slane %v5489_v45, 1  ;;  %v9527_v1 = vld [vmem:[#allocation3 + $0x40] sm:$0xf] }
 0x2a0   : > { %5791 = vrot.lane.b32.xlu0 %v5746_v14, %s7541_s26  ;;  %v4482_v34 = vshrl.u32 %v9437_v6, 16  ;;  %v4489_v54 = vshll.u32 %v9416_v18, 16  ;;  %v5237_v12 = vsel %vm1803_vm3, %v5235_v9, %v5236_v58  ;;  %v4241_v43 = vld [vmem:[#allocation3 + $0x48] sm:$0xe]  ;;  %v4982_v38 = vshrl.u32 %v9431_v49, 16 }
 0x2a1   : > { %4645 = vrot.lane.b32.xlu1 %v4504_v24, %s7530_s12  ;;  %v5499_v62 = vor.u32 %v5498_v8, %v5494_v39  ;;  %v4986_v40 = vrot.slane %v4984_v36, 1  ;;  %v5492_v15 = vsel %vm1530_vm2, %v5487_v29, %v5491_v31  ;;  %v4305_v3 = vld [vmem:[#allocation3 + $0x48] sm:$0xe]  ;;  %v5503_v18 = vrot.slane %v5501_v17, 1  ;;  %v4259_v7 = vld [vmem:[#allocation3 + $0x3c] sm:$0xf] }
 0x2a2   : > { %v4487_v21 = vor.u32 %v4486_v52, %v4482_v34  ;;  %v4989_v28 = vshll.u32 %v9494_v51, 16  ;;  %v4261_v27 = vld [vmem:[#allocation3 + $0x48] sm:$0xf]  ;;  %v6919_v59 = vcombine.low %v4241_v43, %v4199_v56  ;;  %v4135_v61 = vld [vmem:[#allocation3 + $0x40] sm:$0xf]  ;;  %v4491_v48 = vrot.slane %v4489_v54, 1 }
 0x2a3   : > { %v4196_v46 = vld [vmem:[#allocation3 + $0x3c] sm:$0xf]  ;;  %v9532_v50 = vld [vmem:[#allocation3 + $0x50] ss:$0 sps:$4 sm:$0x11]   ;;  %v6966_v0 = vcombine.low %v4305_v3, %v4262_v37  ;;  %v5504_v10 = vsel %vm1530_vm2, %v5499_v62, %v5503_v18  ;;  %v4987_v2 = vor.u32 %v4986_v40, %v4982_v38  ;;  %v9535_v26 = vcombine.low %v4198_v30, %v4199_v56 }
 0x2a4   : > { %5281 = vrot.lane.b32.xlu0 %v5237_v12, %s7540_s25  ;;  %v4177_v35 = vld [vmem:[#allocation3 + $0x3c] sm:$0xe]  ;;  %v9537_v63 = vld [vmem:[#allocation3 + $0x44] ss:$0 sps:$4 sm:$0x11]   ;;  %v4492_v49 = vsel %vm1530_vm2, %v4487_v21, %v4491_v48  ;;  %v9541_v51 = vcombine.low %v4261_v27, %v4262_v37  ;;  %v9544_v25 = vcombine.low %v4259_v7, %v9521_v22  ;;  %v4991_v13 = vrot.slane %v4989_v28, 1 }
 0x2a5   : > { %5663 = vrot.lane.b32.xlu1 %v5492_v15, %s7543_s10  ;;  %v4134_v55 = vld [vmem:[#allocation3 + $0x3c] sm:$0xf]  ;;  %v6871_v60 = vcombine.low %v4177_v35, %v4135_v61  ;;  %v4137_v41 = vld [vmem:[#allocation3 + $0x4c] sm:$0xf]  ;;  %v9548_v20 = vcombine.low %v4196_v46, %v9527_v1  ;;  %v5244_v42 = vrot.slane %v6919_v59, 1  ;;  %v5245_v5 = vrot.slane %v9523_v32, 1 }
 0x2a6   : > { %v4136_v45 = vld [vmem:[#allocation3 + $0x48] sm:$0xf]  ;;  %v5753_v47 = vrot.slane %v6966_v0, 1  ;;  %v5754_v14 = vrot.slane %v9532_v50, 1  ;;  %v9552_v9 = vcombine.low %v4134_v55, %v4135_v61  ;;  %v4992_v52 = vsel %vm1530_vm2, %v4987_v2, %v4991_v13  ;;  %v4304_v35 = vld [vmem:[#allocation3 + $0x3c] sm:$0xe] }
 0x2a7   : > { %v9557_v58 = vld [vmem:[%s10517_s3] ss:$0 sm:$0xff]  ;;  %v9560_v24 = vld [vmem:[#allocation3 + $0x50] ss:$0 sps:$4 sm:$0x11]   ;;  %v4733_v36 = vrot.slane %v9537_v63, 1  ;;  %v9564_v17 = vcombine.low %v4136_v45, %v4137_v41  ;;  %v5246_v15 = vsel %vm1803_vm3, %v5244_v42, %v5245_v5 }
 0x2a8   : > { %5665 = vrot.lane.b32.xlu0 %v5504_v10, %s7543_s10  ;;  %v4178_v39 = vld [vmem:[#allocation3 + $0x48] sm:$0xe]  ;;  %v4732_v34 = vrot.slane %v6871_v60, 1  ;;  %v9571_v54 = vld [vmem:[%s10518_s4] ss:$0 sm:$0xff]  ;;  %v5020_v21 = vshll.u32 %v9535_v26, 16  ;;  %v5755_v3 = vsel %vm1803_vm3, %v5753_v47, %v5754_v14 }
 0x2a9   : > { %4643 = vrot.lane.b32.xlu1 %v4492_v49, %s7530_s12  ;;  %v6872_v12 = vcombine.low %v4178_v39, %v4137_v41  ;;  %v4736_v38 = vrot.slane %v9560_v24, 1  ;;  %v9584_v27 = vld [vmem:[#allocation3 + $0x44] ss:$0 sps:$4 sm:$0x11]   ;;  %v5018_v7 = vshrl.u32 %v9535_v26, 16  ;;  %v5025_v59 = vshll.u32 %v9523_v32, 16 }
 0x2aa   : > { %v4734_v46 = vsel %vm1803_vm3, %v4732_v34, %v4733_v36  ;;  %v5022_v49 = vrot.slane %v5020_v21, 1  ;;  %v6965_v32 = vcombine.low %v4304_v35, %v9521_v22  ;;  %v5751_v13 = vrot.slane %v9584_v27, 1 }
 0x2ab   : > { %v7118_v16 = vpop.f32.mrb[20].mxu0  ;;  %v4735_v10 = vrot.slane %v6872_v12, 1  ;;  %v4520_v42 = vshll.u32 %v9564_v17, 16  ;;  %v5027_v5 = vrot.slane %v5025_v59, 1  ;;  %v4518_v47 = vshrl.u32 %v9564_v17, 16 }
 0x2ac   : > { %v3454_v8 = vmul.f32 %v9557_v58, %v7118_v16  ;;  %v3378_v29 = vpop.f32.mrb[21].mxu0  ;;  %5153 = vrot.lane.b32.xlu0 %v4992_v52, %s7542_s29  ;;  %v5023_v36 = vor.u32 %v5022_v49, %v5018_v7  ;;  %v5750_v49 = vrot.slane %v6965_v32, 1 }
 0x2ad   : > { %v3452_v56 = vmul.f32 %v9557_v58, %v3378_v29  ;;  %v7119_v31 = vpop.f32.mrb[22].mxu0  ;;  %4887 = vrot.lane.b32.xlu1 %v9535_v26, %s7532_s17  ;;  %v4089_v29 = vld [vmem:[#allocation3 + $0x90] sm:$0xf]  ;;  %v4737_v52 = vsel %vm1803_vm3, %v4735_v10, %v4736_v38 }
 0x2ae   : > { %v3493_v37 = vadd.f32 %v9571_v54, %v3454_v8  ;;  %v3455_v62 = vmul.f32 %v9557_v58, %v7119_v31  ;;  %v3381_v40 = vpop.f32.mrb[23].mxu0 }
 0x2af   : > { %v3491_v30 = vadd.f32 %v9571_v54, %v3452_v56  ;;  %v3453_v43 = vmul.f32 %v9557_v58, %v3381_v40  ;;  %v4522_v40 = vrot.slane %v4520_v42, 1 }
 0x2b0   : > { %v3525_v18 = vmax.f32 %v3493_v37, 0.0  ;;  %v3494_v28 = vadd.f32 %v9571_v54, %v3455_v62  ;;  %5397 = vrot.lane.b32.xlu0 %v9541_v51, %s7537_s15  ;;  %v4082_v37 = vld [vmem:[#allocation3 + $0x84] sm:$0xf] }
 0x2b1   : > { %v3523_v61 = vmax.f32 %v3491_v30, 0.0  ;;  %v3492_v48 = vadd.f32 %v9571_v54, %v3453_v43  ;;  %5395 = vrot.lane.b32.xlu1 %v9544_v25, %s7537_s15  ;;  %v4093_v30 = vld [vmem:[#allocation3 + $0x98] sm:$0x1]  ;;  %v4523_v32 = vor.u32 %v4522_v40, %v4518_v47 }
 0x2b2   : > { %v7028_v0 = vpack.c.bf16 %v3525_v18, %v3525_v18  ;;  %v3526_v2 = vmax.f32 %v3494_v28, 0.0  ;;  %v5508_v28 = vshll.u32 %v9544_v25, 16 }
 0x2b3   : > { %v7026_v55 = vpack.c.bf16 %v3523_v61, %v3523_v61  ;;  %v3524_v26 = vmax.f32 %v3492_v48, 0.0  ;;  %v4086_v61 = vld [vmem:[#allocation3 + $0x8c] sm:$0x1] }
 0x2b4   : > { %v3875_v60 = vshrl.u32 %v7028_v0, 16  ;;  %v7029_v41 = vpack.c.bf16 %v3526_v2, %v3526_v2  ;;  %4885 = vrot.lane.b32.xlu0 %v9548_v20, %s7532_s17  ;;  %v3878_v8 = vshll.u32 %v7028_v0, 16 }
 0x2b5   : > { %v3858_v16 = vshrl.u32 %v7026_v55, 16  ;;  %v7027_v45 = vpack.c.bf16 %v3524_v26, %v3524_v26  ;;  %5287 = vrot.lane.b32.xlu1 %v5246_v15, %s7540_s25  ;;  %v3861_v56 = vshll.u32 %v7026_v55, 16  ;;  %v4525_v55 = vshll.u32 %v9560_v24, 16  ;;  %v4240_v26 = vld [vmem:[#allocation3 + $0x3c] sm:$0xe] }
 0x2b6   : > { %v3877_v14 = vrot.slane %v3875_v60, 7  ;;  %v3883_v22 = vshrl.u32 %v7029_v41, 16  ;;  %v3886_v62 = vshll.u32 %v7029_v41, 16  ;;  %v9619_v41 = vld [vmem:[#allocation3 + $0x44] ss:$0 sps:$4 sm:$0x11]   ;;  %v6918_v42 = vcombine.low %v4240_v26, %v9527_v1 }
 0x2b7   : > { %v3860_v39 = vrot.slane %v3858_v16, 7  ;;  %v3866_v31 = vshrl.u32 %v7027_v45, 16  ;;  %v3869_v18 = vshll.u32 %v7027_v45, 16  ;;  %v5520_v16 = vshll.u32 %v9541_v51, 16  ;;  %v4179_v26 = vld [vmem:[#allocation3 + $0x54] sm:$0xe] }
 0x2b8   : > { %v3880_v34 = vor.u32 %v3878_v8, %v3877_v14  ;;  %v3885_v12 = vrot.slane %v3883_v22, 7  ;;  %5797 = vrot.lane.b32.xlu0 %v5755_v3, %s7541_s26  ;;  %v3881_v38 = vrot.slane %v3877_v14, 4  ;;  %v5028_v24 = vsel %vm1530_vm2, %v5023_v36, %v5027_v5 }
 0x2b9   : > { %v3863_v21 = vor.u32 %v3861_v56, %v3860_v39  ;;  %v3868_v43 = vrot.slane %v3866_v31, 7  ;;  %4775 = vrot.lane.b32.xlu1 %v4734_v46, %s7539_s16  ;;  %v3864_v48 = vrot.slane %v3860_v39, 4  ;;  %v5510_v45 = vrot.slane %v5508_v28, 1  ;;  %v9643_v28 = vld [vmem:[#allocation3 + $0x68] ss:$0 sps:$4 sm:$0x11]  }
 0x2ba   : > { %v4090_v15 = vsel %vm9231_vm12, %v3880_v34, %v4089_v29  ;;  %v3888_v7 = vor.u32 %v3886_v62, %v3885_v12  ;;  %v3890_v59 = vrot.slane %v3885_v12, 4  ;;  %v4508_v14 = vshll.u32 %v9552_v9, 16  ;;  %v4203_v34 = vld [vmem:[#allocation3 + $0x64] sm:$0xf] }
 0x2bb   : > { %4091 = vst [vmem:[#allocation3 + $0x90] sm:$0xf] %v4090_v15  ;;  %v4083_v0 = vsel %vm9231_vm12, %v3863_v21, %v4082_v37  ;;  %v3871_v10 = vor.u32 %v3869_v18, %v3868_v43  ;;  %v3873_v2 = vrot.slane %v3868_v43, 4  ;;  %v5752_v8 = vsel %vm1803_vm3, %v5750_v49, %v5751_v13  ;;  %v4266_v62 = vld [vmem:[#allocation3 + $0x64] sm:$0xf] }
 0x2bc   : > { %4084 = vst [vmem:[#allocation3 + $0x84] sm:$0xf] %v4083_v0  ;;  %v3889_v3 = vsel %vm7775_vm8, %v3881_v38, %v3888_v7  ;;  %v4094_v35 = vsel %vm9238_vm14, %v3890_v59, %v4093_v30  ;;  %4777 = vrot.lane.b32.xlu0 %v4737_v52, %s7539_s16  ;;  %v4527_v29 = vrot.slane %v4525_v55, 1  ;;  %v5506_v1 = vshrl.u32 %v9544_v25, 16  ;;  %v9641_v43 = vld [vmem:[#allocation3 + $0x58] sm:$0xf] }
 0x2bd   : > { %4092 = vst.msk [vmem:[#allocation3 + $0x94] sm:$0xf] %vm3535_vm11, %v3889_v3  ;;  %4095 = vst [vmem:[#allocation3 + $0x98] sm:$0x1] %v4094_v35  ;;  %v3872_v46 = vsel %vm7775_vm8, %v3864_v48, %v3871_v10  ;;  %v4087_v60 = vsel %vm9238_vm14, %v3873_v2, %v4086_v61  ;;  %5159 = vrot.lane.b32.xlu1 %v5028_v24, %s7542_s29  ;;  %v5513_v22 = vshll.u32 %v9584_v27, 16  ;;  %v5241_v39 = vrot.slane %v6918_v42, 1 }
 0x2be   : > { %4085 = vst.msk [vmem:[#allocation3 + $0x88] sm:$0xf] %vm3535_vm11, %v3872_v46  ;;  %4088 = vst [vmem:[#allocation3 + $0x8c] sm:$0x1] %v4087_v60  ;;  %v5242_v52 = vrot.slane %v9619_v41, 1  ;;  %v5522_v5 = vrot.slane %v5520_v16, 1  ;;  %v4528_v47 = vsel %vm1530_vm2, %v4523_v32, %v4527_v29  ;;  %v5511_v56 = vor.u32 %v5510_v45, %v5506_v1 }
 0x2bf   : > { %v5008_v36 = vshll.u32 %v9548_v20, 16  ;;  %v4510_v31 = vrot.slane %v4508_v14, 1  ;;  %v5518_v13 = vshrl.u32 %v9541_v51, 16  ;;  %v5525_v25 = vshll.u32 %v9532_v50, 16  ;;  %v4243_v18 = vld [vmem:[#allocation3 + $0x60] sm:$0xe] }
 0x2c0   : > { %5795 = vrot.lane.b32.xlu0 %v5752_v8, %s7541_s26  ;;  %v5515_v27 = vrot.slane %v5513_v22, 1  ;;  %v4506_v37 = vshrl.u32 %v9552_v9, 16  ;;  %v4513_v12 = vshll.u32 %v9537_v63, 16  ;;  %v5243_v40 = vsel %vm1803_vm3, %v5241_v39, %v5242_v52  ;;  %v4202_v38 = vld [vmem:[#allocation3 + $0x60] sm:$0xf] }
 0x2c1   : > { %4649 = vrot.lane.b32.xlu1 %v4528_v47, %s7530_s12  ;;  %v5523_v21 = vor.u32 %v5522_v5, %v5518_v13  ;;  %v5010_v30 = vrot.slane %v5008_v36, 1  ;;  %v4307_v15 = vld [vmem:[#allocation3 + $0x60] sm:$0xe]  ;;  %v9647_v7 = vld [vmem:[#allocation3 + $0x68] ss:$0 sps:$4 sm:$0x11]   ;;  %v6921_v49 = vcombine.low %v4243_v18, %v4203_v34  ;;  %v9655_v42 = vcombine.low %v4202_v38, %v4203_v34 }
 0x2c2   : > { %v5516_v50 = vsel %vm1530_vm2, %v5511_v56, %v5515_v27  ;;  %v4511_v51 = vor.u32 %v4510_v31, %v4506_v37  ;;  %v5527_v63 = vrot.slane %v5525_v25, 1  ;;  %v5006_v59 = vshrl.u32 %v9548_v20, 16  ;;  %v4265_v48 = vld [vmem:[#allocation3 + $0x60] sm:$0xf]  ;;  %v4263_v0 = vld [vmem:[#allocation3 + $0x54] sm:$0xf] }
 0x2c3   : > { %v5013_v61 = vshll.u32 %v9619_v41, 16  ;;  %v4139_v10 = vld [vmem:[#allocation3 + $0x58] sm:$0xf]  ;;  %v4515_v2 = vrot.slane %v4513_v12, 1  ;;  %v4200_v3 = vld [vmem:[#allocation3 + $0x54] sm:$0xf]  ;;  %v6968_v55 = vcombine.low %v4307_v15, %v4266_v62  ;;  %v9661_v24 = vcombine.low %v4265_v48, %v4266_v62 }
 0x2c4   : > { %5285 = vrot.lane.b32.xlu0 %v5243_v40, %s7540_s25  ;;  %v9652_v35 = vld [vmem:[#allocation3 + $0x58] sm:$0xf]  ;;  %v5528_v46 = vsel %vm1530_vm2, %v5523_v21, %v5527_v63  ;;  %v5011_v60 = vor.u32 %v5010_v30, %v5006_v59  ;;  %v9657_v16 = vld [vmem:[#allocation3 + $0x5c] ss:$0 sps:$4 sm:$0x11]   ;;  %v9664_v32 = vcombine.low %v4263_v0, %v9641_v43  ;;  %v6873_v45 = vcombine.low %v4179_v26, %v4139_v10 }
 0x2c5   : > { %5667 = vrot.lane.b32.xlu1 %v5516_v50, %s7543_s10  ;;  %v4141_v20 = vld [vmem:[#allocation3 + $0x64] sm:$0xf]  ;;  %v4516_v41 = vsel %vm1530_vm2, %v4511_v51, %v4515_v2  ;;  %v9666_v14 = vld [vmem:[#allocation3 + $0x68] ss:$0 sps:$4 sm:$0x11]   ;;  %v5015_v8 = vrot.slane %v5013_v61, 1  ;;  %v9670_v29 = vcombine.low %v4200_v3, %v9652_v35 }
 0x2c6   : > { %v5251_v1 = vrot.slane %v9643_v28, 1  ;;  %v5760_v22 = vrot.slane %v9647_v7, 1  ;;  %v4138_v39 = vld [vmem:[#allocation3 + $0x54] sm:$0xf]  ;;  %v5250_v5 = vrot.slane %v6921_v49, 1  ;;  %v5759_v36 = vrot.slane %v6968_v55, 1 }
 0x2c7   : > { %v9674_v47 = vcombine.low %v4138_v39, %v4139_v10  ;;  %v4180_v31 = vld [vmem:[#allocation3 + $0x60] sm:$0xe]  ;;  %v5016_v25 = vsel %vm1530_vm2, %v5011_v60, %v5015_v8  ;;  %v4739_v34 = vrot.slane %v9657_v16, 1  ;;  %v4738_v40 = vrot.slane %v6873_v45, 1  ;;  %v4306_v45 = vld [vmem:[#allocation3 + $0x54] sm:$0xe] }
 0x2c8   : > { %5669 = vrot.lane.b32.xlu0 %v5528_v46, %s7543_s10  ;;  %v4140_v27 = vld [vmem:[#allocation3 + $0x60] sm:$0xf]  ;;  %v6874_v37 = vcombine.low %v4180_v31, %v4141_v20  ;;  %v4742_v51 = vrot.slane %v9666_v14, 1  ;;  %v5044_v38 = vshll.u32 %v9655_v42, 16  ;;  %v5252_v59 = vsel %vm1803_vm3, %v5250_v5, %v5251_v1 }
 0x2c9   : > { %4647 = vrot.lane.b32.xlu1 %v4516_v41, %s7530_s12  ;;  %v9682_v30 = vcombine.low %v4140_v27, %v4141_v20  ;;  %v5761_v61 = vsel %vm1803_vm3, %v5759_v36, %v5760_v22  ;;  %v9694_v10 = vld [vmem:[#allocation3 + $0x5c] ss:$0 sps:$4 sm:$0x11]   ;;  %v5042_v3 = vshrl.u32 %v9655_v42, 16  ;;  %v4740_v26 = vsel %vm1803_vm3, %v4738_v40, %v4739_v34  ;;  %v9702_v41 = vpop.permute.xlu0 %4637 }
 0x2ca   : > { %v4741_v2 = vrot.slane %v6874_v37, 1  ;;  %v5049_v60 = vshll.u32 %v9643_v28, 16  ;;  %v5046_v8 = vrot.slane %v5044_v38, 1  ;;  %v6967_v22 = vcombine.low %v4306_v45, %v9641_v43  ;;  %v9720_v45 = vpop.permute.xlu1 %5419 }
 0x2cb   : > { %v7122_v52 = vpop.f32.mrb[24].mxu0  ;;  %10692 = vst [vmem:[#allocation23_spill] sm:$0xff] %v9682_v30  ;;  %v5757_v5 = vrot.slane %v9694_v10, 1  ;;  %v4544_v36 = vshll.u32 %v9682_v30, 16  ;;  %10693 = vst [vmem:[#allocation12_spill] sm:$0xff] %v9720_v45 }
 0x2cc   : > { %v3458_v56 = vmul.f32 %v9557_v58, %v7122_v52  ;;  %v3394_v13 = vpop.f32.mrb[25].mxu0  ;;  %5157 = vrot.lane.b32.xlu0 %v5016_v25, %s7542_s29  ;;  %v4743_v28 = vsel %vm1803_vm3, %v4741_v2, %v4742_v51  ;;  %v4542_v25 = vshrl.u32 %v9682_v30, 16  ;;  %v5051_v37 = vrot.slane %v5049_v60, 1  ;;  %v4121_v45 = vld [vmem:[#allocation3 + $0xc8] sm:$0x1] }
 0x2cd   : > { %v3456_v12 = vmul.f32 %v9557_v58, %v3394_v13  ;;  %v7123_v62 = vpop.f32.mrb[26].mxu0  ;;  %4891 = vrot.lane.b32.xlu1 %v9655_v42, %s7532_s17 }
 0x2ce   : > { %v3497_v21 = vadd.f32 %v9571_v54, %v3458_v56  ;;  %v3459_v18 = vmul.f32 %v9557_v58, %v7123_v62  ;;  %v3397_v50 = vpop.f32.mrb[27].mxu0  ;;  %v4103_v56 = vld [vmem:[#allocation3 + $0xa8] sm:$0xf] }
 0x2cf   : > { %v3495_v15 = vadd.f32 %v9571_v54, %v3456_v12  ;;  %v3457_v63 = vmul.f32 %v9557_v58, %v3397_v50  ;;  %v5047_v12 = vor.u32 %v5046_v8, %v5042_v3 }
 0x2d0   : > { %v3529_v48 = vmax.f32 %v3497_v21, 0.0  ;;  %v3498_v0 = vadd.f32 %v9571_v54, %v3459_v18  ;;  %5401 = vrot.lane.b32.xlu0 %v9661_v24, %s7537_s15  ;;  %v4096_v21 = vld [vmem:[#allocation3 + $0x9c] sm:$0xf] }
 0x2d1   : > { %v3527_v49 = vmax.f32 %v3495_v15, 0.0  ;;  %v3496_v55 = vadd.f32 %v9571_v54, %v3457_v63  ;;  %5399 = vrot.lane.b32.xlu1 %v9664_v32, %s7537_s15  ;;  %v4107_v15 = vld [vmem:[#allocation3 + $0xb0] sm:$0x1]  ;;  %v4546_v63 = vrot.slane %v4544_v36, 1 }
 0x2d2   : > { %v7032_v46 = vpack.c.bf16 %v3529_v48, %v3529_v48  ;;  %v3530_v20 = vmax.f32 %v3498_v0, 0.0  ;;  %v9714_v48 = vpop.permute.xlu0 %4765 }
 0x2d3   : > { %v7030_v42 = vpack.c.bf16 %v3527_v49, %v3527_v49  ;;  %v3528_v1 = vmax.f32 %v3496_v55, 0.0  ;;  %v5532_v55 = vshll.u32 %v9664_v32, 16 }
 0x2d4   : > { %v3909_v39 = vshrl.u32 %v7032_v46, 16  ;;  %v7033_v52 = vpack.c.bf16 %v3530_v20, %v3530_v20  ;;  %4889 = vrot.lane.b32.xlu0 %v9670_v29, %s7532_s17  ;;  %v3912_v27 = vshll.u32 %v7032_v46, 16  ;;  %v4100_v20 = vld [vmem:[#allocation3 + $0xa4] sm:$0x1] }
 0x2d5   : > { %v3892_v31 = vshrl.u32 %v7030_v42, 16  ;;  %v7031_v13 = vpack.c.bf16 %v3528_v1, %v3528_v1  ;;  %5291 = vrot.lane.b32.xlu1 %v5252_v59, %s7540_s25  ;;  %v3895_v40 = vshll.u32 %v7030_v42, 16 }
 0x2d6   : > { %v3911_v34 = vrot.slane %v3909_v39, 7  ;;  %v3917_v43 = vshrl.u32 %v7033_v52, 16  ;;  %v3920_v38 = vshll.u32 %v7033_v52, 16  ;;  %v4242_v52 = vld [vmem:[#allocation3 + $0x54] sm:$0xe] }
 0x2d7   : > { %v3894_v62 = vrot.slane %v3892_v31, 7  ;;  %v3900_v18 = vshrl.u32 %v7031_v13, 16  ;;  %v3903_v49 = vshll.u32 %v7031_v13, 16  ;;  %v4549_v31 = vshll.u32 %v9666_v14, 16 }
 0x2d8   : > { %v3914_v50 = vor.u32 %v3912_v27, %v3911_v34  ;;  %v3919_v51 = vrot.slane %v3917_v43, 7  ;;  %5801 = vrot.lane.b32.xlu0 %v5761_v61, %s7541_s26  ;;  %v3915_v59 = vrot.slane %v3911_v34, 4  ;;  %v9730_v13 = vld [vmem:[#allocation3 + $0x5c] ss:$0 sps:$4 sm:$0x11]   ;;  %v6920_v27 = vcombine.low %v4242_v52, %v9652_v35 }
 0x2d9   : > { %v3897_v0 = vor.u32 %v3895_v40, %v3894_v62  ;;  %v3902_v2 = vrot.slane %v3900_v18, 7  ;;  %4779 = vrot.lane.b32.xlu1 %v4740_v26, %s7539_s16  ;;  %v3898_v8 = vrot.slane %v3894_v62, 4  ;;  %v5544_v43 = vshll.u32 %v9661_v24, 16  ;;  %v9742_v40 = vpop.permute.xlu0 %5389 }
 0x2da   : > { %v4104_v3 = vsel %vm9231_vm12, %v3914_v50, %v4103_v56  ;;  %v3922_v46 = vor.u32 %v3920_v38, %v3919_v51  ;;  %v3924_v60 = vrot.slane %v3919_v51, 4  ;;  %v5756_v56 = vrot.slane %v6967_v22, 1  ;;  %v9749_v51 = vpop.permute.xlu1 %4879 }
 0x2db   : > { %4105 = vst [vmem:[#allocation3 + $0xa8] sm:$0xf] %v4104_v3  ;;  %v4097_v42 = vsel %vm9231_vm12, %v3897_v0, %v4096_v21  ;;  %v3905_v1 = vor.u32 %v3903_v49, %v3902_v2  ;;  %v3907_v39 = vrot.slane %v3902_v2, 4  ;;  %v5052_v22 = vsel %vm1530_vm2, %v5047_v12, %v5051_v37  ;;  %v4207_v49 = vld [vmem:[#allocation3 + $0x7c] sm:$0xf] }
 0x2dc   : > { %4098 = vst [vmem:[#allocation3 + $0x9c] sm:$0xf] %v4097_v42  ;;  %v3923_v61 = vsel %vm7775_vm8, %v3915_v59, %v3922_v46  ;;  %v4108_v36 = vsel %vm9238_vm14, %v3924_v60, %v4107_v15  ;;  %4781 = vrot.lane.b32.xlu0 %v4743_v28, %s7539_s16  ;;  %v4547_v14 = vor.u32 %v4546_v63, %v4542_v25  ;;  %v5534_v62 = vrot.slane %v5532_v55, 1  ;;  %v4206_v3 = vld [vmem:[#allocation3 + $0x78] sm:$0xf] }
 0x2dd   : > { %4106 = vst.msk [vmem:[#allocation3 + $0xac] sm:$0xf] %vm3535_vm11, %v3923_v61  ;;  %4109 = vst [vmem:[#allocation3 + $0xb0] sm:$0x1] %v4108_v36  ;;  %v3906_v26 = vsel %vm7775_vm8, %v3898_v8, %v3905_v1  ;;  %v4101_v34 = vsel %vm9238_vm14, %v3907_v39, %v4100_v20  ;;  %v4532_v21 = vshll.u32 %v9674_v47, 16  ;;  %5163 = vrot.lane.b32.xlu1 %v5052_v22, %s7542_s29  ;;  %v4551_v18 = vrot.slane %v4549_v31, 1 }
 0x2de   : > { %4099 = vst.msk [vmem:[#allocation3 + $0xa0] sm:$0xf] %vm3535_vm11, %v3906_v26  ;;  %4102 = vst [vmem:[#allocation3 + $0xa4] sm:$0x1] %v4101_v34  ;;  %v5248_v35 = vrot.slane %v9730_v13, 1  ;;  %v5530_v50 = vshrl.u32 %v9664_v32, 16  ;;  %v5758_v25 = vsel %vm1803_vm3, %v5756_v56, %v5757_v5  ;;  %v9777_v26 = vcombine.low %v4206_v3, %v4207_v49 }
 0x2df   : > { %v5537_v28 = vshll.u32 %v9694_v10, 16  ;;  %v5247_v37 = vrot.slane %v6920_v27, 1  ;;  %v5546_v12 = vrot.slane %v5544_v43, 1  ;;  %v5032_v38 = vshll.u32 %v9670_v29, 16  ;;  %v4878_v59 = vpop.permute.xlu0 %4877  ;;  %v4270_v46 = vld [vmem:[#allocation3 + $0x7c] sm:$0xf] }
 0x2e0   : > { %5799 = vrot.lane.b32.xlu0 %v5758_v25, %s7541_s26  ;;  %v4552_v15 = vsel %vm1530_vm2, %v4547_v14, %v4551_v18  ;;  %v5535_v63 = vor.u32 %v5534_v62, %v5530_v50  ;;  %v5549_v0 = vshll.u32 %v9647_v7, 16  ;;  %v4534_v32 = vrot.slane %v4532_v21, 1  ;;  %v4245_v7 = vld [vmem:[#allocation3 + $0x78] sm:$0xe]  ;;  %v4143_v36 = vld [vmem:[#allocation3 + $0x70] sm:$0xf] }
 0x2e1   : > { %4653 = vrot.lane.b32.xlu1 %v4552_v15, %s7530_s12  ;;  %v5542_v2 = vshrl.u32 %v9661_v24, 16  ;;  %v5539_v10 = vrot.slane %v5537_v28, 1  ;;  %v4530_v5 = vshrl.u32 %v9674_v47, 16  ;;  %v4537_v55 = vshll.u32 %v9657_v16, 16  ;;  %v9770_v52 = vpop.permute.xlu1 %5279  ;;  %v9781_v34 = vld [vmem:[#allocation3 + $0x70] sm:$0xf] }
 0x2e2   : > { %v5249_v60 = vsel %vm1803_vm3, %v5247_v37, %v5248_v35  ;;  %v5034_v8 = vrot.slane %v5032_v38, 1  ;;  %v9763_v42 = vld [vmem:[#allocation3 + $0x80] ss:$0 sps:$4 sm:$0x11]   ;;  %v5822_v24 = vsel %vm10694_vm5, %v9163_v11, %v9702_v41  ;;  %v5551_v39 = vrot.slane %v5549_v0, 1 }
 0x2e3   : > { %v5547_v20 = vor.u32 %v5546_v12, %v5542_v2  ;;  %v5540_v1 = vsel %vm1530_vm2, %v5535_v63, %v5539_v10  ;;  %v4535_v16 = vor.u32 %v4534_v32, %v4530_v5  ;;  %v9772_v61 = vld [vmem:[#allocation3 + $0x80] ss:$0 sps:$4 sm:$0x11]   ;;  %v5030_v56 = vshrl.u32 %v9670_v29, 16  ;;  %v4269_v11 = vld [vmem:[#allocation3 + $0x78] sm:$0xf]  ;;  %v9790_v38 = vpop.permute.xlu0 %5789 }
 0x2e4   : > { %5289 = vrot.lane.b32.xlu0 %v5249_v60, %s7540_s25  ;;  %v5037_v31 = vshll.u32 %v9730_v13, 16  ;;  %v9779_v41 = vld [vmem:[#allocation3 + $0x70] sm:$0xf]  ;;  %v6923_v27 = vcombine.low %v4245_v7, %v4207_v49  ;;  %v4309_v43 = vld [vmem:[#allocation3 + $0x78] sm:$0xe]  ;;  %v4539_v14 = vrot.slane %v4537_v55, 1  ;;  %v5855_v37 = vsel %vm5853_vm4, %v5822_v24, %v9714_v48 }
 0x2e5   : > { %5671 = vrot.lane.b32.xlu1 %v5540_v1, %s7543_s10  ;;  %v4145_v22 = vld [vmem:[#allocation3 + $0x7c] sm:$0xf]  ;;  %v4181_v62 = vld [vmem:[#allocation3 + $0x6c] sm:$0xe]  ;;  %v5552_v21 = vsel %vm1530_vm2, %v5547_v20, %v5551_v39  ;;  %v5035_v18 = vor.u32 %v5034_v8, %v5030_v56  ;;  %v6970_v29 = vcombine.low %v4309_v43, %v4270_v46  ;;  %v4182_v25 = vld [vmem:[#allocation3 + $0x78] sm:$0xe]  ;;  %v9792_v15 = vcombine.low %v4269_v11, %v4270_v46  ;;  %v9799_v5 = vpop.permute.xlu1 %4767 }
 0x2e6   : > { %v4267_v35 = vld [vmem:[#allocation3 + $0x6c] sm:$0xf]  ;;  %v9784_v28 = vld [vmem:[#allocation3 + $0x74] ss:$0 sps:$4 sm:$0x11]   ;;  %v6875_v13 = vcombine.low %v4181_v62, %v4143_v36  ;;  %v4540_v12 = vsel %vm1530_vm2, %v4535_v16, %v4539_v14  ;;  %v6876_v0 = vcombine.low %v4182_v25, %v4145_v22  ;;  %v5039_v32 = vrot.slane %v5037_v31, 1 }
 0x2e7   : > { %v4204_v50 = vld [vmem:[#allocation3 + $0x6c] sm:$0xf]  ;;  %v9794_v63 = vld [vmem:[#allocation3 + $0x80] ss:$0 sps:$4 sm:$0x11]   ;;  %v5256_v2 = vrot.slane %v6923_v27, 1  ;;  %v9802_v55 = vcombine.low %v4267_v35, %v9779_v41  ;;  %v9813_v16 = vsel %vm2941_vm13, %v5855_v37, %v4878_v59 }
 0x2e8   : > { %5673 = vrot.lane.b32.xlu0 %v5552_v21, %s7543_s10  ;;  %v5257_v49 = vrot.slane %v9763_v42, 1  ;;  %v4144_v10 = vld [vmem:[#allocation3 + $0x78] sm:$0xf]  ;;  %v5068_v48 = vshll.u32 %v9777_v26, 16  ;;  %v9805_v3 = vcombine.low %v4204_v50, %v9781_v34  ;;  %v5766_v46 = vrot.slane %v9772_v61, 1 }
 0x2e9   : > { %4651 = vrot.lane.b32.xlu1 %v4540_v12, %s7530_s12  ;;  %v4142_v60 = vld [vmem:[#allocation3 + $0x6c] sm:$0xf]  ;;  %v9808_v20 = vcombine.low %v4144_v10, %v4145_v22  ;;  %v5040_v8 = vsel %vm1530_vm2, %v5035_v18, %v5039_v32  ;;  %v5765_v7 = vrot.slane %v6970_v29, 1  ;;  %v4744_v24 = vrot.slane %v6875_v13, 1 }
 0x2ea   : > { %v4745_v1 = vrot.slane %v9784_v28, 1  ;;  %v4308_v39 = vld [vmem:[#allocation3 + $0x6c] sm:$0xe]  ;;  %v9816_v56 = vcombine.low %v4142_v60, %v4143_v36  ;;  %v4747_v31 = vrot.slane %v6876_v0, 1  ;;  %v4748_v11 = vrot.slane %v9794_v63, 1 }
 0x2eb   : > { %10695 = vst [vmem:[#allocation11_spill] sm:$0xff] %v9808_v20  ;;  %v9819_v43 = vld [vmem:[#allocation3 + $0x74] ss:$0 sps:$4 sm:$0x11]   ;;  %v5258_v22 = vsel %vm1803_vm3, %v5256_v2, %v5257_v49  ;;  %v5070_v14 = vrot.slane %v5068_v48, 1  ;;  %v6969_v21 = vcombine.low %v4308_v39, %v9779_v41  ;;  %v9826_v18 = vpop.permute.xlu0 %4769  ;;  %v5066_v36 = vshrl.u32 %v9777_v26, 16 }
 0x2ec   : > { %5161 = vrot.lane.b32.xlu0 %v5040_v8, %s7542_s29  ;;  %v5073_v35 = vshll.u32 %v9763_v42, 16  ;;  %v4568_v29 = vshll.u32 %v9808_v20, 16  ;;  %v5767_v25 = vsel %vm1803_vm3, %v5765_v7, %v5766_v46  ;;  %v4746_v37 = vsel %vm1803_vm3, %v4744_v24, %v4745_v1  ;;  %v9849_v8 = vld [vmem:[#allocation3 + $0x6c] sm:$0xe] }
 0x2ed   : > { %4895 = vrot.lane.b32.xlu1 %v9777_v26, %s7532_s17  ;;  %v9841_v42 = vsel %vm1803_vm3, %v4747_v31, %v4748_v11  ;;  %v5763_v2 = vrot.slane %v9819_v43, 1  ;;  %v5071_v10 = vor.u32 %v5070_v14, %v5066_v36  ;;  %v5762_v46 = vrot.slane %v6969_v21, 1 }
 0x2ee   : > { %v7126_v27 = vpop.f32.mrb[28].mxu0  ;;  %v5075_v7 = vrot.slane %v5073_v35, 1  ;;  %v4570_v1 = vrot.slane %v4568_v29, 1  ;;  %v4566_v11 = vshrl.u32 %v9808_v20, 16  ;;  %v5056_v19 = vshll.u32 %v9805_v3, 16 }
 0x2ef   : > { %v3462_v62 = vmul.f32 %v9557_v58, %v7126_v27  ;;  %v3410_v59 = vpop.f32.mrb[29].mxu0  ;;  %v9838_v26 = vpop.permute.xlu1 %5151 }
 0x2f0   : > { %v3460_v50 = vmul.f32 %v9557_v58, %v3410_v59  ;;  %v7127_v13 = vpop.f32.mrb[30].mxu0  ;;  %5405 = vrot.lane.b32.xlu0 %v9792_v15, %s7537_s15  ;;  %v4573_v59 = vshll.u32 %v9794_v63, 16 }
 0x2f1   : > { %v3501_v12 = vadd.f32 %v9571_v54, %v3462_v62  ;;  %v3463_v0 = vmul.f32 %v9557_v58, %v7127_v13  ;;  %v3413_v41 = vpop.f32.mrb[31].mxu0  ;;  %5403 = vrot.lane.b32.xlu1 %v9802_v55, %s7537_s15  ;;  %v9856_v14 = vpop.permute.xlu0 %5277 }
 0x2f2   : > { %v3499_v32 = vadd.f32 %v9571_v54, %v3460_v50  ;;  %v3461_v49 = vmul.f32 %v9557_v58, %v3413_v41  ;;  %v5556_v58 = vshll.u32 %v9802_v55, 16  ;;  %v9864_v50 = vsel %vm1803_vm3, %v5762_v46, %v5763_v2  ;;  %v7469_v2 = vld [vmem:[%s10519_s5 + $0x20] ss:$0 sps:$4 sm:$0xff]  }
 0x2f3   : > { %v3533_v48 = vmax.f32 %v3501_v12, 0.0  ;;  %v3502_v60 = vadd.f32 %v9571_v54, %v3463_v0  ;;  %v4117_v12 = vld [vmem:[#allocation3 + $0xc0] sm:$0xf]  ;;  %v9868_v41 = vor.u32 %v4570_v1, %v4566_v11  ;;  %v4556_v1 = vshll.u32 %v9816_v56, 16  ;;  %7171 = vmatprep.subr.msk.bf16.mxu1 %vm6150_vm10, %v7469_v2 }
 0x2f4   : > { %v3531_v24 = vmax.f32 %v3499_v32, 0.0  ;;  %v3500_v39 = vadd.f32 %v9571_v54, %v3461_v49  ;;  %4893 = vrot.lane.b32.xlu0 %v9805_v3, %s7532_s17  ;;  %v5076_v54 = vsel %vm1530_vm2, %v5071_v10, %v5075_v7  ;;  %v5568_v32 = vshll.u32 %v9792_v15, 16  ;;  %v4110_v7 = vld [vmem:[#allocation3 + $0xb4] sm:$0xf] }
 0x2f5   : > { %v7036_v31 = vpack.c.bf16 %v3533_v48, %v3533_v48  ;;  %v3534_v27 = vmax.f32 %v3502_v60, 0.0  ;;  %5295 = vrot.lane.b32.xlu1 %v5258_v22, %s7540_s25  ;;  %v5558_v10 = vrot.slane %v5556_v58, 1  ;;  %v9877_v58 = vld [vmem:[#allocation3 + $0x74] ss:$0 sps:$4 sm:$0x11]  }
 0x2f6   : > { %v7034_v62 = vpack.c.bf16 %v3531_v24, %v3531_v24  ;;  %v3532_v21 = vmax.f32 %v3500_v39, 0.0 }
 0x2f7   : > { %v3943_v35 = vshrl.u32 %v7036_v31, 16  ;;  %v7037_v29 = vpack.c.bf16 %v3534_v27, %v3534_v27  ;;  %v9866_v13 = vpop.permute.xlu1 %4641  ;;  %v3946_v48 = vshll.u32 %v7036_v31, 16 }
 0x2f8   : > { %v3926_v0 = vshrl.u32 %v7034_v62, 16  ;;  %v7035_v63 = vpack.c.bf16 %v3532_v21, %v3532_v21  ;;  %5805 = vrot.lane.b32.xlu0 %v5767_v25, %s7541_s26  ;;  %v3929_v60 = vshll.u32 %v7034_v62, 16 }
 0x2f9   : > { %v3945_v49 = vrot.slane %v3943_v35, 7  ;;  %v3951_v22 = vshrl.u32 %v7037_v29, 16  ;;  %4783 = vrot.lane.b32.xlu1 %v4746_v37, %s7539_s16  ;;  %v3954_v11 = vshll.u32 %v7037_v29, 16  ;;  %v4114_v37 = vld [vmem:[#allocation3 + $0xbc] sm:$0x1] }
 0x2fa   : > { %v3928_v46 = vrot.slane %v3926_v0, 7  ;;  %v3934_v24 = vshrl.u32 %v7035_v63, 16  ;;  %v3937_v27 = vshll.u32 %v7035_v63, 16  ;;  %v5662_v21 = vpop.permute.xlu0 %5661 }
 0x2fb   : > { %v3948_v39 = vor.u32 %v3946_v48, %v3945_v49  ;;  %v3953_v31 = vrot.slane %v3951_v22, 7  ;;  %v3949_v35 = vrot.slane %v3945_v49, 4  ;;  %v9879_v62 = vpop.permute.xlu1 %4639  ;;  %v6152_v48 = vsel %vm6150_vm10, %v7469_v2, 0  ;;  %vm10701_vm10 = vmmov %vm10694_vm5 }
 0x2fc   : > { %v3931_v36 = vor.u32 %v3929_v60, %v3928_v46  ;;  %v3936_v25 = vrot.slane %v3934_v24, 7  ;;  %4785 = vrot.lane.b32.xlu0 %v9841_v42, %s7539_s16  ;;  %v3932_v29 = vrot.slane %v3928_v46, 4  ;;  %7137 = vmatpush3.bf16.msra.mxu1 %v6152_v48  ;;  %v5254_v42 = vrot.slane %v9877_v58, 1 }
 0x2fd   : > { %v4118_v0 = vsel %vm9231_vm12, %v3948_v39, %v4117_v12  ;;  %v3956_v20 = vor.u32 %v3954_v11, %v3953_v31  ;;  %v3958_v30 = vrot.slane %v3953_v31, 4  ;;  %5167 = vrot.lane.b32.xlu1 %v5076_v54, %s7542_s29  ;;  %v4575_v12 = vrot.slane %v4573_v59, 1 }
 0x2fe   : > { %4119 = vst [vmem:[#allocation3 + $0xc0] sm:$0xf] %v4118_v0  ;;  %v4111_v63 = vsel %vm9231_vm12, %v3931_v36, %v4110_v7  ;;  %v3939_v49 = vor.u32 %v3937_v27, %v3936_v25  ;;  %v3941_v22 = vrot.slane %v3936_v25, 4  ;;  %v5150_v24 = vpop.permute.xlu0 %5149  ;;  %v5554_v59 = vshrl.u32 %v9802_v55, 16  ;;  %vm10699_vm12 = vmmov %vm10694_vm5 }
 0x2ff   : > { %4112 = vst [vmem:[#allocation3 + $0xb4] sm:$0xf] %v4111_v63  ;;  %v3957_v60 = vsel %vm7775_vm8, %v3949_v35, %v3956_v20  ;;  %v4122_v2 = vsel %vm9238_vm14, %v3958_v30, %v4121_v45  ;;  %v5561_v54 = vshll.u32 %v9819_v43, 16  ;;  %v5920_v20 = vsel %vm5918_vm7, %v9813_v16, %v5150_v24  ;;  %v9902_v30 = vpop.permute.xlu1 %4883  ;;  %v4211_v63 = vld [vmem:[#allocation3 + $0x94] sm:$0xf] }
 0x300   : > { %4120 = vst.msk [vmem:[#allocation3 + $0xc4] sm:$0xf] %vm3535_vm11, %v3957_v60  ;;  %4123 = vst [vmem:[#allocation3 + $0xc8] sm:$0x1] %v4122_v2  ;;  %v3940_v44 = vsel %vm7775_vm8, %v3932_v29, %v3939_v49  ;;  %v4115_v36 = vsel %vm9238_vm14, %v3941_v22, %v4114_v37  ;;  %v10696_v45 = vcombine.low %v9849_v8, %v9781_v34  ;;  %v5570_v46 = vrot.slane %v5568_v32, 1 }
 0x301   : > { %4113 = vst.msk [vmem:[#allocation3 + $0xb8] sm:$0xf] %vm3535_vm11, %v3940_v44  ;;  %4116 = vst [vmem:[#allocation3 + $0xbc] sm:$0x1] %v4115_v36  ;;  %v5953_v55 = vsel %vm5951_vm0, %v5920_v20, %v9856_v14  ;;  %5803 = vrot.lane.b32.xlu0 %v9864_v50, %s7541_s26  ;;  %v4576_v16 = vsel %vm1530_vm2, %v9868_v41, %v4575_v12  ;;  %v5559_v43 = vor.u32 %v5558_v10, %v5554_v59  ;;  %v4210_v22 = vld [vmem:[#allocation3 + $0x90] sm:$0xf] }
 0x302   : > { %v5253_v33 = vrot.slane %v10696_v45, 1  ;;  %v4558_v7 = vrot.slane %v4556_v1, 1  ;;  %4657 = vrot.lane.b32.xlu1 %v4576_v16, %s7530_s12  ;;  %v5985_v34 = vsel %vm3007_vm15, %v5953_v55, %v9742_v40  ;;  %v5566_v8 = vshrl.u32 %v9792_v15, 16  ;;  %v9920_v39 = vpop.permute.xlu0 %5393  ;;  %vm10697_vm8 = vmmov %vm10694_vm5  ;;  %v4274_v12 = vld [vmem:[#allocation3 + $0x94] sm:$0xf] }
 0x303   : > { %v5573_v32 = vshll.u32 %v9772_v61, 16  ;;  %v6018_v14 = vsel %vm6016_vm6, %v5985_v34, %v5662_v21  ;;  %v5563_v31 = vrot.slane %v5561_v54, 1  ;;  %v4554_v50 = vshrl.u32 %v9816_v56, 16  ;;  %v9925_v10 = vpop.permute.xlu1 %5391  ;;  %v4273_v24 = vld [vmem:[#allocation3 + $0x90] sm:$0xf]  ;;  %vm10698_vm11 = vmmov %vm10694_vm5 }
 0x304   : > { %v4561_v41 = vshll.u32 %v9784_v28, 16  ;;  %v6051_v1 = vsel %vm6049_vm9, %v6018_v14, %v9790_v38  ;;  %v5255_v40 = vsel %vm1803_vm3, %v5253_v33, %v5254_v42  ;;  %v5571_v11 = vor.u32 %v5570_v46, %v5566_v8  ;;  %v4247_v44 = vld [vmem:[#allocation3 + $0x90] sm:$0xe]  ;;  %v9954_v36 = vld [vmem:[#allocation3 + $0x98] ss:$0 sps:$4 sm:$0x11]   ;;  %vm10700_vm14 = vmmov %vm10694_vm5 }
 0x305   : > { %v5058_v15 = vrot.slane %v5056_v19, 1  ;;  %7138 = vmatprep.mubr.msk.bf16.mxu1 %vm3073_vm1, %v6051_v1  ;;  %5293 = vrot.lane.b32.xlu0 %v5255_v40, %s7540_s25  ;;  %v5564_v61 = vsel %vm1530_vm2, %v5559_v43, %v5563_v31  ;;  %v4559_v27 = vor.u32 %v4558_v7, %v4554_v50  ;;  %v5575_v21 = vrot.slane %v5573_v32, 1  ;;  %v9959_v59 = vld [vmem:[#allocation3 + $0x88] sm:$0xf]  ;;  %v4311_v20 = vld [vmem:[#allocation3 + $0x90] sm:$0xe] }
 0x306   : > { %5675 = vrot.lane.b32.xlu1 %v5564_v61, %s7543_s10  ;;  %v5054_v28 = vshrl.u32 %v9805_v3, 16  ;;  %v5061_v35 = vshll.u32 %v9877_v58, 16  ;;  %v9936_v25 = vpop.permute.xlu0 %4881  ;;  %v4563_v38 = vrot.slane %v4561_v41, 1  ;;  %v5824_v49 = vsel %vm10697_vm8, %v9334_v57, %v9879_v62  ;;  %v4271_v62 = vld [vmem:[#allocation3 + $0x84] sm:$0xf]  ;;  %vm10702_vm8 = vmmov %vm10694_vm5 }
 0x307   : > { %v9938_v0 = vpop.permute.xlu1 %5283  ;;  %v5576_v37 = vsel %vm1530_vm2, %v5571_v11, %v5575_v21  ;;  %v9952_v42 = vcombine.low %v4210_v22, %v4211_v63  ;;  %v5857_v57 = vsel %vm5853_vm4, %v5824_v49, %v9799_v5  ;;  %v6925_v54 = vcombine.low %v4247_v44, %v4211_v63  ;;  %v4147_v45 = vld [vmem:[#allocation3 + $0x88] sm:$0xf]  ;;  %v9963_v33 = vld [vmem:[#allocation3 + $0x98] ss:$0 sps:$4 sm:$0x11]  }
 0x308   : > { %v5059_v48 = vor.u32 %v5058_v15, %v5054_v28  ;;  %v4564_v29 = vsel %vm1530_vm2, %v4559_v27, %v4563_v38  ;;  %v5063_v3 = vrot.slane %v5061_v35, 1  ;;  %v4149_v46 = vld [vmem:[#allocation3 + $0x94] sm:$0xf]  ;;  %v9967_v55 = vcombine.low %v4273_v24, %v4274_v12  ;;  %v9969_v16 = vld [vmem:[#allocation3 + $0x88] sm:$0xf] }
 0x309   : > { %5677 = vrot.lane.b32.xlu0 %v5576_v37, %s7543_s10  ;;  %v6972_v5 = vcombine.low %v4311_v20, %v4274_v12  ;;  %v4183_v43 = vld [vmem:[#allocation3 + $0x84] sm:$0xe]  ;;  %v4148_v7 = vld [vmem:[#allocation3 + $0x90] sm:$0xf]  ;;  %v5889_v34 = vsel %vm2941_vm13, %v5857_v57, %v9749_v51  ;;  %v9976_v32 = vcombine.low %v4271_v62, %v9959_v59  ;;  %v5262_v50 = vrot.slane %v6925_v54, 1 }
 0x30a   : > { %4655 = vrot.lane.b32.xlu1 %v4564_v29, %s7530_s12  ;;  %v9947_v58 = vpop.permute.xlu0 %5793  ;;  %v5064_v2 = vsel %vm1530_vm2, %v5059_v48, %v5063_v3  ;;  %v9978_v14 = vld [vmem:[#allocation3 + $0x8c] ss:$0 sps:$4 sm:$0x11]   ;;  %v6877_v31 = vcombine.low %v4183_v43, %v4147_v45  ;;  %v5263_v41 = vrot.slane %v9954_v36, 1  ;;  %v9983_v1 = vcombine.low %v4148_v7, %v4149_v46  ;;  %v4208_v51 = vld [vmem:[#allocation3 + $0x84] sm:$0xf] }
 0x30b   : > { %v9949_v60 = vpop.permute.xlu1 %4771  ;;  %v5092_v40 = vshll.u32 %v9952_v42, 16  ;;  %v5922_v11 = vsel %vm5918_vm7, %v5889_v34, %v9838_v26  ;;  %v9991_v61 = vcombine.low %v4208_v51, %v9969_v16  ;;  %v5771_v27 = vrot.slane %v6972_v5, 1  ;;  %v4184_v28 = vld [vmem:[#allocation3 + $0x90] sm:$0xe]  ;;  %v4146_v63 = vld [vmem:[#allocation3 + $0x84] sm:$0xf] }
 0x30c   : > { %v5772_v21 = vrot.slane %v9963_v33, 1  ;;  %v4750_v38 = vrot.slane %v6877_v31, 1  ;;  %v4751_v37 = vrot.slane %v9978_v14, 1  ;;  %v7476_v48 = vld [vmem:[#allocation3 + $0x98] ss:$0 sps:$4 sm:$0x11]   ;;  %v6878_v29 = vcombine.low %v4184_v28, %v4149_v46 }
 0x30d   : > { %5165 = vrot.lane.b32.xlu0 %v5064_v2, %s7542_s29  ;;  %v5264_v26 = vsel %vm1803_vm3, %v5262_v50, %v5263_v41  ;;  %v5094_v49 = vrot.slane %v5092_v40, 1  ;;  %v4592_v3 = vshll.u32 %v9983_v1, 16  ;;  %v5826_v22 = vsel %vm10698_vm11, %v9350_v23, %v9866_v13  ;;  %v4310_v24 = vld [vmem:[#allocation3 + $0x84] sm:$0xe] }
 0x30e   : > { %4899 = vrot.lane.b32.xlu1 %v9952_v42, %s7532_s17  ;;  %v9965_v19 = vpop.permute.xlu0 %4773  ;;  %v5955_v12 = vsel %vm5951_vm0, %v5922_v11, %v9770_v52  ;;  %v10007_v2 = vcombine.low %v4146_v63, %v4147_v45  ;;  %v7478_v44 = vld [vmem:[#allocation3 + $0x8c] ss:$0 sps:$4 sm:$0x11]   ;;  %v5773_v62 = vsel %vm1803_vm3, %v5771_v27, %v5772_v21  ;;  %v5090_v54 = vshrl.u32 %v9952_v42, 16  ;;  %v4246_v11 = vld [vmem:[#allocation3 + $0x84] sm:$0xe] }
 0x30f   : > { %v9973_v8 = vpop.permute.xlu1 %5155  ;;  %v5097_v20 = vshll.u32 %v9954_v36, 16  ;;  %v6971_v46 = vcombine.low %v4310_v24, %v9959_v59  ;;  %v5987_v23 = vsel %vm3007_vm15, %v5955_v12, %v9925_v10  ;;  %v4752_v52 = vsel %vm1803_vm3, %v4750_v38, %v4751_v37  ;;  %v10021_v31 = vld [vmem:[#allocation3 + $0x8c] ss:$0 sps:$4 sm:$0x11]  }
 0x310   : > { %v4753_v5 = vrot.slane %v6878_v29, 1  ;;  %v4754_v45 = vrot.slane %v7476_v48, 1  ;;  %v5095_v7 = vor.u32 %v5094_v49, %v5090_v54  ;;  %v4594_v34 = vrot.slane %v4592_v3, 1 }
 0x311   : > { %5409 = vrot.lane.b32.xlu0 %v9967_v55, %s7537_s15  ;;  %v5580_v42 = vshll.u32 %v9976_v32, 16  ;;  %v5769_v59 = vrot.slane %v7478_v44, 1  ;;  %v5099_v50 = vrot.slane %v5097_v20, 1  ;;  %v5768_v41 = vrot.slane %v6971_v46, 1 }
 0x312   : > { %5407 = vrot.lane.b32.xlu1 %v9976_v32, %s7537_s15  ;;  %v5792_v15 = vpop.permute.xlu0 %5791  ;;  %v4590_v40 = vshrl.u32 %v9983_v1, 16  ;;  %v4597_v51 = vshll.u32 %v7476_v48, 16  ;;  %v5859_v27 = vsel %vm5853_vm4, %v5826_v22, %v9826_v18  ;;  %v4755_v28 = vsel %vm1803_vm3, %v4753_v5, %v4754_v45 }
 0x313   : > { %v9994_v35 = vpop.permute.xlu1 %4645  ;;  %v5592_v38 = vshll.u32 %v9967_v55, 16  ;;  %v5100_v37 = vsel %vm1530_vm2, %v5095_v7, %v5099_v50  ;;  %v4580_v63 = vshll.u32 %v10007_v2, 16  ;;  %v5891_v48 = vsel %vm2941_vm13, %v5859_v27, %v9936_v25 }
 0x314   : > { %v4595_v29 = vor.u32 %v4594_v34, %v4590_v40  ;;  %v5260_v18 = vrot.slane %v10021_v31, 1  ;;  %v4599_v3 = vrot.slane %v4597_v51, 1  ;;  %v5578_v22 = vshrl.u32 %v9976_v32, 16 }
 0x315   : > { %4897 = vrot.lane.b32.xlu0 %v9991_v61, %s7532_s17  ;;  %v5585_v12 = vshll.u32 %v7478_v44, 16  ;;  %v5594_v20 = vrot.slane %v5592_v38, 1  ;;  %v5080_v46 = vshll.u32 %v9991_v61, 16  ;;  %v5590_v44 = vshrl.u32 %v9967_v55, 16 }
 0x316   : > { %5299 = vrot.lane.b32.xlu1 %v5264_v26, %s7540_s25  ;;  %v5282_v57 = vpop.permute.xlu0 %5281  ;;  %v5582_v26 = vrot.slane %v5580_v42, 1  ;;  %v5597_v5 = vshll.u32 %v9963_v33, 16  ;;  %v4578_v7 = vshrl.u32 %v10007_v2, 16  ;;  %v4585_v34 = vshll.u32 %v9978_v14, 16 }
 0x317   : > { %v5664_v13 = vpop.permute.xlu1 %5663  ;;  %v5082_v55 = vrot.slane %v5080_v46, 1  ;;  %v5078_v14 = vshrl.u32 %v9991_v61, 16 }
 0x318   : > { %v6020_v43 = vsel %vm6016_vm6, %v5987_v23, %v5664_v13  ;;  %v4600_v23 = vsel %vm1530_vm2, %v4595_v29, %v4599_v3  ;;  %v5583_v13 = vor.u32 %v5582_v26, %v5578_v22  ;;  %v5599_v50 = vrot.slane %v5597_v5, 1  ;;  %v4278_v29 = vld [vmem:[#allocation3 + $0xac] sm:$0xf]  ;;  %v4275_v3 = vld [vmem:[#allocation3 + $0x9c] sm:$0xf] }
 0x319   : > { %5809 = vrot.lane.b32.xlu0 %v5773_v62, %s7541_s26  ;;  %v6053_v36 = vsel %vm6049_vm9, %v6020_v43, %v5792_v15  ;;  %v6924_v15 = vcombine.low %v4246_v11, %v9969_v16  ;;  %v5770_v16 = vsel %vm1803_vm3, %v5768_v41, %v5769_v59  ;;  %v5587_v43 = vrot.slane %v5585_v12, 1  ;;  %v10087_v22 = vld [vmem:[#allocation3 + $0xa0] sm:$0xf] }
 0x31a   : > { %4787 = vrot.lane.b32.xlu1 %v4752_v52, %s7539_s16  ;;  %7139 = vmatmul.mubr.msk.bf16.vlgmr.msra.gmra.mrb[0].mxu1 %vm3073_vm1, %v6053_v36  ;;  %v5666_v10 = vpop.permute.xlu0 %5665  ;;  %v4582_v52 = vrot.slane %v4580_v63, 1  ;;  %v5595_v59 = vor.u32 %v5594_v20, %v5590_v44  ;;  %v5085_v41 = vshll.u32 %v10021_v31, 16  ;;  %v4587_v51 = vrot.slane %v4585_v34, 1  ;;  %v4151_v12 = vld [vmem:[#allocation3 + $0xa0] sm:$0xf] }
 0x31b   : > { %v4644_v21 = vpop.permute.xlu1 %4643  ;;  %v5259_v54 = vrot.slane %v6924_v15, 1  ;;  %v5588_v33 = vsel %vm1530_vm2, %v5583_v13, %v5587_v43  ;;  %v5083_v27 = vor.u32 %v5082_v55, %v5078_v14  ;;  %v4215_v15 = vld [vmem:[#allocation3 + $0xac] sm:$0xf]  ;;  %v10099_v13 = vld [vmem:[#allocation3 + $0xa4] ss:$0 sps:$4 sm:$0x11]  }
 0x31c   : > { %v5600_v11 = vsel %vm1530_vm2, %v5595_v59, %v5599_v50  ;;  %v5087_v38 = vrot.slane %v5085_v41, 1  ;;  %v5828_v61 = vsel %vm10699_vm12, %v9437_v6, %v4644_v21  ;;  %v4313_v21 = vld [vmem:[#allocation3 + $0xa8] sm:$0xe]  ;;  %v4153_v20 = vld [vmem:[#allocation3 + $0xac] sm:$0xf] }
 0x31d   : > { %4789 = vrot.lane.b32.xlu0 %v4755_v28, %s7539_s16  ;;  %v5261_v36 = vsel %vm1803_vm3, %v5259_v54, %v5260_v18  ;;  %v4277_v18 = vld [vmem:[#allocation3 + $0xa8] sm:$0xf]  ;;  %v10093_v54 = vld [vmem:[#allocation3 + $0xb0] ss:$0 sps:$4 sm:$0x11]   ;;  %v6974_v5 = vcombine.low %v4313_v21, %v4278_v29 }
 0x31e   : > { %5171 = vrot.lane.b32.xlu1 %v5100_v37, %s7542_s29  ;;  %v5154_v49 = vpop.permute.xlu0 %5153  ;;  %v4214_v37 = vld [vmem:[#allocation3 + $0xa8] sm:$0xf]  ;;  %v5088_v63 = vsel %vm1530_vm2, %v5083_v27, %v5087_v38  ;;  %v10106_v44 = vld [vmem:[#allocation3 + $0xa0] sm:$0xf]  ;;  %v4212_v59 = vld [vmem:[#allocation3 + $0x9c] sm:$0xf] }
 0x31f   : > { %v5924_v24 = vsel %vm5918_vm7, %v5891_v48, %v5154_v49  ;;  %v10040_v62 = vpop.permute.xlu1 %4887  ;;  %v10082_v48 = vcombine.low %v4214_v37, %v4215_v15  ;;  %v4249_v49 = vld [vmem:[#allocation3 + $0xa8] sm:$0xe]  ;;  %v5778_v50 = vrot.slane %v10093_v54, 1  ;;  %v7494_v14 = vld [vmem:[#allocation3 + $0xb0] ss:$0 sps:$4 sm:$0x11]  }
 0x320   : > { %v5957_v25 = vsel %vm5951_vm0, %v5924_v24, %v5282_v57  ;;  %v6927_v6 = vcombine.low %v4249_v49, %v4215_v15  ;;  %v5861_v24 = vsel %vm5853_vm4, %v5828_v61, %v9949_v60  ;;  %v4186_v55 = vld [vmem:[#allocation3 + $0xa8] sm:$0xe]  ;;  %v4150_v38 = vld [vmem:[#allocation3 + $0x9c] sm:$0xf] }
 0x321   : > { %5807 = vrot.lane.b32.xlu0 %v5770_v16, %s7541_s26  ;;  %v5989_v32 = vsel %vm3007_vm15, %v5957_v25, %v9920_v39  ;;  %v10084_v16 = vld [vmem:[#allocation3 + $0xb0] ss:$0 sps:$4 sm:$0x11]   ;;  %v10097_v25 = vcombine.low %v4277_v18, %v4278_v29  ;;  %v4312_v37 = vld [vmem:[#allocation3 + $0x9c] sm:$0xe]  ;;  %v5114_v21 = vshrl.u32 %v10082_v48, 16 }
 0x322   : > { %4661 = vrot.lane.b32.xlu1 %v4600_v23, %s7530_s12  ;;  %v10051_v45 = vpop.permute.xlu0 %5397  ;;  %v6022_v57 = vsel %vm6016_vm6, %v5989_v32, %v5666_v10  ;;  %v4583_v10 = vor.u32 %v4582_v52, %v4578_v7  ;;  %v4185_v23 = vld [vmem:[#allocation3 + $0x9c] sm:$0xe]  ;;  %v10104_v32 = vcombine.low %v4275_v3, %v10087_v22  ;;  %v5269_v60 = vrot.slane %v10084_v16, 1 }
 0x323   : > { %v10056_v42 = vpop.permute.xlu1 %5395  ;;  %v6055_v39 = vsel %vm6049_vm9, %v6022_v57, %v9947_v58  ;;  %v6879_v43 = vcombine.low %v4185_v23, %v4151_v12  ;;  %v4152_v57 = vld [vmem:[#allocation3 + $0xa8] sm:$0xf]  ;;  %v5893_v7 = vsel %vm2941_vm13, %v5861_v24, %v9902_v30  ;;  %v5268_v34 = vrot.slane %v6927_v6, 1 }
 0x324   : > { %7142 = vmatprep.mubr.msk.bf16.mxu1 %vm3073_vm1, %v6055_v39  ;;  %v4588_v28 = vsel %vm1530_vm2, %v4583_v10, %v4587_v51  ;;  %v5116_v39 = vshll.u32 %v10082_v48, 16  ;;  %v10119_v10 = vcombine.low %v4212_v59, %v10106_v44  ;;  %v4757_v30 = vrot.slane %v10099_v13, 1 }
 0x325   : > { %5297 = vrot.lane.b32.xlu0 %v5261_v36, %s7540_s25  ;;  %v10113_v36 = vcombine.low %v4152_v57, %v4153_v20  ;;  %v5926_v41 = vsel %vm5918_vm7, %v5893_v7, %v9973_v8  ;;  %v4756_v27 = vrot.slane %v6879_v43, 1  ;;  %v5270_v15 = vsel %vm1803_vm3, %v5268_v34, %v5269_v60  ;;  %v7496_v8 = vld [vmem:[#allocation3 + $0xa4] ss:$0 sps:$4 sm:$0x11]  }
 0x326   : > { %5679 = vrot.lane.b32.xlu1 %v5588_v33, %s7543_s10  ;;  %v10067_v40 = vpop.permute.xlu0 %4885  ;;  %v5118_v61 = vrot.slane %v5116_v39, 1  ;;  %v6973_v18 = vcombine.low %v4312_v37, %v10087_v22  ;;  %v5959_v49 = vsel %vm5951_vm0, %v5926_v41, %v9938_v0  ;;  %v4760_v6 = vrot.slane %v7494_v14, 1  ;;  %v10148_v7 = vld [vmem:[#allocation3 + $0xa4] ss:$0 sps:$4 sm:$0x11]  }
 0x327   : > { %v10069_v58 = vpop.permute.xlu1 %5287  ;;  %v4616_v29 = vshll.u32 %v10113_v36, 16  ;;  %v5121_v24 = vshll.u32 %v10084_v16, 16  ;;  %v5604_v57 = vshll.u32 %v10104_v32, 16  ;;  %v5830_v34 = vsel %vm10700_vm14, %v9445_v53, %v9994_v35 }
 0x328   : > { %v5119_v0 = vor.u32 %v5118_v61, %v5114_v21  ;;  %v5774_v16 = vrot.slane %v6973_v18, 1  ;;  %v5266_v61 = vrot.slane %v10148_v7, 1  ;;  %v5602_v18 = vshrl.u32 %v10104_v32, 16 }
 0x329   : > { %5681 = vrot.lane.b32.xlu0 %v5600_v11, %s7543_s10  ;;  %v5777_v11 = vrot.slane %v6974_v5, 1  ;;  %v4618_v43 = vrot.slane %v4616_v29, 1  ;;  %v5123_v59 = vrot.slane %v5121_v24, 1  ;;  %v5606_v35 = vrot.slane %v5604_v57, 1 }
 0x32a   : > { %4659 = vrot.lane.b32.xlu1 %v4588_v28, %s7530_s12  ;;  %v10077_v31 = vpop.permute.xlu0 %5797  ;;  %v6880_v28 = vcombine.low %v4186_v55, %v4153_v20  ;;  %v5991_v20 = vsel %vm3007_vm15, %v5959_v49, %v10056_v42  ;;  %v5775_v42 = vrot.slane %v7496_v8, 1  ;;  %v4614_v55 = vshrl.u32 %v10113_v36, 16 }
 0x32b   : > { %v10079_v26 = vpop.permute.xlu1 %4775  ;;  %v5779_v60 = vsel %vm1803_vm3, %v5777_v11, %v5778_v50  ;;  %v4621_v50 = vshll.u32 %v7494_v14, 16  ;;  %v5609_v49 = vshll.u32 %v7496_v8, 16  ;;  %v5614_v8 = vshrl.u32 %v10097_v25, 16 }
 0x32c   : > { %v4759_v5 = vrot.slane %v6880_v28, 1  ;;  %v5124_v28 = vsel %vm1530_vm2, %v5119_v0, %v5123_v59  ;;  %v4619_v53 = vor.u32 %v4618_v43, %v4614_v55  ;;  %v5776_v14 = vsel %vm1803_vm3, %v5774_v16, %v5775_v42 }
 0x32d   : > { %5169 = vrot.lane.b32.xlu0 %v5088_v63, %s7542_s29  ;;  %v10132_v63 = vcombine.low %v4150_v38, %v4151_v12  ;;  %v4758_v12 = vsel %vm1803_vm3, %v4756_v27, %v4757_v30  ;;  %v4248_v30 = vld [vmem:[#allocation3 + $0x9c] sm:$0xe]  ;;  %v5616_v27 = vshll.u32 %v10097_v25, 16  ;;  %v5863_v38 = vsel %vm5853_vm4, %v5830_v34, %v9965_v19 }
 0x32e   : > { %4903 = vrot.lane.b32.xlu1 %v10082_v48, %s7532_s17  ;;  %v10095_v46 = vpop.permute.xlu0 %4777  ;;  %v4761_v11 = vsel %vm1803_vm3, %v4759_v5, %v4760_v6  ;;  %v4623_v29 = vrot.slane %v4621_v50, 1  ;;  %v5621_v5 = vshll.u32 %v10093_v54, 16  ;;  %v5611_v0 = vrot.slane %v5609_v49, 1  ;;  %v4279_v49 = vld [vmem:[#allocation3 + $0xb4] sm:$0xf] }
 0x32f   : > { %v10101_v52 = vpop.permute.xlu1 %5159  ;;  %v5618_v19 = vrot.slane %v5616_v27, 1  ;;  %v4602_v43 = vshrl.u32 %v10132_v63, 16  ;;  %v4609_v57 = vshll.u32 %v10099_v13, 16  ;;  %v5102_v13 = vshrl.u32 %v10119_v10, 16  ;;  %v4219_v27 = vld [vmem:[#allocation3 + $0xc4] sm:$0xf] }
 0x330   : > { %v5109_v59 = vshll.u32 %v10148_v7, 16 }
 0x331   : > { %5413 = vrot.lane.b32.xlu0 %v10097_v25, %s7537_s15  ;;  %v5619_v42 = vor.u32 %v5618_v19, %v5614_v8  ;;  %v4611_v50 = vrot.slane %v4609_v57, 1 }
 0x332   : > { %5411 = vrot.lane.b32.xlu1 %v10104_v32, %s7537_s15  ;;  %v5796_v33 = vpop.permute.xlu0 %5795 }
 0x333   : > { %v10125_v51 = vpop.permute.xlu1 %4649 }
 0x335   : > { %4901 = vrot.lane.b32.xlu0 %v10119_v10, %s7532_s17 }
 0x336   : > { %5303 = vrot.lane.b32.xlu1 %v5270_v15, %s7540_s25  ;;  %v5286_v3 = vpop.permute.xlu0 %5285  ;;  %v4604_v15 = vshll.u32 %v10132_v63, 16 }
 0x337   : > { %v5668_v23 = vpop.permute.xlu1 %5667 }
 0x338   : > { %v6024_v22 = vsel %vm6016_vm6, %v5991_v20, %v5668_v23  ;;  %v5104_v20 = vshll.u32 %v10119_v10, 16 }
 0x339   : > { %5813 = vrot.lane.b32.xlu0 %v5779_v60, %s7541_s26  ;;  %v6057_v48 = vsel %vm6049_vm9, %v6024_v22, %v5796_v33  ;;  %v6926_v33 = vcombine.low %v4248_v30, %v10106_v44  ;;  %v5895_v44 = vsel %vm2941_vm13, %v5863_v38, %v10067_v40  ;;  %v4624_v60 = vsel %vm1530_vm2, %v4619_v53, %v4623_v29  ;;  %v4218_v53 = vld [vmem:[#allocation3 + $0xc0] sm:$0xf]  ;;  %v10217_v29 = vld [vmem:[#allocation3 + $0xc8] ss:$0 sps:$4 sm:$0x11]  }
 0x33a   : > { %4791 = vrot.lane.b32.xlu1 %v4758_v12, %s7539_s16  ;;  %7143 = vmatmul.mubr.msk.bf16.gmra.mrb[4].mxu1 %vm3073_vm1, %v6057_v48  ;;  %v5670_v39 = vpop.permute.xlu0 %5669  ;;  %v5607_v40 = vor.u32 %v5606_v35, %v5602_v18  ;;  %v4606_v12 = vrot.slane %v4604_v15, 1  ;;  %v5106_v25 = vrot.slane %v5104_v20, 1  ;;  %v10212_v38 = vcombine.low %v4218_v53, %v4219_v27 }
 0x33b   : > { %v4648_v41 = vpop.permute.xlu1 %4647  ;;  %v5265_v24 = vrot.slane %v6926_v33, 1 }
 0x33c   : > { %v5612_v54 = vsel %vm1530_vm2, %v5607_v40, %v5611_v0  ;;  %v4607_v34 = vor.u32 %v4606_v12, %v4602_v43  ;;  %v5832_v10 = vsel %vm10694_vm5, %v9552_v9, %v4648_v41  ;;  %v4155_v9 = vld [vmem:[#allocation3 + $0xb8] sm:$0xf]  ;;  %v4187_v40 = vld [vmem:[#allocation3 + $0xb4] sm:$0xe]  ;;  %v5140_v57 = vshll.u32 %v10212_v38, 16 }
 0x33d   : > { %4793 = vrot.lane.b32.xlu0 %v4761_v11, %s7539_s16  ;;  %v5267_v16 = vsel %vm1803_vm3, %v5265_v24, %v5266_v61  ;;  %v5107_v11 = vor.u32 %v5106_v25, %v5102_v13  ;;  %v10214_v61 = vld [vmem:[#allocation3 + $0xc4] sm:$0xf]  ;;  %v5865_v41 = vsel %vm5853_vm4, %v5832_v10, %v10079_v26  ;;  %v4314_v24 = vld [vmem:[#allocation3 + $0xb4] sm:$0xe]  ;;  %v6881_v8 = vcombine.low %v4187_v40, %v4155_v9 }
 0x33e   : > { %5175 = vrot.lane.b32.xlu1 %v5124_v28, %s7542_s29  ;;  %v5158_v37 = vpop.permute.xlu0 %5157  ;;  %v4612_v33 = vsel %vm1530_vm2, %v4607_v34, %v4611_v50  ;;  %v5111_v28 = vrot.slane %v5109_v59, 1  ;;  %v10234_v26 = vld [vmem:[#allocation3 + $0xbc] ss:$0 sps:$4 sm:$0x11]   ;;  %v4250_v43 = vld [vmem:[#allocation3 + $0xb4] sm:$0xe] }
 0x33f   : > { %v5928_v6 = vsel %vm5918_vm7, %v5895_v44, %v5158_v37  ;;  %v10170_v21 = vpop.permute.xlu1 %4891  ;;  %v4280_v44 = vld [vmem:[#allocation3 + $0xb8] sm:$0xf]  ;;  %v4251_v37 = vld [vmem:[#allocation3 + $0xc0] sm:$0xe]  ;;  %v4154_v50 = vld [vmem:[#allocation3 + $0xb4] sm:$0xf] }
 0x340   : > { %v5961_v23 = vsel %vm5951_vm0, %v5928_v6, %v5286_v3  ;;  %v5112_v15 = vsel %vm1530_vm2, %v5107_v11, %v5111_v28  ;;  %v6929_v18 = vcombine.low %v4251_v37, %v4219_v27  ;;  %v4217_v6 = vld [vmem:[#allocation3 + $0xb8] sm:$0xf]  ;;  %v4763_v11 = vrot.slane %v10234_v26, 1 }
 0x341   : > { %5811 = vrot.lane.b32.xlu0 %v5776_v14, %s7541_s26  ;;  %v5993_v32 = vsel %vm3007_vm15, %v5961_v23, %v10051_v45  ;;  %v4281_v14 = vld [vmem:[#allocation3 + $0xc0] sm:$0xf]  ;;  %v10228_v23 = vld [vmem:[#allocation3 + $0xbc] ss:$0 sps:$4 sm:$0x11]   ;;  %v10260_v28 = vcombine.low %v4154_v50, %v4155_v9  ;;  %v5142_v10 = vrot.slane %v5140_v57, 1 }
 0x342   : > { %4665 = vrot.lane.b32.xlu1 %v4624_v60, %s7530_s12  ;;  %v10181_v22 = vpop.permute.xlu0 %5401  ;;  %v6026_v3 = vsel %vm6016_vm6, %v5993_v32, %v5670_v39  ;;  %v5623_v39 = vrot.slane %v5621_v5, 1  ;;  %v10226_v20 = vcombine.low %v4281_v14, %v10214_v61  ;;  %v6975_v60 = vcombine.low %v4314_v24, %v4280_v44 }
 0x343   : > { %v10186_v48 = vpop.permute.xlu1 %5399  ;;  %v6059_v45 = vsel %vm6049_vm9, %v6026_v3, %v10077_v31  ;;  %v10232_v32 = vcombine.low %v4279_v49, %v4280_v44  ;;  %v5897_v5 = vsel %vm2941_vm13, %v5865_v41, %v10040_v62  ;;  %v5274_v0 = vrot.slane %v6929_v18, 1 }
 0x344   : > { %7146 = vmatprep.mubr.msk.bf16.mxu1 %vm3073_vm1, %v6059_v45  ;;  %v5624_v30 = vsel %vm1530_vm2, %v5619_v42, %v5623_v39  ;;  %v5275_v3 = vrot.slane %v10217_v29, 1  ;;  %v10244_v45 = vld [vmem:[#allocation3 + $0xbc] ss:$0 sps:$4 sm:$0x11]   ;;  %v6928_v42 = vcombine.low %v4250_v43, %v4217_v6  ;;  %v5780_v62 = vrot.slane %v6975_v60, 1 }
 0x345   : > { %5301 = vrot.lane.b32.xlu0 %v5267_v16, %s7540_s25  ;;  %v4216_v16 = vld [vmem:[#allocation3 + $0xb4] sm:$0xf]  ;;  %v5781_v34 = vrot.slane %v10228_v23, 1  ;;  %v10249_v39 = vld [vmem:[#allocation3 + $0xc8] ss:$0 sps:$4 sm:$0x11]   ;;  %v5930_v13 = vsel %vm5918_vm7, %v5897_v5, %v10101_v52  ;;  %v5834_v43 = vsel %vm10701_vm10, %v9564_v17, %v10125_v51 }
 0x346   : > { %5683 = vrot.lane.b32.xlu1 %v5612_v54, %s7543_s10  ;;  %v10197_v55 = vpop.permute.xlu0 %4889  ;;  %v10246_v54 = vcombine.low %v4216_v16, %v4217_v6  ;;  %v5276_v27 = vsel %vm1803_vm3, %v5274_v0, %v5275_v3  ;;  %v5628_v53 = vshll.u32 %v10232_v32, 16  ;;  %v5271_v52 = vrot.slane %v6928_v42, 1 }
 0x347   : > { %v10199_v31 = vpop.permute.xlu1 %5291  ;;  %v5138_v14 = vshrl.u32 %v10212_v38, 16  ;;  %v5963_v44 = vsel %vm5951_vm0, %v5930_v13, %v10069_v58  ;;  %v5782_v18 = vsel %vm1803_vm3, %v5780_v62, %v5781_v34  ;;  %v5145_v41 = vshll.u32 %v10217_v29, 16  ;;  %v10288_v62 = vld [vmem:[#allocation3 + $0xd4] ss:$0 sps:$4 sm:$0x11]  }
 0x348   : > { %v5645_v9 = vshll.u32 %v10249_v39, 16  ;;  %v5995_v49 = vsel %vm3007_vm15, %v5963_v44, %v10186_v48  ;;  %v5128_v40 = vshll.u32 %v10246_v54, 16  ;;  %v4628_v5 = vshll.u32 %v10260_v28, 16 }
 0x349   : > { %5685 = vrot.lane.b32.xlu0 %v5624_v30, %s7543_s10  ;;  %v4762_v30 = vrot.slane %v6881_v8, 1  ;;  %v5143_v58 = vor.u32 %v5142_v10, %v5138_v14  ;;  %v5630_v8 = vrot.slane %v5628_v53, 1  ;;  %v5638_v0 = vshrl.u32 %v10226_v20, 16 }
 0x34a   : > { %4663 = vrot.lane.b32.xlu1 %v4612_v33, %s7530_s12  ;;  %v10207_v7 = vpop.permute.xlu0 %5801  ;;  %v5640_v33 = vshll.u32 %v10226_v20, 16  ;;  %v5633_v3 = vshll.u32 %v10228_v23, 16  ;;  %v5147_v16 = vrot.slane %v5145_v41, 1  ;;  %v5626_v42 = vshrl.u32 %v10232_v32, 16 }
 0x34b   : > { %v10209_v35 = vpop.permute.xlu1 %4779  ;;  %v4764_v24 = vsel %vm1803_vm3, %v4762_v30, %v4763_v11  ;;  %v5647_v50 = vrot.slane %v5645_v9, 1  ;;  %v5130_v23 = vrot.slane %v5128_v40, 1  ;;  %v5133_v30 = vshll.u32 %v10244_v45, 16 }
 0x34c   : > { %v5642_v60 = vrot.slane %v5640_v33, 1  ;;  %v5148_v17 = vsel %vm1530_vm2, %v5143_v58, %v5147_v16  ;;  %v5631_v51 = vor.u32 %v5630_v8, %v5626_v42  ;;  %v4630_v11 = vrot.slane %v4628_v5, 1  ;;  %v7520_v8 = vld [vmem:[#allocation3 + $0xd0] sm:$0xf] }
 0x34d   : > { %5173 = vrot.lane.b32.xlu0 %v5112_v15, %s7542_s29  ;;  %v5272_v15 = vrot.slane %v10244_v45, 1  ;;  %v5635_v33 = vrot.slane %v5633_v3, 1  ;;  %v4633_v10 = vshll.u32 %v10234_v26, 16  ;;  %v5657_v45 = vshll.u32 %v10288_v62, 16  ;;  %v4316_v26 = vld [vmem:[#allocation3 + $0xcc] sm:$0xe] }
 0x34e   : > { %4907 = vrot.lane.b32.xlu1 %v10212_v38, %s7532_s17  ;;  %v10223_v19 = vpop.permute.xlu0 %4781  ;;  %v5643_v13 = vor.u32 %v5642_v60, %v5638_v0  ;;  %v6977_v5 = vcombine.low %v4316_v26, %v7520_v8  ;;  %v5787_v42 = vrot.slane %v10288_v62, 1 }
 0x34f   : > { %v10230_v12 = vpop.permute.xlu1 %5163  ;;  %v5273_v48 = vsel %vm1803_vm3, %v5271_v52, %v5272_v15  ;;  %v4315_v52 = vld [vmem:[#allocation3 + $0xc0] sm:$0xe]  ;;  %v5650_v15 = vshrl.u32 %v9182_v4, 16  ;;  %v4635_v60 = vrot.slane %v4633_v10, 1 }
 0x350   : > { %v6976_v9 = vcombine.low %v4315_v52, %v10214_v61  ;;  %v5659_v61 = vrot.slane %v5657_v45, 1  ;;  %v5786_v16 = vrot.slane %v6977_v5, 1 }
 0x351   : > { %5417 = vrot.lane.b32.xlu0 %v10226_v20, %s7537_s15  ;;  %v5126_v20 = vshrl.u32 %v10246_v54, 16 }
 0x352   : > { %5415 = vrot.lane.b32.xlu1 %v10232_v32, %s7537_s15  ;;  %v5800_v25 = vpop.permute.xlu0 %5799  ;;  %v5867_v32 = vsel %vm5853_vm4, %v5834_v43, %v10095_v46  ;;  %v5783_v0 = vrot.slane %v6976_v9, 1 }
 0x353   : > { %v10253_v59 = vpop.permute.xlu1 %4653  ;;  %v5131_v41 = vor.u32 %v5130_v23, %v5126_v20 }
 0x355   : > { %4905 = vrot.lane.b32.xlu0 %v10246_v54, %s7532_s17  ;;  %v5899_v54 = vsel %vm2941_vm13, %v5867_v32, %v10197_v55  ;;  %v5636_v55 = vsel %vm1530_vm2, %v5631_v51, %v5635_v33 }
 0x356   : > { %5307 = vrot.lane.b32.xlu1 %v5276_v27, %s7540_s25  ;;  %v5290_v37 = vpop.permute.xlu0 %5289  ;;  %v4626_v27 = vshrl.u32 %v10260_v28, 16 }
 0x357   : > { %v5672_v6 = vpop.permute.xlu1 %5671 }
 0x358   : > { %v6028_v38 = vsel %vm6016_vm6, %v5995_v49, %v5672_v6 }
 0x359   : > { %5815 = vrot.lane.b32.xlu0 %v5782_v18, %s7541_s26  ;;  %v6061_v29 = vsel %vm6049_vm9, %v6028_v38, %v5800_v25  ;;  %v5652_v25 = vshll.u32 %v9182_v4, 16  ;;  %v5648_v18 = vsel %vm1530_vm2, %v5643_v13, %v5647_v50  ;;  %v4631_v4 = vor.u32 %v4630_v11, %v4626_v27 }
 0x35a   : > { %4795 = vrot.lane.b32.xlu1 %v4764_v24, %s7539_s16  ;;  %7147 = vmatmul.mubr.msk.bf16.gmra.mrb[8].mxu1 %vm3073_vm1, %v6061_v29  ;;  %v5674_v57 = vpop.permute.xlu0 %5673  ;;  %v5135_v24 = vrot.slane %v5133_v30, 1  ;;  %v5788_v50 = vsel %vm1803_vm3, %v5786_v16, %v5787_v42 }
 0x35b   : > { %v4652_v34 = vpop.permute.xlu1 %4651  ;;  %v5654_v14 = vrot.slane %v5652_v25, 1  ;;  %v4636_v3 = vsel %vm1530_vm2, %v4631_v4, %v4635_v60 }
 0x35c   : > { %v5136_v29 = vsel %vm1530_vm2, %v5131_v41, %v5135_v24 }
 0x35d   : > { %5305 = vrot.lane.b32.xlu0 %v5273_v48, %s7540_s25  ;;  %v5655_v58 = vor.u32 %v5654_v14, %v5650_v15  ;;  %s7005_s25 = sshll.u32 %s10715_s28, 4 }
 0x35e   : > { %5179 = vrot.lane.b32.xlu1 %v5148_v17, %s7542_s29  ;;  %v5162_v53 = vpop.permute.xlu0 %5161 }
 0x35f   : > { %v5932_v44 = vsel %vm5918_vm7, %v5899_v54, %v5162_v53  ;;  %v10305_v46 = vpop.permute.xlu1 %4895  ;;  %v10703_v54 = vld [vmem:[#allocation23_spill] sm:$0xff] }
 0x360   : > { %v5965_v49 = vsel %vm5951_vm0, %v5932_v44, %v5290_v37 }
 0x361   : > { %5689 = vrot.lane.b32.xlu0 %v5648_v18, %s7543_s10  ;;  %v5997_v6 = vsel %vm3007_vm15, %v5965_v49, %v10181_v22  ;;  %v5784_v22 = vrot.slane %v10249_v39, 1  ;;  %v5836_v39 = vsel %vm10702_vm8, %v9674_v47, %v4652_v34 }
 0x362   : > { %5687 = vrot.lane.b32.xlu1 %v5636_v55, %s7543_s10  ;;  %v5406_v40 = vpop.permute.xlu0 %5405  ;;  %v6030_v38 = vsel %vm6016_vm6, %v5997_v6, %v5674_v57  ;;  %v5660_v57 = vsel %vm1530_vm2, %v5655_v58, %v5659_v61  ;;  %v5869_v23 = vsel %vm5853_vm4, %v5836_v39, %v10209_v35  ;;  %vm10704_vm2 = vmmov %vm10694_vm5 }
 0x363   : > { %v5404_v37 = vpop.permute.xlu1 %5403  ;;  %v6063_v48 = vsel %vm6049_vm9, %v6030_v38, %v10207_v7  ;;  %v5785_v7 = vsel %vm1803_vm3, %v5783_v0, %v5784_v22  ;;  %v5901_v51 = vsel %vm2941_vm13, %v5869_v23, %v10170_v21  ;;  %v5838_v21 = vsel %vm10704_vm2, %v10703_v54, %v10253_v59  ;;  %vm10705_vm3 = vmmov %vm10704_vm2  ;;  %v10706_v22 = vld [vmem:[#allocation11_spill] sm:$0xff] }
 0x364   : > { %7150 = vmatprep.mubr.msk.bf16.mxu1 %vm3073_vm1, %v6063_v48  ;;  %v5934_v11 = vsel %vm5918_vm7, %v5901_v51, %v10230_v12  ;;  %v5871_v52 = vsel %vm5853_vm4, %v5838_v21, %v10223_v19  ;;  %vm10707_vm11 = vmmov %vm10704_vm2 }
 0x365   : > { %5177 = vrot.lane.b32.xlu0 %v5136_v29, %s7542_s29  ;;  %v5967_v47 = vsel %vm5951_vm0, %v5934_v11, %v10199_v31  ;;  %vm10708_vm12 = vmmov %vm10704_vm2 }
 0x366   : > { %4667 = vrot.lane.b32.xlu1 %v4636_v3, %s7530_s12  ;;  %v4894_v43 = vpop.permute.xlu0 %4893  ;;  %v5999_v33 = vsel %vm3007_vm15, %v5967_v47, %v5404_v37  ;;  %vm10709_vm14 = vmmov %vm10704_vm2 }
 0x367   : > { %v5296_v25 = vpop.permute.xlu1 %5295  ;;  %v5903_v31 = vsel %vm2941_vm13, %v5871_v52, %v4894_v43  ;;  %vm10710_vm5 = vmmov %vm10704_vm2 }
 0x368   : > { %vm10711_vm10 = vmmov %vm10704_vm2 }
 0x369   : > { %5817 = vrot.lane.b32.xlu0 %v5785_v7, %s7541_s26  ;;  %vm10712_vm8 = vmmov %vm10704_vm2 }
 0x36a   : > { %5691 = vrot.lane.b32.xlu1 %v5660_v57, %s7543_s10  ;;  %v5806_v13 = vpop.permute.xlu0 %5805  ;;  %s10491_s10 = scalar_lea.vmem %s10522_s8, %s7005_s25 }
 0x36b   : > { %v4784_v20 = vpop.permute.xlu1 %4783 }
 0x36e   : > { %5819 = vrot.lane.b32.xlu1 %v5788_v50, %s7541_s26  ;;  %v4786_v62 = vpop.permute.xlu0 %4785 }
 0x36f   : > { %v5168_v17 = vpop.permute.xlu1 %5167 }
 0x373   : > { %v5804_v30 = vpop.permute.xlu0 %5803 }
 0x374   : > { %v4658_v32 = vpop.permute.xlu1 %4657 }
 0x375   : > { %v5842_v3 = vsel %vm10707_vm11, %v10706_v22, %v4658_v32 }
 0x376   : > { %v5875_v57 = vsel %vm5853_vm4, %v5842_v3, %v4786_v62 }
 0x377   : > { %v5294_v34 = vpop.permute.xlu0 %5293 }
 0x378   : > { %v5676_v27 = vpop.permute.xlu1 %5675 }
 0x379   : > { %v6032_v35 = vsel %vm6016_vm6, %v5999_v33, %v5676_v27 }
 0x37a   : > { %v6065_v10 = vsel %vm6049_vm9, %v6032_v35, %v5804_v30 }
 0x37b   : > { %7151 = vmatmul.mubr.msk.bf16.gmra.mrb[12].mxu1 %vm3073_vm1, %v6065_v10  ;;  %v5678_v53 = vpop.permute.xlu0 %5677 }
 0x37c   : > { %v4656_v12 = vpop.permute.xlu1 %4655 }
 0x37d   : > { %v5840_v55 = vsel %vm10705_vm3, %v9816_v56, %v4656_v12 }
 0x37e   : > { %v5873_v24 = vsel %vm5853_vm4, %v5840_v55, %v4784_v20 }
 0x37f   : > { %v5166_v15 = vpop.permute.xlu0 %5165 }
 0x380   : > { %v5936_v14 = vsel %vm5918_vm7, %v5903_v31, %v5166_v15  ;;  %v4900_v45 = vpop.permute.xlu1 %4899 }
 0x381   : > { %v5969_v44 = vsel %vm5951_vm0, %v5936_v14, %v5294_v34 }
 0x382   : > { %v6001_v18 = vsel %vm3007_vm15, %v5969_v44, %v5406_v40  ;;  %v5905_v40 = vsel %vm2941_vm13, %v5873_v24, %v10305_v46 }
 0x383   : > { %v5410_v41 = vpop.permute.xlu0 %5409  ;;  %v6034_v59 = vsel %vm6016_vm6, %v6001_v18, %v5678_v53  ;;  %v5938_v61 = vsel %vm5918_vm7, %v5905_v40, %v5168_v17 }
 0x384   : > { %v5408_v9 = vpop.permute.xlu1 %5407  ;;  %v6067_v26 = vsel %vm6049_vm9, %v6034_v59, %v5806_v13  ;;  %v5971_v5 = vsel %vm5951_vm0, %v5938_v61, %v5296_v25 }
 0x385   : > { %7154 = vmatprep.mubr.msk.bf16.mxu1 %vm3073_vm1, %v6067_v26  ;;  %v6003_v29 = vsel %vm3007_vm15, %v5971_v5, %v5408_v9 }
 0x387   : > { %v4898_v49 = vpop.permute.xlu0 %4897 }
 0x388   : > { %v5300_v19 = vpop.permute.xlu1 %5299  ;;  %v5907_v16 = vsel %vm2941_vm13, %v5875_v57, %v4898_v49 }
 0x38b   : > { %v5810_v4 = vpop.permute.xlu0 %5809 }
 0x38c   : > { %v4788_v6 = vpop.permute.xlu1 %4787 }
 0x38f   : > { %v4790_v60 = vpop.permute.xlu0 %4789 }
 0x390   : > { %v5172_v38 = vpop.permute.xlu1 %5171 }
 0x393   : > { %v5808_v58 = vpop.permute.xlu0 %5807 }
 0x394   : > { %v4662_v8 = vpop.permute.xlu1 %4661 }
 0x395   : > { %v5846_v15 = vsel %vm10709_vm14, %v9983_v1, %v4662_v8 }
 0x396   : > { %v5879_v44 = vsel %vm5853_vm4, %v5846_v15, %v4790_v60 }
 0x397   : > { %v5298_v37 = vpop.permute.xlu0 %5297 }
 0x398   : > { %v5680_v48 = vpop.permute.xlu1 %5679 }
 0x399   : > { %v6036_v56 = vsel %vm6016_vm6, %v6003_v29, %v5680_v48 }
 0x39a   : > { %v6069_v0 = vsel %vm6049_vm9, %v6036_v56, %v5808_v58 }
 0x39b   : > { %7155 = vmatmul.mubr.msk.bf16.gmra.mrb[16].mxu1 %vm3073_vm1, %v6069_v0  ;;  %v5682_v46 = vpop.permute.xlu0 %5681 }
 0x39c   : > { %v4660_v43 = vpop.permute.xlu1 %4659 }
 0x39d   : > { %v5844_v30 = vsel %vm10708_vm12, %v10007_v2, %v4660_v43 }
 0x39e   : > { %v5877_v47 = vsel %vm5853_vm4, %v5844_v30, %v4788_v6  ;;  %v10713_v30 = vld [vmem:[#allocation12_spill] sm:$0xff] }
 0x39f   : > { %v5170_v42 = vpop.permute.xlu0 %5169  ;;  %v5909_v27 = vsel %vm2941_vm13, %v5877_v47, %v4900_v45 }
 0x3a0   : > { %v5940_v25 = vsel %vm5918_vm7, %v5907_v16, %v5170_v42  ;;  %v4904_v7 = vpop.permute.xlu1 %4903  ;;  %v5942_v10 = vsel %vm5918_vm7, %v5909_v27, %v5172_v38  ;;  %v10437_v27 = vld [vmem:[%s10521_s7] ss:$0 sm:$0xff] }
 0x3a1   : > { %v5973_v39 = vsel %vm5951_vm0, %v5940_v25, %v5298_v37  ;;  %v5975_v21 = vsel %vm5951_vm0, %v5942_v10, %v5300_v19 }
 0x3a2   : > { %v6005_v13 = vsel %vm3007_vm15, %v5973_v39, %v5410_v41 }
 0x3a3   : > { %v5414_v50 = vpop.permute.xlu0 %5413  ;;  %v6038_v20 = vsel %vm6016_vm6, %v6005_v13, %v5682_v46 }
 0x3a4   : > { %v5412_v23 = vpop.permute.xlu1 %5411  ;;  %v6071_v17 = vsel %vm6049_vm9, %v6038_v20, %v5810_v4 }
 0x3a5   : > { %7158 = vmatprep.mubr.msk.bf16.mxu1 %vm3073_vm1, %v6071_v17  ;;  %v6007_v12 = vsel %vm3007_vm15, %v5975_v21, %v5412_v23 }
 0x3a7   : > { %v4902_v51 = vpop.permute.xlu0 %4901 }
 0x3a8   : > { %v5304_v62 = vpop.permute.xlu1 %5303  ;;  %v5911_v18 = vsel %vm2941_vm13, %v5879_v44, %v4902_v51 }
 0x3ab   : > { %v5814_v11 = vpop.permute.xlu0 %5813 }
 0x3ac   : > { %v4792_v32 = vpop.permute.xlu1 %4791 }
 0x3af   : > { %v4794_v34 = vpop.permute.xlu0 %4793 }
 0x3b0   : > { %v5176_v33 = vpop.permute.xlu1 %5175 }
 0x3b3   : > { %v5812_v35 = vpop.permute.xlu0 %5811 }
 0x3b4   : > { %v4666_v54 = vpop.permute.xlu1 %4665 }
 0x3b5   : > { %v5850_v29 = vsel %vm10711_vm10, %v10113_v36, %v4666_v54 }
 0x3b6   : > { %v5883_v3 = vsel %vm5853_vm4, %v5850_v29, %v4794_v34  ;;  %v10432_v34 = vld [vmem:[%s10520_s6] ss:$0 sm:$0xff] }
 0x3b7   : > { %v5302_v53 = vpop.permute.xlu0 %5301 }
 0x3b8   : > { %v5684_v52 = vpop.permute.xlu1 %5683 }
 0x3b9   : > { %v6040_v2 = vsel %vm6016_vm6, %v6007_v12, %v5684_v52 }
 0x3ba   : > { %v6073_v31 = vsel %vm6049_vm9, %v6040_v2, %v5812_v35 }
 0x3bb   : > { %7159 = vmatmul.mubr.msk.bf16.gmra.mrb[20].mxu1 %vm3073_vm1, %v6073_v31  ;;  %v5686_v14 = vpop.permute.xlu0 %5685 }
 0x3bc   : > { %v4664_v45 = vpop.permute.xlu1 %4663 }
 0x3bd   : > { %v5848_v6 = vsel %vm10710_vm5, %v10132_v63, %v4664_v45 }
 0x3be   : > { %v5881_v38 = vsel %vm5853_vm4, %v5848_v6, %v4792_v32 }
 0x3bf   : > { %v5174_v41 = vpop.permute.xlu0 %5173  ;;  %v5913_v61 = vsel %vm2941_vm13, %v5881_v38, %v4904_v7 }
 0x3c0   : > { %v5944_v59 = vsel %vm5918_vm7, %v5911_v18, %v5174_v41  ;;  %v4908_v9 = vpop.permute.xlu1 %4907  ;;  %v5946_v5 = vsel %vm5918_vm7, %v5913_v61, %v5176_v33 }
 0x3c1   : > { %v5977_v26 = vsel %vm5951_vm0, %v5944_v59, %v5302_v53  ;;  %v5979_v48 = vsel %vm5951_vm0, %v5946_v5, %v5304_v62 }
 0x3c2   : > { %v6009_v49 = vsel %vm3007_vm15, %v5977_v26, %v5414_v50 }
 0x3c3   : > { %v5418_v19 = vpop.permute.xlu0 %5417  ;;  %v6042_v55 = vsel %vm6016_vm6, %v6009_v49, %v5686_v14 }
 0x3c4   : > { %v5416_v1 = vpop.permute.xlu1 %5415  ;;  %v6075_v4 = vsel %vm6049_vm9, %v6042_v55, %v5814_v11 }
 0x3c5   : > { %7162 = vmatprep.mubr.msk.bf16.mxu1 %vm3073_vm1, %v6075_v4  ;;  %v6011_v63 = vsel %vm3007_vm15, %v5979_v48, %v5416_v1 }
 0x3c7   : > { %v4906_v24 = vpop.permute.xlu0 %4905 }
 0x3c8   : > { %v5308_v60 = vpop.permute.xlu1 %5307  ;;  %v5915_v43 = vsel %vm2941_vm13, %v5883_v3, %v4906_v24 }
 0x3cb   : > { %v5816_v40 = vpop.permute.xlu0 %5815 }
 0x3cc   : > { %v4796_v58 = vpop.permute.xlu1 %4795 }
 0x3cf   : > { %v5306_v8 = vpop.permute.xlu0 %5305 }
 0x3d0   : > { %v5180_v37 = vpop.permute.xlu1 %5179 }
 0x3d3   : > { %v5690_v56 = vpop.permute.xlu0 %5689 }
 0x3d4   : > { %v5688_v0 = vpop.permute.xlu1 %5687 }
 0x3d5   : > { %v6044_v22 = vsel %vm6016_vm6, %v6011_v63, %v5688_v0 }
 0x3d6   : > { %v6077_v46 = vsel %vm6049_vm9, %v6044_v22, %v5816_v40 }
 0x3d7   : > { %7163 = vmatmul.mubr.msk.bf16.gmra.mrb[24].mxu1 %vm3073_vm1, %v6077_v46  ;;  %v5178_v57 = vpop.permute.xlu0 %5177 }
 0x3d8   : > { %v5948_v16 = vsel %vm5918_vm7, %v5915_v43, %v5178_v57  ;;  %v4668_v36 = vpop.permute.xlu1 %4667 }
 0x3d9   : > { %v5981_v42 = vsel %vm5951_vm0, %v5948_v16, %v5306_v8  ;;  %v5852_v25 = vsel %vm10712_vm8, %v10260_v28, %v4668_v36 }
 0x3da   : > { %v5885_v7 = vsel %vm5853_vm4, %v5852_v25, %v4796_v58  ;;  %v6013_v39 = vsel %vm3007_vm15, %v5981_v42, %v5418_v19 }
 0x3db   : > { %v5917_v13 = vsel %vm2941_vm13, %v5885_v7, %v4908_v9  ;;  %v5818_v50 = vpop.permute.xlu0 %5817  ;;  %v6046_v20 = vsel %vm6016_vm6, %v6013_v39, %v5690_v56 }
 0x3dc   : > { %v6079_v23 = vsel %vm6049_vm9, %v6046_v20, %v5818_v50  ;;  %v5950_v17 = vsel %vm5918_vm7, %v5917_v13, %v5180_v37  ;;  %v5692_v51 = vpop.permute.xlu1 %5691 }
 0x3dd   : > { %v5983_v62 = vsel %vm5951_vm0, %v5950_v17, %v5308_v60  ;;  %7166 = vmatprep.mubr.msk.bf16.mxu1 %vm3073_vm1, %v6079_v23 }
 0x3de   : > { %v6015_v28 = vsel %vm3007_vm15, %v5983_v62, %v10713_v30 }
 0x3df   : > { %v6048_v11 = vsel %vm6016_vm6, %v6015_v28, %v5692_v51 }
 0x3e0   : > { %v5820_v32 = vpop.permute.xlu1 %5819 }
 0x3e1   : > { %v6081_v47 = vsel %vm6049_vm9, %v6048_v11, %v5820_v32 }
 0x3e2   : > { %7167 = vmatmul.mubr.msk.bf16.gmra.mrb[28].mxu1 %vm3073_vm1, %v6081_v47 }
 0x3ed   : > { %v7140_v33 = vpop.f32.mrb[0].mxu1 }
 0x3ee   : > { %v6188_v35 = vpop.f32.mrb[1].mxu1  ;;  %v6324_v52 = vmul.f32 %v7140_v33, %v10432_v34 }
 0x3ef   : > { %v6322_v10 = vmul.f32 %v10432_v34, %v6188_v35  ;;  %v7141_v54 = vpop.f32.mrb[2].mxu1 }
 0x3f0   : > { %v6191_v21 = vpop.f32.mrb[3].mxu1  ;;  %v6363_v15 = vadd.f32 %v10437_v27, %v6324_v52  ;;  %v6325_v14 = vmul.f32 %v7141_v54, %v10432_v34 }
 0x3f1   : > { %v6361_v53 = vadd.f32 %v10437_v27, %v6322_v10  ;;  %v6323_v12 = vmul.f32 %v10432_v34, %v6191_v21 }
 0x3f2   : > { %v6395_v44 = vmax.f32 %v6363_v15, 0.0  ;;  %v6364_v18 = vadd.f32 %v10437_v27, %v6325_v14 }
 0x3f3   : > { %v6393_v2 = vmax.f32 %v6361_v53, 0.0  ;;  %v6362_v31 = vadd.f32 %v10437_v27, %v6323_v12 }
 0x3f4   : > { %v6396_v41 = vmax.f32 %v6364_v18, 0.0 }
 0x3f5   : > { %6425 = vxpose.xlu0.b32.start [1/16] (narrow) %v6393_v2, 8  ;;  %v6394_v45 = vmax.f32 %v6362_v31, 0.0 }
 0x3f9   : > { %6426 = vxpose.xlu0.b32.cont [2/16] (narrow) %v6394_v45, 8 }
 0x3fd   : > { %6427 = vxpose.xlu0.b32.cont [3/16] (narrow) %v6395_v44, 8 }
 0x401   : > { %6428 = vxpose.xlu0.b32.cont [4/16] (narrow) %v6396_v41, 8 }
 0x40d   : > { %v7144_v59 = vpop.f32.mrb[4].mxu1 }
 0x40e   : > { %v6204_v9 = vpop.f32.mrb[5].mxu1  ;;  %v6328_v4 = vmul.f32 %v7144_v59, %v10432_v34 }
 0x40f   : > { %v6326_v26 = vmul.f32 %v10432_v34, %v6204_v9  ;;  %v7145_v49 = vpop.f32.mrb[6].mxu1 }
 0x410   : > { %v6207_v19 = vpop.f32.mrb[7].mxu1  ;;  %v6367_v60 = vadd.f32 %v10437_v27, %v6328_v4  ;;  %v6329_v38 = vmul.f32 %v7145_v49, %v10432_v34 }
 0x411   : > { %v6365_v55 = vadd.f32 %v10437_v27, %v6326_v26  ;;  %v6327_v1 = vmul.f32 %v10432_v34, %v6207_v19 }
 0x412   : > { %v6399_v58 = vmax.f32 %v6367_v60, 0.0  ;;  %v6368_v61 = vadd.f32 %v10437_v27, %v6329_v38 }
 0x413   : > { %v6397_v6 = vmax.f32 %v6365_v55, 0.0  ;;  %v6366_v24 = vadd.f32 %v10437_v27, %v6327_v1 }
 0x414   : > { %v6400_v8 = vmax.f32 %v6368_v61, 0.0 }
 0x415   : > { %6429 = vxpose.xlu0.b32.cont [5/16] (narrow) %v6397_v6, 8  ;;  %v6398_v40 = vmax.f32 %v6366_v24, 0.0 }
 0x419   : > { %6430 = vxpose.xlu0.b32.cont [6/16] (narrow) %v6398_v40, 8 }
 0x41d   : > { %6431 = vxpose.xlu0.b32.cont [7/16] (narrow) %v6399_v58, 8 }
 0x421   : > { %6432 = vxpose.xlu0.b32.cont [8/16] (narrow) %v6400_v8, 8 }
 0x42d   : > { %v7148_v5 = vpop.f32.mrb[8].mxu1 }
 0x42e   : > { %v6220_v37 = vpop.f32.mrb[9].mxu1  ;;  %v6332_v22 = vmul.f32 %v7148_v5, %v10432_v34 }
 0x42f   : > { %v6330_v29 = vmul.f32 %v10432_v34, %v6220_v37  ;;  %v7149_v48 = vpop.f32.mrb[10].mxu1 }
 0x430   : > { %v6223_v56 = vpop.f32.mrb[11].mxu1  ;;  %v6371_v43 = vadd.f32 %v10437_v27, %v6332_v22  ;;  %v6333_v57 = vmul.f32 %v7149_v48, %v10432_v34 }
 0x431   : > { %v6369_v63 = vadd.f32 %v10437_v27, %v6330_v29  ;;  %v6331_v0 = vmul.f32 %v10432_v34, %v6223_v56 }
 0x432   : > { %v6403_v36 = vmax.f32 %v6371_v43, 0.0  ;;  %v6372_v42 = vadd.f32 %v10437_v27, %v6333_v57 }
 0x433   : > { %v6401_v3 = vmax.f32 %v6369_v63, 0.0  ;;  %v6370_v46 = vadd.f32 %v10437_v27, %v6331_v0 }
 0x434   : > { %v6404_v25 = vmax.f32 %v6372_v42, 0.0 }
 0x435   : > { %6433 = vxpose.xlu0.b32.cont [9/16] (narrow) %v6401_v3, 8  ;;  %v6402_v16 = vmax.f32 %v6370_v46, 0.0 }
 0x439   : > { %6434 = vxpose.xlu0.b32.cont [10/16] (narrow) %v6402_v16, 8 }
 0x43d   : > { %6435 = vxpose.xlu0.b32.cont [11/16] (narrow) %v6403_v36, 8 }
 0x441   : > { %6436 = vxpose.xlu0.b32.cont [12/16] (narrow) %v6404_v25, 8 }
 0x44e   : > { %v7152_v7 = vpop.f32.mrb[12].mxu1 }
 0x44f   : > { %v6236_v39 = vpop.f32.mrb[13].mxu1  ;;  %v6336_v51 = vmul.f32 %v7152_v7, %v10432_v34 }
 0x450   : > { %v6334_v13 = vmul.f32 %v10432_v34, %v6236_v39  ;;  %v7153_v50 = vpop.f32.mrb[14].mxu1 }
 0x451   : > { %v6239_v20 = vpop.f32.mrb[15].mxu1  ;;  %v6375_v28 = vadd.f32 %v10437_v27, %v6336_v51  ;;  %v6337_v11 = vmul.f32 %v7153_v50, %v10432_v34 }
 0x452   : > { %v6373_v23 = vadd.f32 %v10437_v27, %v6334_v13  ;;  %v6335_v17 = vmul.f32 %v10432_v34, %v6239_v20 }
 0x453   : > { %v6407_v47 = vmax.f32 %v6375_v28, 0.0  ;;  %v6376_v33 = vadd.f32 %v10437_v27, %v6337_v11 }
 0x454   : > { %v6405_v62 = vmax.f32 %v6373_v23, 0.0  ;;  %v6374_v30 = vadd.f32 %v10437_v27, %v6335_v17 }
 0x455   : > { %v6408_v35 = vmax.f32 %v6376_v33, 0.0 }
 0x456   : > { %6437 = vxpose.xlu0.b32.cont [13/16] (narrow) %v6405_v62, 8  ;;  %v6406_v32 = vmax.f32 %v6374_v30, 0.0 }
 0x45a   : > { %6438 = vxpose.xlu0.b32.cont [14/16] (narrow) %v6406_v32, 8 }
 0x45e   : > { %6439 = vxpose.xlu0.b32.cont [15/16] (narrow) %v6407_v47, 8 }
 0x462   : > { %6440 = vxpose.xlu0.b32.end [16/16] (narrow) %v6408_v35, 8 }
 0x46e   : > { %v7156_v10 = vpop.f32.mrb[16].mxu1 }
 0x46f   : > { %v6252_v54 = vpop.f32.mrb[17].mxu1  ;;  %v6340_v31 = vmul.f32 %v7156_v10, %v10432_v34 }
 0x470   : > { %v6338_v21 = vmul.f32 %v10432_v34, %v6252_v54  ;;  %v7157_v53 = vpop.f32.mrb[18].mxu1 }
 0x471   : > { %v6255_v12 = vpop.f32.mrb[19].mxu1  ;;  %v6379_v45 = vadd.f32 %v10437_v27, %v6340_v31  ;;  %v6341_v44 = vmul.f32 %v7157_v53, %v10432_v34 }
 0x472   : > { %v6377_v52 = vadd.f32 %v10437_v27, %v6338_v21  ;;  %v6339_v2 = vmul.f32 %v10432_v34, %v6255_v12 }
 0x473   : > { %v6411_v41 = vmax.f32 %v6379_v45, 0.0  ;;  %v6380_v59 = vadd.f32 %v10437_v27, %v6341_v44 }
 0x474   : > { %v6409_v15 = vmax.f32 %v6377_v52, 0.0  ;;  %v6378_v14 = vadd.f32 %v10437_v27, %v6339_v2 }
 0x475   : > { %v6412_v9 = vmax.f32 %v6380_v59, 0.0 }
 0x476   : > { %6457 = vxpose.xlu1.b32.start [1/16] (narrow) %v6409_v15, 8  ;;  %v6410_v18 = vmax.f32 %v6378_v14, 0.0 }
 0x47a   : > { %6458 = vxpose.xlu1.b32.cont [2/16] (narrow) %v6410_v18, 8 }
 0x47e   : > { %6459 = vxpose.xlu1.b32.cont [3/16] (narrow) %v6411_v41, 8 }
 0x482   : > { %6460 = vxpose.xlu1.b32.cont [4/16] (narrow) %v6412_v9, 8 }
 0x48e   : > { %v7160_v26 = vpop.f32.mrb[20].mxu1 }
 0x48f   : > { %v6268_v49 = vpop.f32.mrb[21].mxu1  ;;  %v6344_v24 = vmul.f32 %v7160_v26, %v10432_v34 }
 0x490   : > { %v6342_v19 = vmul.f32 %v10432_v34, %v6268_v49  ;;  %v7161_v55 = vpop.f32.mrb[22].mxu1 }
 0x491   : > { %v6271_v1 = vpop.f32.mrb[23].mxu1  ;;  %v6383_v40 = vadd.f32 %v10437_v27, %v6344_v24  ;;  %v6345_v58 = vmul.f32 %v7161_v55, %v10432_v34 }
 0x492   : > { %v6381_v4 = vadd.f32 %v10437_v27, %v6342_v19  ;;  %v6343_v6 = vmul.f32 %v10432_v34, %v6271_v1 }
 0x493   : > { %v6415_v8 = vmax.f32 %v6383_v40, 0.0  ;;  %v6384_v5 = vadd.f32 %v10437_v27, %v6345_v58 }
 0x494   : > { %v6413_v60 = vmax.f32 %v6381_v4, 0.0  ;;  %v6382_v38 = vadd.f32 %v10437_v27, %v6343_v6 }
 0x495   : > { %v6416_v37 = vmax.f32 %v6384_v5, 0.0 }
 0x496   : > { %6461 = vxpose.xlu1.b32.cont [5/16] (narrow) %v6413_v60, 8  ;;  %v6414_v61 = vmax.f32 %v6382_v38, 0.0 }
 0x49a   : > { %6462 = vxpose.xlu1.b32.cont [6/16] (narrow) %v6414_v61, 8 }
 0x49e   : > { %6463 = vxpose.xlu1.b32.cont [7/16] (narrow) %v6415_v8, 8 }
 0x4a2   : > { %6464 = vxpose.xlu1.b32.cont [8/16] (narrow) %v6416_v37, 8 }
 0x4a6   : > { %v6441_v29 = vpop.trf.xlu0 }
 0x4a7   : > { %6489 = vst [vmem:[%s10491_s10] sm:$0xff] %v6441_v29 }
 0x4aa   : > { %v7164_v48 = vpop.f32.mrb[24].mxu1 }
 0x4ab   : > { %v6284_v56 = vpop.f32.mrb[25].mxu1  ;;  %v6348_v43 = vmul.f32 %v7164_v48, %v10432_v34 }
 0x4ac   : > { %v6346_v63 = vmul.f32 %v10432_v34, %v6284_v56  ;;  %v7165_v0 = vpop.f32.mrb[26].mxu1 }
 0x4ad   : > { %v6287_v22 = vpop.f32.mrb[27].mxu1  ;;  %v6387_v36 = vadd.f32 %v10437_v27, %v6348_v43  ;;  %v6349_v42 = vmul.f32 %v7165_v0, %v10432_v34 }
 0x4ae   : > { %v6385_v3 = vadd.f32 %v10437_v27, %v6346_v63  ;;  %v6347_v46 = vmul.f32 %v10432_v34, %v6287_v22 }
 0x4af   : > { %v6419_v50 = vmax.f32 %v6387_v36, 0.0  ;;  %v6388_v20 = vadd.f32 %v10437_v27, %v6349_v42 }
 0x4b0   : > { %v6417_v57 = vmax.f32 %v6385_v3, 0.0  ;;  %v6386_v16 = vadd.f32 %v10437_v27, %v6347_v46 }
 0x4b1   : > { %v6420_v51 = vmax.f32 %v6388_v20, 0.0 }
 0x4b2   : > { %6465 = vxpose.xlu1.b32.cont [9/16] (narrow) %v6417_v57, 8  ;;  %v6418_v25 = vmax.f32 %v6386_v16, 0.0 }
 0x4b5   : > { %v7168_v7 = vpop.f32.mrb[28].mxu1 }
 0x4b6   : > { %6466 = vxpose.xlu1.b32.cont [10/16] (narrow) %v6418_v25, 8  ;;  %v6300_v39 = vpop.f32.mrb[29].mxu1  ;;  %v6352_v28 = vmul.f32 %v7168_v7, %v10432_v34 }
 0x4b7   : > { %v7169_v13 = vpop.f32.mrb[30].mxu1  ;;  %v6350_v23 = vmul.f32 %v10432_v34, %v6300_v39 }
 0x4b8   : > { %v6303_v17 = vpop.f32.mrb[31].mxu1  ;;  %v6391_v47 = vadd.f32 %v10437_v27, %v6352_v28  ;;  %v6353_v33 = vmul.f32 %v7169_v13, %v10432_v34 }
 0x4b9   : > { %v6389_v62 = vadd.f32 %v10437_v27, %v6350_v23  ;;  %v6351_v30 = vmul.f32 %v10432_v34, %v6303_v17 }
 0x4ba   : > { %6467 = vxpose.xlu1.b32.cont [11/16] (narrow) %v6419_v50, 8  ;;  %v6423_v10 = vmax.f32 %v6391_v47, 0.0  ;;  %v6392_v54 = vadd.f32 %v10437_v27, %v6353_v33 }
 0x4bb   : > { %v6421_v11 = vmax.f32 %v6389_v62, 0.0  ;;  %v6390_v32 = vadd.f32 %v10437_v27, %v6351_v30 }
 0x4bc   : > { %v6424_v21 = vmax.f32 %v6392_v54, 0.0 }
 0x4bd   : > { %v6422_v35 = vmax.f32 %v6390_v32, 0.0 }
 0x4be   : > { %6468 = vxpose.xlu1.b32.cont [12/16] (narrow) %v6420_v51, 8 }
 0x4c2   : > { %6469 = vxpose.xlu1.b32.cont [13/16] (narrow) %v6421_v11, 8 }
 0x4c6   : > { %6470 = vxpose.xlu1.b32.cont [14/16] (narrow) %v6422_v35, 8 }
 0x4ca   : > { %6471 = vxpose.xlu1.b32.cont [15/16] (narrow) %v6423_v10, 8 }
 0x4ce   : > { %6472 = vxpose.xlu1.b32.end [16/16] (narrow) %v6424_v21, 8 }
 0x512   : > { %v6473_v53 = vpop.trf.xlu1 }
 0x513   : > { %6490 = vst [vmem:[%s10491_s10 + $0x8] sm:$0xff] %v6473_v53 }
 0x514 PF: > { %s18_s27 = sadd.s32 1, %s7527_s27  }
 0x515   : > { %p15_p4 = scmp.ge.s32.totalorder %s18_s27, 4  }
 0x517   :  { %17 = sbr.rel (!%p15_p4) target bundleno = 1 (0x1), region = 89 }

</bundles_post_ra>
